<compile_context>
chip_gen: v6e
topology: v6e:2x2x1
jax: 0.10.0
libtpu: 0.0.40
codegen_flags: <defaults>
</compile_context>

<pallas_src>
import functools
import math

import jax
import jax.numpy as jnp
from jax.experimental import pallas as pl
from jax.experimental.pallas import tpu as pltpu

# ----------------------------- config ---------------------------------------
GRID_SIZE = 5
SPLINE_ORDER = 3
GRID_RANGE = (-1.0, 1.0)
LN_EPS = 1e-5

_H = (GRID_RANGE[1] - GRID_RANGE[0]) / GRID_SIZE
# Uniform grid (identical for every input feature; update_grid is never called
# in forward), so grid values are baked as python scalars into the kernel.
GRID_VALS = tuple(GRID_RANGE[0] + (i - SPLINE_ORDER) * _H
                  for i in range(GRID_SIZE + 2 * SPLINE_ORDER + 1))

VMEM_SPEC = pl.BlockSpec(memory_space=pltpu.MemorySpace.VMEM)


# ----------------------------- in-kernel helpers -----------------------------
def _layer_norm(v, g, b, eps=LN_EPS):
    mu = jnp.mean(v, axis=-1, keepdims=True)
    vc = v - mu
    var = jnp.mean(vc * vc, axis=-1, keepdims=True)
    return vc * jax.lax.rsqrt(var + eps) * g + b


def _erf_approx(x):
    # Abramowitz & Stegun 7.1.26; max abs error 1.5e-7 (f32-level accurate).
    # TODO(synk): replace with jax.lax.erf if/when erf_p lowers in Mosaic.
    a1, a2, a3, a4, a5 = (0.254829592, -0.284496736, 1.421413741,
                          -1.453152027, 1.061405429)
    p = 0.3275911
    ax = jnp.abs(x)
    t = 1.0 / (1.0 + p * ax)
    poly = ((((a5 * t + a4) * t + a3) * t + a2) * t + a1) * t
    y = 1.0 - poly * jnp.exp(-ax * ax)
    return jnp.where(x >= 0, y, -y)


def _gelu_exact(x):
    # torch activation='gelu' (exact erf form)
    return 0.5 * x * (1.0 + _erf_approx(x * 0.7071067811865475))


def _bspline_bases(x, grid_vals, spline_order):
    """x:(N,in) -> (N, coeffs*in) B-spline bases, COEFF-major flattening.

    grid_vals are python scalars, so the recursion's scale factors are
    constant reciprocals (pure multiply/FMA, no divides at runtime).
    """
    g = grid_vals
    bases = [jnp.where((x >= g[c]) & (x < g[c + 1]), 1.0, 0.0)
             for c in range(len(g) - 1)]
    for k in range(1, spline_order + 1):
        new_bases = []
        for c in range(len(bases) - 1):
            inv_l = 1.0 / (g[c + k] - g[c])
            inv_r = 1.0 / (g[c + k + 1] - g[c + 1])
            left = (x - g[c]) * inv_l
            right = (g[c + k + 1] - x) * inv_r
            new_bases.append(left * bases[c] + right * bases[c + 1])
        bases = new_bases
    return jnp.concatenate(bases, axis=-1)   # column index = c*in + i


# ----------------------------- the fused kernel -------------------------------
def _tabkanet_kernel(*refs, B, n_cat, num_cont, E, nhead, num_layers,
                     n_mlp_blocks, grid_vals, spline_order):
    it = iter(refs)
    cat_tok_ref = next(it)                       # (n_cat*B, E)  token-major
    cont_ref = next(it)                          # (B, num_cont)
    nng_ref = next(it); nnb_ref = next(it)       # LayerNorm over num features
    bwt1_ref = next(it); swt1_ref = next(it)     # KAN layer 1 (num_cont -> 64)
    bw2_ref = next(it); sw2_ref = next(it)       # KAN layer 2, per-token split
    layer_refs = [[next(it) for _ in range(12)] for _ in range(num_layers)]
    fng_ref = next(it); fnb_ref = next(it)       # final encoder LayerNorm
    mlp_refs = [[next(it) for _ in range(4)] for _ in range(n_mlp_blocks)]
    wf_ref = next(it); bf_ref = next(it)         # final classifier Linear
    o_ref = next(it)

    S = n_cat + num_cont
    N = S * B
    Dh = E // nhead
    scale = 1.0 / math.sqrt(Dh)

    # ---------------- NumEncoderTransformer: LayerNorm + KAN x2 --------------
    h = _layer_norm(cont_ref[...], nng_ref[...], nnb_ref[...])
    # KAN layer 1: num_cont -> 64
    bases = _bspline_bases(h, grid_vals, spline_order)
    silu = h * jax.nn.sigmoid(h)
    h = (jnp.dot(silu, bwt1_ref[...], preferred_element_type=jnp.float32)
         + jnp.dot(bases, swt1_ref[...], preferred_element_type=jnp.float32))
    # KAN layer 2: 64 -> E per continuous token (weights pre-split per token,
    # so the output is produced directly as (B, E) token slabs: no reshape).
    bases2 = _bspline_bases(h, grid_vals, spline_order)
    silu2 = h * jax.nn.sigmoid(h)
    num_toks = [
        jnp.dot(silu2, bw2_ref[t], preferred_element_type=jnp.float32)
        + jnp.dot(bases2, sw2_ref[t], preferred_element_type=jnp.float32)
        for t in range(num_cont)]

    # ---------------- token matrix: token-major (S*B, E) ---------------------
    x = jnp.concatenate([cat_tok_ref[...]] + num_toks, axis=0)       # (N, E)

    # "same batch element" attention mask: row i is (token i//B, batch i%B).
    rb = jax.lax.broadcasted_iota(jnp.int32, (N, N), 0) % B
    cb = jax.lax.broadcasted_iota(jnp.int32, (N, N), 1) % B
    neg = jnp.where(rb == cb, 0.0, -1e30).astype(jnp.float32)

    # ---------------- transformer encoder stack (pre-LN, GELU, eval) ---------
    for l in range(num_layers):
        (ln1g, ln1b, wqkv, bqkv, wo, bo,
         ln2g, ln2b, w1, b1, w2, b2) = layer_refs[l]

        # --- self-attention block ---
        h1 = _layer_norm(x, ln1g[...], ln1b[...])
        qkv = (jnp.dot(h1, wqkv[...], preferred_element_type=jnp.float32)
               + bqkv[...])                                           # (N, 3E)
        ctx = []
        for hd in range(nhead):
            q = qkv[:, hd * Dh:(hd + 1) * Dh]
            k = qkv[:, E + hd * Dh:E + (hd + 1) * Dh]
            v = qkv[:, 2 * E + hd * Dh:2 * E + (hd + 1) * Dh]
            s = jax.lax.dot_general(q, k, (((1,), (1,)), ((), ())),
                                    preferred_element_type=jnp.float32) * scale
            s = s + neg
            s = s - jnp.max(s, axis=-1, keepdims=True)
            p = jnp.exp(s)
            p = p * pl.reciprocal(jnp.sum(p, axis=-1, keepdims=True),
                                  approx=True)
            ctx.append(jnp.dot(p, v, preferred_element_type=jnp.float32))
        ctx = jnp.concatenate(ctx, axis=-1)                           # (N, E)
        attn = jnp.dot(ctx, wo[...], preferred_element_type=jnp.float32) + bo[...]
        x = x + attn

        # --- feed-forward block ---
        h2 = _layer_norm(x, ln2g[...], ln2b[...])
        f = jnp.dot(h2, w1[...], preferred_element_type=jnp.float32) + b1[...]
        f = _gelu_exact(f)
        f = jnp.dot(f, w2[...], preferred_element_type=jnp.float32) + b2[...]
        x = x + f

    x = _layer_norm(x, fng_ref[...], fnb_ref[...])                    # (N, E)

    # ---------------- classifier MLP ------------------------------------------
    # First Linear consumes (B, S*E) in torch; here the weight is pre-split into
    # (S, E, H1) slabs and contracted per token -> no (N,E)->(B,S*E) relayout.
    w0_ref, b0_ref, g0_ref, be0_ref = mlp_refs[0]
    hcls = b0_ref[...]
    for s in range(S):
        hcls = hcls + jnp.dot(x[s * B:(s + 1) * B, :], w0_ref[s],
                              preferred_element_type=jnp.float32)
    hcls = _layer_norm(hcls, g0_ref[...], be0_ref[...])
    hcls = jnp.maximum(hcls, 0.0)                 # Activation('relu'); Dropout=id
    for blk in range(1, n_mlp_blocks):
        w, b, g, be = mlp_refs[blk]
        hcls = jnp.dot(hcls, w[...], preferred_element_type=jnp.float32) + b[...]
        hcls = _layer_norm(hcls, g[...], be[...])
        hcls = jnp.maximum(hcls, 0.0)
    out = jnp.dot(hcls, wf_ref[...], preferred_element_type=jnp.float32) + bf_ref[...]
    o_ref[...] = out.astype(o_ref.dtype)


# ----------------------------- wrapper ---------------------------------------
def tabkanet_forward(params, categorical_x, continuous_x, *, nhead,
                     embedding_dim, num_layers, num_cont, n_cat):
    B = categorical_x.shape[0]
    E = embedding_dim
    n_mlp = len(params["mlp_blocks"])
    assert n_mlp >= 1, "classifier needs at least one hidden MLP block"

    # XLA glue: categorical-embedding gathers, stacked token-major (n_cat*B, E)
    # (row order: [col0 b0..bB-1, col1 b0..bB-1, ...] matching the kernel's
    # token-major activation layout).
    cat_tok = jnp.concatenate(
        [params["embeddings"][i][categorical_x[:, i]] for i in range(n_cat)],
        axis=0)

    args = [cat_tok, continuous_x,
            params["num_norm_g"], params["num_norm_b"],
            params["kan1_bwt"], params["kan1_swt"],
            params["kan2_bwt"], params["kan2_swt"]]
    for lp in params["tr_layers"]:
        args += [lp["ln1_g"], lp["ln1_b"], lp["wqkv"], lp["bqkv"],
                 lp["wo"], lp["bo"], lp["ln2_g"], lp["ln2_b"],
                 lp["w1"], lp["b1"], lp["w2"], lp["b2"]]
    args += [params["tr_norm_g"], params["tr_norm_b"]]
    for blk in params["mlp_blocks"]:
        args += [blk["w"], blk["b"], blk["ln_g"], blk["ln_b"]]
    args += [params["mlp_final_w"], params["mlp_final_b"]]

    out_dim = params["mlp_final_b"].shape[-1]
    kern = functools.partial(
        _tabkanet_kernel, B=B, n_cat=n_cat, num_cont=num_cont, E=E,
        nhead=nhead, num_layers=num_layers, n_mlp_blocks=n_mlp,
        grid_vals=GRID_VALS, spline_order=SPLINE_ORDER)

    # NOTE: reference code concatenates [categorical_x, continuous_x] but the
    # classifier only consumes categorical_x; that concat is dead code.
    return pl.pallas_call(
        kern,
        out_shape=jax.ShapeDtypeStruct((B, out_dim), continuous_x.dtype),
        in_specs=[VMEM_SPEC] * len(args),
        out_specs=VMEM_SPEC,
    )(*args)


# ----------------------------- parameter init --------------------------------
class KeyGen:
    def __init__(self, key):
        self.key = key

    def __call__(self):
        self.key, sub = jax.random.split(self.key)
        return sub


def init_params(kg, vocab_sizes, num_cont, E, nhead, num_layers, dim_ff,
                mlp_hidden, output_dim):
    """Random init in torch layouts, pre-transposed / pre-split ONCE so the
    jitted forward never transposes, slices or reshapes weights."""
    f32 = jnp.float32
    n_cat = len(vocab_sizes)
    S = n_cat + num_cont
    coeffs = GRID_SIZE + SPLINE_ORDER
    params = {}

    params["embeddings"] = [0.1 * jax.random.normal(kg(), (v, E), f32)
                            for v in vocab_sizes]

    params["num_norm_g"] = jnp.ones((1, num_cont), f32)
    params["num_norm_b"] = jnp.zeros((1, num_cont), f32)

    def kan_weights(in_f, out_f):
        base_w = 0.1 * jax.random.normal(kg(), (out_f, in_f), f32)   # torch (out,in)
        spline_w = 0.1 * jax.random.normal(kg(), (out_f, in_f, coeffs), f32)
        scaler = 0.1 * jax.random.normal(kg(), (out_f, in_f), f32)
        scaled = spline_w * scaler[:, :, None]                       # (out,in,C)
        bwt = base_w.T                                               # (in,out)
        swt = jnp.transpose(scaled, (2, 1, 0)).reshape(coeffs * in_f, out_f)
        return bwt, swt                                              # coeff-major

    # KAN([num_cont, 64, E*num_cont])
    params["kan1_bwt"], params["kan1_swt"] = kan_weights(num_cont, 64)
    bwt2, swt2 = kan_weights(64, E * num_cont)
    # pre-split layer-2 outputs into per-continuous-token (…, E) slabs
    params["kan2_bwt"] = jnp.stack(
        [bwt2[:, t * E:(t + 1) * E] for t in range(num_cont)], axis=0)
    params["kan2_swt"] = jnp.stack(
        [swt2[:, t * E:(t + 1) * E] for t in range(num_cont)], axis=0)

    # transformer encoder layers ((in,out) layouts, fused QKV weight)
    layers = []
    for _ in range(num_layers):
        in_proj_w = 0.1 * jax.random.normal(kg(), (3 * E, E), f32)   # torch (out,in)
        in_proj_b = 0.01 * jax.random.normal(kg(), (3 * E,), f32)
        out_proj_w = 0.1 * jax.random.normal(kg(), (E, E), f32)
        out_proj_b = 0.01 * jax.random.normal(kg(), (E,), f32)
        ff1_w = 0.1 * jax.random.normal(kg(), (dim_ff, E), f32)
        ff1_b = 0.01 * jax.random.normal(kg(), (dim_ff,), f32)
        ff2_w = 0.1 * jax.random.normal(kg(), (E, dim_ff), f32)
        ff2_b = 0.01 * jax.random.normal(kg(), (E,), f32)
        layers.append({
            "ln1_g": jnp.ones((1, E), f32), "ln1_b": jnp.zeros((1, E), f32),
            "wqkv": in_proj_w.T,                       # (E, 3E), cols [Q|K|V]
            "bqkv": in_proj_b.reshape(1, 3 * E),
            "wo": out_proj_w.T, "bo": out_proj_b.reshape(1, E),
            "ln2_g": jnp.ones((1, E), f32), "ln2_b": jnp.zeros((1, E), f32),
            "w1": ff1_w.T, "b1": ff1_b.reshape(1, dim_ff),
            "w2": ff2_w.T, "b2": ff2_b.reshape(1, E),
        })
    params["tr_layers"] = layers
    params["tr_norm_g"] = jnp.ones((1, E), f32)
    params["tr_norm_b"] = jnp.zeros((1, E), f32)

    # classifier MLP; first Linear's weight pre-split into per-token slabs
    dims = [E * S] + list(mlp_hidden)
    blocks = []
    for i in range(len(dims) - 1):
        w = 0.1 * jax.random.normal(kg(), (dims[i + 1], dims[i]), f32)
        b = 0.01 * jax.random.normal(kg(), (dims[i + 1],), f32)
        wt = w.T                                                     # (in, out)
        if i == 0:
            wt = wt.reshape(S, E, dims[1])           # (S, E, H1) token slabs
        blocks.append({
            "w": wt, "b": b.reshape(1, -1),
            "ln_g": jnp.ones((1, dims[i + 1]), f32),
            "ln_b": jnp.zeros((1, dims[i + 1]), f32),
        })
    params["mlp_blocks"] = blocks
    fw = 0.1 * jax.random.normal(kg(), (output_dim, dims[-1]), f32)
    fb = 0.01 * jax.random.normal(kg(), (output_dim,), f32)
    params["mlp_final_w"] = fw.T
    params["mlp_final_b"] = fb.reshape(1, -1)
    return params


# ----------------------------- main ------------------------------------------
if __name__ == "__main__":
    # model config (small)
    vocab_sizes = [4, 5, 3]           # 3 categorical columns
    num_continuous = 3
    embedding_dim = 32
    nhead = 4
    num_layers = 2
    dim_feedforward = 64
    mlp_hidden_dims = [64, 32]
    output_dim = 2
    n_cat = len(vocab_sizes)

    batch = 2

    key = jax.random.PRNGKey(0)
    kg = KeyGen(key)
    params = init_params(kg, vocab_sizes, num_continuous, embedding_dim, nhead,
                         num_layers, dim_feedforward, mlp_hidden_dims, output_dim)

    k_cat, k_cont = jax.random.split(kg(), 2)
    categorical_x = jnp.stack(
        [jax.random.randint(jax.random.fold_in(k_cat, i), (batch,), 0, v)
         for i, v in enumerate(vocab_sizes)], axis=1).astype(jnp.int32)   # (2, 3)
    continuous_x = jax.random.normal(k_cont, (batch, num_continuous), jnp.float32)

    fwd = jax.jit(functools.partial(
        tabkanet_forward, nhead=nhead, embedding_dim=embedding_dim,
        num_layers=num_layers, num_cont=num_continuous, n_cat=n_cat))

    out = fwd(params, categorical_x, continuous_x)
    jax.block_until_ready(out)
    assert out.shape == (batch, output_dim)
    print("KERNEL_OK")
</pallas_src>

<mosaic_0001>
module attributes {stable_mosaic.version = 11 : i64} {
  func.func @_tabkanet_kernel(%arg0: memref<6x32xf32, #tpu.memory_space<vmem>>, %arg1: memref<2x3xf32, #tpu.memory_space<vmem>>, %arg2: memref<1x3xf32, #tpu.memory_space<vmem>>, %arg3: memref<1x3xf32, #tpu.memory_space<vmem>>, %arg4: memref<3x64xf32, #tpu.memory_space<vmem>>, %arg5: memref<24x64xf32, #tpu.memory_space<vmem>>, %arg6: memref<3x64x32xf32, #tpu.memory_space<vmem>>, %arg7: memref<3x512x32xf32, #tpu.memory_space<vmem>>, %arg8: memref<1x32xf32, #tpu.memory_space<vmem>>, %arg9: memref<1x32xf32, #tpu.memory_space<vmem>>, %arg10: memref<32x96xf32, #tpu.memory_space<vmem>>, %arg11: memref<1x96xf32, #tpu.memory_space<vmem>>, %arg12: memref<32x32xf32, #tpu.memory_space<vmem>>, %arg13: memref<1x32xf32, #tpu.memory_space<vmem>>, %arg14: memref<1x32xf32, #tpu.memory_space<vmem>>, %arg15: memref<1x32xf32, #tpu.memory_space<vmem>>, %arg16: memref<32x64xf32, #tpu.memory_space<vmem>>, %arg17: memref<1x64xf32, #tpu.memory_space<vmem>>, %arg18: memref<64x32xf32, #tpu.memory_space<vmem>>, %arg19: memref<1x32xf32, #tpu.memory_space<vmem>>, %arg20: memref<1x32xf32, #tpu.memory_space<vmem>>, %arg21: memref<1x32xf32, #tpu.memory_space<vmem>>, %arg22: memref<32x96xf32, #tpu.memory_space<vmem>>, %arg23: memref<1x96xf32, #tpu.memory_space<vmem>>, %arg24: memref<32x32xf32, #tpu.memory_space<vmem>>, %arg25: memref<1x32xf32, #tpu.memory_space<vmem>>, %arg26: memref<1x32xf32, #tpu.memory_space<vmem>>, %arg27: memref<1x32xf32, #tpu.memory_space<vmem>>, %arg28: memref<32x64xf32, #tpu.memory_space<vmem>>, %arg29: memref<1x64xf32, #tpu.memory_space<vmem>>, %arg30: memref<64x32xf32, #tpu.memory_space<vmem>>, %arg31: memref<1x32xf32, #tpu.memory_space<vmem>>, %arg32: memref<1x32xf32, #tpu.memory_space<vmem>>, %arg33: memref<1x32xf32, #tpu.memory_space<vmem>>, %arg34: memref<6x32x64xf32, #tpu.memory_space<vmem>>, %arg35: memref<1x64xf32, #tpu.memory_space<vmem>>, %arg36: memref<1x64xf32, #tpu.memory_space<vmem>>, %arg37: memref<1x64xf32, #tpu.memory_space<vmem>>, %arg38: memref<64x32xf32, #tpu.memory_space<vmem>>, %arg39: memref<1x32xf32, #tpu.memory_space<vmem>>, %arg40: memref<1x32xf32, #tpu.memory_space<vmem>>, %arg41: memref<1x32xf32, #tpu.memory_space<vmem>>, %arg42: memref<32x2xf32, #tpu.memory_space<vmem>>, %arg43: memref<1x2xf32, #tpu.memory_space<vmem>>, %arg44: memref<2x2xf32, #tpu.memory_space<vmem>>) attributes {dimension_semantics = [], scalar_prefetch = 0 : i64, scratch_operands = 0 : i64, tpu.core_type = #tpu.core_type<tc>} {
    %c0 = arith.constant 0 : index
    %c0_0 = arith.constant 0 : index
    %0 = vector.load %arg1[%c0, %c0_0] : memref<2x3xf32, #tpu.memory_space<vmem>>, vector<2x3xf32>
    %c0_1 = arith.constant 0 : index
    %c0_2 = arith.constant 0 : index
    %1 = vector.load %arg2[%c0_1, %c0_2] : memref<1x3xf32, #tpu.memory_space<vmem>>, vector<1x3xf32>
    %c0_3 = arith.constant 0 : index
    %c0_4 = arith.constant 0 : index
    %2 = vector.load %arg3[%c0_3, %c0_4] : memref<1x3xf32, #tpu.memory_space<vmem>>, vector<1x3xf32>
    %cst = arith.constant dense<0.000000e+00> : vector<2xf32>
    %3 = vector.multi_reduction <add>, %0, %cst [1] : vector<2x3xf32> to vector<2xf32>
    %4 = vector.shape_cast %3 : vector<2xf32> to vector<2x1xf32>
    %cst_5 = arith.constant 3.000000e+00 : f32
    %5 = vector.broadcast %cst_5 : f32 to vector<2x1xf32>
    %6 = arith.divf %4, %5 : vector<2x1xf32>
    %7 = vector.broadcast %6 : vector<2x1xf32> to vector<2x3xf32>
    %8 = arith.subf %0, %7 : vector<2x3xf32>
    %9 = arith.mulf %8, %8 : vector<2x3xf32>
    %cst_6 = arith.constant dense<0.000000e+00> : vector<2xf32>
    %10 = vector.multi_reduction <add>, %9, %cst_6 [1] : vector<2x3xf32> to vector<2xf32>
    %11 = vector.shape_cast %10 : vector<2xf32> to vector<2x1xf32>
    %cst_7 = arith.constant 3.000000e+00 : f32
    %12 = vector.broadcast %cst_7 : f32 to vector<2x1xf32>
    %13 = arith.divf %11, %12 : vector<2x1xf32>
    %cst_8 = arith.constant 9.99999974E-6 : f32
    %14 = vector.broadcast %cst_8 : f32 to vector<2x1xf32>
    %15 = arith.addf %13, %14 : vector<2x1xf32>
    %16 = math.rsqrt %15 : vector<2x1xf32>
    %17 = vector.broadcast %16 : vector<2x1xf32> to vector<2x3xf32>
    %18 = arith.mulf %8, %17 : vector<2x3xf32>
    %19 = vector.broadcast %1 : vector<1x3xf32> to vector<2x3xf32>
    %20 = arith.mulf %18, %19 : vector<2x3xf32>
    %21 = vector.broadcast %2 : vector<1x3xf32> to vector<2x3xf32>
    %22 = arith.addf %20, %21 : vector<2x3xf32>
    %cst_9 = arith.constant -2.200000e+00 : f32
    %23 = vector.broadcast %cst_9 : f32 to vector<2x3xf32>
    %24 = arith.cmpf oge, %22, %23 : vector<2x3xf32>
    %cst_10 = arith.constant -1.800000e+00 : f32
    %25 = vector.broadcast %cst_10 : f32 to vector<2x3xf32>
    %26 = arith.cmpf olt, %22, %25 : vector<2x3xf32>
    %27 = arith.andi %24, %26 : vector<2x3xi1>
    %cst_11 = arith.constant 1.000000e+00 : f32
    %cst_12 = arith.constant 0.000000e+00 : f32
    %28 = vector.broadcast %cst_11 : f32 to vector<2x3xf32>
    %29 = vector.broadcast %cst_12 : f32 to vector<2x3xf32>
    %30 = arith.select %27, %28, %29 : vector<2x3xi1>, vector<2x3xf32>
    %cst_13 = arith.constant -1.800000e+00 : f32
    %31 = vector.broadcast %cst_13 : f32 to vector<2x3xf32>
    %32 = arith.cmpf oge, %22, %31 : vector<2x3xf32>
    %cst_14 = arith.constant -1.400000e+00 : f32
    %33 = vector.broadcast %cst_14 : f32 to vector<2x3xf32>
    %34 = arith.cmpf olt, %22, %33 : vector<2x3xf32>
    %35 = arith.andi %32, %34 : vector<2x3xi1>
    %cst_15 = arith.constant 1.000000e+00 : f32
    %cst_16 = arith.constant 0.000000e+00 : f32
    %36 = vector.broadcast %cst_15 : f32 to vector<2x3xf32>
    %37 = vector.broadcast %cst_16 : f32 to vector<2x3xf32>
    %38 = arith.select %35, %36, %37 : vector<2x3xi1>, vector<2x3xf32>
    %cst_17 = arith.constant -1.400000e+00 : f32
    %39 = vector.broadcast %cst_17 : f32 to vector<2x3xf32>
    %40 = arith.cmpf oge, %22, %39 : vector<2x3xf32>
    %cst_18 = arith.constant -1.000000e+00 : f32
    %41 = vector.broadcast %cst_18 : f32 to vector<2x3xf32>
    %42 = arith.cmpf olt, %22, %41 : vector<2x3xf32>
    %43 = arith.andi %40, %42 : vector<2x3xi1>
    %cst_19 = arith.constant 1.000000e+00 : f32
    %cst_20 = arith.constant 0.000000e+00 : f32
    %44 = vector.broadcast %cst_19 : f32 to vector<2x3xf32>
    %45 = vector.broadcast %cst_20 : f32 to vector<2x3xf32>
    %46 = arith.select %43, %44, %45 : vector<2x3xi1>, vector<2x3xf32>
    %cst_21 = arith.constant -1.000000e+00 : f32
    %47 = vector.broadcast %cst_21 : f32 to vector<2x3xf32>
    %48 = arith.cmpf oge, %22, %47 : vector<2x3xf32>
    %cst_22 = arith.constant -6.000000e-01 : f32
    %49 = vector.broadcast %cst_22 : f32 to vector<2x3xf32>
    %50 = arith.cmpf olt, %22, %49 : vector<2x3xf32>
    %51 = arith.andi %48, %50 : vector<2x3xi1>
    %cst_23 = arith.constant 1.000000e+00 : f32
    %cst_24 = arith.constant 0.000000e+00 : f32
    %52 = vector.broadcast %cst_23 : f32 to vector<2x3xf32>
    %53 = vector.broadcast %cst_24 : f32 to vector<2x3xf32>
    %54 = arith.select %51, %52, %53 : vector<2x3xi1>, vector<2x3xf32>
    %cst_25 = arith.constant -6.000000e-01 : f32
    %55 = vector.broadcast %cst_25 : f32 to vector<2x3xf32>
    %56 = arith.cmpf oge, %22, %55 : vector<2x3xf32>
    %cst_26 = arith.constant -2.000000e-01 : f32
    %57 = vector.broadcast %cst_26 : f32 to vector<2x3xf32>
    %58 = arith.cmpf olt, %22, %57 : vector<2x3xf32>
    %59 = arith.andi %56, %58 : vector<2x3xi1>
    %cst_27 = arith.constant 1.000000e+00 : f32
    %cst_28 = arith.constant 0.000000e+00 : f32
    %60 = vector.broadcast %cst_27 : f32 to vector<2x3xf32>
    %61 = vector.broadcast %cst_28 : f32 to vector<2x3xf32>
    %62 = arith.select %59, %60, %61 : vector<2x3xi1>, vector<2x3xf32>
    %cst_29 = arith.constant -2.000000e-01 : f32
    %63 = vector.broadcast %cst_29 : f32 to vector<2x3xf32>
    %64 = arith.cmpf oge, %22, %63 : vector<2x3xf32>
    %cst_30 = arith.constant 2.000000e-01 : f32
    %65 = vector.broadcast %cst_30 : f32 to vector<2x3xf32>
    %66 = arith.cmpf olt, %22, %65 : vector<2x3xf32>
    %67 = arith.andi %64, %66 : vector<2x3xi1>
    %cst_31 = arith.constant 1.000000e+00 : f32
    %cst_32 = arith.constant 0.000000e+00 : f32
    %68 = vector.broadcast %cst_31 : f32 to vector<2x3xf32>
    %69 = vector.broadcast %cst_32 : f32 to vector<2x3xf32>
    %70 = arith.select %67, %68, %69 : vector<2x3xi1>, vector<2x3xf32>
    %cst_33 = arith.constant 2.000000e-01 : f32
    %71 = vector.broadcast %cst_33 : f32 to vector<2x3xf32>
    %72 = arith.cmpf oge, %22, %71 : vector<2x3xf32>
    %cst_34 = arith.constant 6.000000e-01 : f32
    %73 = vector.broadcast %cst_34 : f32 to vector<2x3xf32>
    %74 = arith.cmpf olt, %22, %73 : vector<2x3xf32>
    %75 = arith.andi %72, %74 : vector<2x3xi1>
    %cst_35 = arith.constant 1.000000e+00 : f32
    %cst_36 = arith.constant 0.000000e+00 : f32
    %76 = vector.broadcast %cst_35 : f32 to vector<2x3xf32>
    %77 = vector.broadcast %cst_36 : f32 to vector<2x3xf32>
    %78 = arith.select %75, %76, %77 : vector<2x3xi1>, vector<2x3xf32>
    %cst_37 = arith.constant 6.000000e-01 : f32
    %79 = vector.broadcast %cst_37 : f32 to vector<2x3xf32>
    %80 = arith.cmpf oge, %22, %79 : vector<2x3xf32>
    %cst_38 = arith.constant 1.000000e+00 : f32
    %81 = vector.broadcast %cst_38 : f32 to vector<2x3xf32>
    %82 = arith.cmpf olt, %22, %81 : vector<2x3xf32>
    %83 = arith.andi %80, %82 : vector<2x3xi1>
    %cst_39 = arith.constant 1.000000e+00 : f32
    %cst_40 = arith.constant 0.000000e+00 : f32
    %84 = vector.broadcast %cst_39 : f32 to vector<2x3xf32>
    %85 = vector.broadcast %cst_40 : f32 to vector<2x3xf32>
    %86 = arith.select %83, %84, %85 : vector<2x3xi1>, vector<2x3xf32>
    %cst_41 = arith.constant 1.000000e+00 : f32
    %87 = vector.broadcast %cst_41 : f32 to vector<2x3xf32>
    %88 = arith.cmpf oge, %22, %87 : vector<2x3xf32>
    %cst_42 = arith.constant 1.400000e+00 : f32
    %89 = vector.broadcast %cst_42 : f32 to vector<2x3xf32>
    %90 = arith.cmpf olt, %22, %89 : vector<2x3xf32>
    %91 = arith.andi %88, %90 : vector<2x3xi1>
    %cst_43 = arith.constant 1.000000e+00 : f32
    %cst_44 = arith.constant 0.000000e+00 : f32
    %92 = vector.broadcast %cst_43 : f32 to vector<2x3xf32>
    %93 = vector.broadcast %cst_44 : f32 to vector<2x3xf32>
    %94 = arith.select %91, %92, %93 : vector<2x3xi1>, vector<2x3xf32>
    %cst_45 = arith.constant 1.400000e+00 : f32
    %95 = vector.broadcast %cst_45 : f32 to vector<2x3xf32>
    %96 = arith.cmpf oge, %22, %95 : vector<2x3xf32>
    %cst_46 = arith.constant 1.800000e+00 : f32
    %97 = vector.broadcast %cst_46 : f32 to vector<2x3xf32>
    %98 = arith.cmpf olt, %22, %97 : vector<2x3xf32>
    %99 = arith.andi %96, %98 : vector<2x3xi1>
    %cst_47 = arith.constant 1.000000e+00 : f32
    %cst_48 = arith.constant 0.000000e+00 : f32
    %100 = vector.broadcast %cst_47 : f32 to vector<2x3xf32>
    %101 = vector.broadcast %cst_48 : f32 to vector<2x3xf32>
    %102 = arith.select %99, %100, %101 : vector<2x3xi1>, vector<2x3xf32>
    %cst_49 = arith.constant 1.800000e+00 : f32
    %103 = vector.broadcast %cst_49 : f32 to vector<2x3xf32>
    %104 = arith.cmpf oge, %22, %103 : vector<2x3xf32>
    %cst_50 = arith.constant 2.200000e+00 : f32
    %105 = vector.broadcast %cst_50 : f32 to vector<2x3xf32>
    %106 = arith.cmpf olt, %22, %105 : vector<2x3xf32>
    %107 = arith.andi %104, %106 : vector<2x3xi1>
    %cst_51 = arith.constant 1.000000e+00 : f32
    %cst_52 = arith.constant 0.000000e+00 : f32
    %108 = vector.broadcast %cst_51 : f32 to vector<2x3xf32>
    %109 = vector.broadcast %cst_52 : f32 to vector<2x3xf32>
    %110 = arith.select %107, %108, %109 : vector<2x3xi1>, vector<2x3xf32>
    %cst_53 = arith.constant -2.200000e+00 : f32
    %111 = vector.broadcast %cst_53 : f32 to vector<2x3xf32>
    %112 = arith.subf %22, %111 : vector<2x3xf32>
    %cst_54 = arith.constant 2.500000e+00 : f32
    %113 = vector.broadcast %cst_54 : f32 to vector<2x3xf32>
    %114 = arith.mulf %112, %113 : vector<2x3xf32>
    %cst_55 = arith.constant -1.400000e+00 : f32
    %115 = vector.broadcast %cst_55 : f32 to vector<2x3xf32>
    %116 = arith.subf %115, %22 : vector<2x3xf32>
    %cst_56 = arith.constant 2.500000e+00 : f32
    %117 = vector.broadcast %cst_56 : f32 to vector<2x3xf32>
    %118 = arith.mulf %116, %117 : vector<2x3xf32>
    %119 = arith.mulf %114, %30 : vector<2x3xf32>
    %120 = arith.mulf %118, %38 : vector<2x3xf32>
    %121 = arith.addf %119, %120 : vector<2x3xf32>
    %cst_57 = arith.constant -1.800000e+00 : f32
    %122 = vector.broadcast %cst_57 : f32 to vector<2x3xf32>
    %123 = arith.subf %22, %122 : vector<2x3xf32>
    %cst_58 = arith.constant 2.500000e+00 : f32
    %124 = vector.broadcast %cst_58 : f32 to vector<2x3xf32>
    %125 = arith.mulf %123, %124 : vector<2x3xf32>
    %cst_59 = arith.constant -1.000000e+00 : f32
    %126 = vector.broadcast %cst_59 : f32 to vector<2x3xf32>
    %127 = arith.subf %126, %22 : vector<2x3xf32>
    %cst_60 = arith.constant 2.500000e+00 : f32
    %128 = vector.broadcast %cst_60 : f32 to vector<2x3xf32>
    %129 = arith.mulf %127, %128 : vector<2x3xf32>
    %130 = arith.mulf %125, %38 : vector<2x3xf32>
    %131 = arith.mulf %129, %46 : vector<2x3xf32>
    %132 = arith.addf %130, %131 : vector<2x3xf32>
    %cst_61 = arith.constant -1.400000e+00 : f32
    %133 = vector.broadcast %cst_61 : f32 to vector<2x3xf32>
    %134 = arith.subf %22, %133 : vector<2x3xf32>
    %cst_62 = arith.constant 2.500000e+00 : f32
    %135 = vector.broadcast %cst_62 : f32 to vector<2x3xf32>
    %136 = arith.mulf %134, %135 : vector<2x3xf32>
    %cst_63 = arith.constant -6.000000e-01 : f32
    %137 = vector.broadcast %cst_63 : f32 to vector<2x3xf32>
    %138 = arith.subf %137, %22 : vector<2x3xf32>
    %cst_64 = arith.constant 2.500000e+00 : f32
    %139 = vector.broadcast %cst_64 : f32 to vector<2x3xf32>
    %140 = arith.mulf %138, %139 : vector<2x3xf32>
    %141 = arith.mulf %136, %46 : vector<2x3xf32>
    %142 = arith.mulf %140, %54 : vector<2x3xf32>
    %143 = arith.addf %141, %142 : vector<2x3xf32>
    %cst_65 = arith.constant -1.000000e+00 : f32
    %144 = vector.broadcast %cst_65 : f32 to vector<2x3xf32>
    %145 = arith.subf %22, %144 : vector<2x3xf32>
    %cst_66 = arith.constant 2.500000e+00 : f32
    %146 = vector.broadcast %cst_66 : f32 to vector<2x3xf32>
    %147 = arith.mulf %145, %146 : vector<2x3xf32>
    %cst_67 = arith.constant -2.000000e-01 : f32
    %148 = vector.broadcast %cst_67 : f32 to vector<2x3xf32>
    %149 = arith.subf %148, %22 : vector<2x3xf32>
    %cst_68 = arith.constant 2.500000e+00 : f32
    %150 = vector.broadcast %cst_68 : f32 to vector<2x3xf32>
    %151 = arith.mulf %149, %150 : vector<2x3xf32>
    %152 = arith.mulf %147, %54 : vector<2x3xf32>
    %153 = arith.mulf %151, %62 : vector<2x3xf32>
    %154 = arith.addf %152, %153 : vector<2x3xf32>
    %cst_69 = arith.constant -6.000000e-01 : f32
    %155 = vector.broadcast %cst_69 : f32 to vector<2x3xf32>
    %156 = arith.subf %22, %155 : vector<2x3xf32>
    %cst_70 = arith.constant 2.500000e+00 : f32
    %157 = vector.broadcast %cst_70 : f32 to vector<2x3xf32>
    %158 = arith.mulf %156, %157 : vector<2x3xf32>
    %cst_71 = arith.constant 2.000000e-01 : f32
    %159 = vector.broadcast %cst_71 : f32 to vector<2x3xf32>
    %160 = arith.subf %159, %22 : vector<2x3xf32>
    %cst_72 = arith.constant 2.500000e+00 : f32
    %161 = vector.broadcast %cst_72 : f32 to vector<2x3xf32>
    %162 = arith.mulf %160, %161 : vector<2x3xf32>
    %163 = arith.mulf %158, %62 : vector<2x3xf32>
    %164 = arith.mulf %162, %70 : vector<2x3xf32>
    %165 = arith.addf %163, %164 : vector<2x3xf32>
    %cst_73 = arith.constant -2.000000e-01 : f32
    %166 = vector.broadcast %cst_73 : f32 to vector<2x3xf32>
    %167 = arith.subf %22, %166 : vector<2x3xf32>
    %cst_74 = arith.constant 2.500000e+00 : f32
    %168 = vector.broadcast %cst_74 : f32 to vector<2x3xf32>
    %169 = arith.mulf %167, %168 : vector<2x3xf32>
    %cst_75 = arith.constant 6.000000e-01 : f32
    %170 = vector.broadcast %cst_75 : f32 to vector<2x3xf32>
    %171 = arith.subf %170, %22 : vector<2x3xf32>
    %cst_76 = arith.constant 2.500000e+00 : f32
    %172 = vector.broadcast %cst_76 : f32 to vector<2x3xf32>
    %173 = arith.mulf %171, %172 : vector<2x3xf32>
    %174 = arith.mulf %169, %70 : vector<2x3xf32>
    %175 = arith.mulf %173, %78 : vector<2x3xf32>
    %176 = arith.addf %174, %175 : vector<2x3xf32>
    %cst_77 = arith.constant 2.000000e-01 : f32
    %177 = vector.broadcast %cst_77 : f32 to vector<2x3xf32>
    %178 = arith.subf %22, %177 : vector<2x3xf32>
    %cst_78 = arith.constant 2.500000e+00 : f32
    %179 = vector.broadcast %cst_78 : f32 to vector<2x3xf32>
    %180 = arith.mulf %178, %179 : vector<2x3xf32>
    %cst_79 = arith.constant 1.000000e+00 : f32
    %181 = vector.broadcast %cst_79 : f32 to vector<2x3xf32>
    %182 = arith.subf %181, %22 : vector<2x3xf32>
    %cst_80 = arith.constant 2.500000e+00 : f32
    %183 = vector.broadcast %cst_80 : f32 to vector<2x3xf32>
    %184 = arith.mulf %182, %183 : vector<2x3xf32>
    %185 = arith.mulf %180, %78 : vector<2x3xf32>
    %186 = arith.mulf %184, %86 : vector<2x3xf32>
    %187 = arith.addf %185, %186 : vector<2x3xf32>
    %cst_81 = arith.constant 6.000000e-01 : f32
    %188 = vector.broadcast %cst_81 : f32 to vector<2x3xf32>
    %189 = arith.subf %22, %188 : vector<2x3xf32>
    %cst_82 = arith.constant 2.500000e+00 : f32
    %190 = vector.broadcast %cst_82 : f32 to vector<2x3xf32>
    %191 = arith.mulf %189, %190 : vector<2x3xf32>
    %cst_83 = arith.constant 1.400000e+00 : f32
    %192 = vector.broadcast %cst_83 : f32 to vector<2x3xf32>
    %193 = arith.subf %192, %22 : vector<2x3xf32>
    %cst_84 = arith.constant 2.500000e+00 : f32
    %194 = vector.broadcast %cst_84 : f32 to vector<2x3xf32>
    %195 = arith.mulf %193, %194 : vector<2x3xf32>
    %196 = arith.mulf %191, %86 : vector<2x3xf32>
    %197 = arith.mulf %195, %94 : vector<2x3xf32>
    %198 = arith.addf %196, %197 : vector<2x3xf32>
    %cst_85 = arith.constant 1.000000e+00 : f32
    %199 = vector.broadcast %cst_85 : f32 to vector<2x3xf32>
    %200 = arith.subf %22, %199 : vector<2x3xf32>
    %cst_86 = arith.constant 2.500000e+00 : f32
    %201 = vector.broadcast %cst_86 : f32 to vector<2x3xf32>
    %202 = arith.mulf %200, %201 : vector<2x3xf32>
    %cst_87 = arith.constant 1.800000e+00 : f32
    %203 = vector.broadcast %cst_87 : f32 to vector<2x3xf32>
    %204 = arith.subf %203, %22 : vector<2x3xf32>
    %cst_88 = arith.constant 2.500000e+00 : f32
    %205 = vector.broadcast %cst_88 : f32 to vector<2x3xf32>
    %206 = arith.mulf %204, %205 : vector<2x3xf32>
    %207 = arith.mulf %202, %94 : vector<2x3xf32>
    %208 = arith.mulf %206, %102 : vector<2x3xf32>
    %209 = arith.addf %207, %208 : vector<2x3xf32>
    %cst_89 = arith.constant 1.400000e+00 : f32
    %210 = vector.broadcast %cst_89 : f32 to vector<2x3xf32>
    %211 = arith.subf %22, %210 : vector<2x3xf32>
    %cst_90 = arith.constant 2.500000e+00 : f32
    %212 = vector.broadcast %cst_90 : f32 to vector<2x3xf32>
    %213 = arith.mulf %211, %212 : vector<2x3xf32>
    %cst_91 = arith.constant 2.200000e+00 : f32
    %214 = vector.broadcast %cst_91 : f32 to vector<2x3xf32>
    %215 = arith.subf %214, %22 : vector<2x3xf32>
    %cst_92 = arith.constant 2.500000e+00 : f32
    %216 = vector.broadcast %cst_92 : f32 to vector<2x3xf32>
    %217 = arith.mulf %215, %216 : vector<2x3xf32>
    %218 = arith.mulf %213, %102 : vector<2x3xf32>
    %219 = arith.mulf %217, %110 : vector<2x3xf32>
    %220 = arith.addf %218, %219 : vector<2x3xf32>
    %cst_93 = arith.constant -2.200000e+00 : f32
    %221 = vector.broadcast %cst_93 : f32 to vector<2x3xf32>
    %222 = arith.subf %22, %221 : vector<2x3xf32>
    %cst_94 = arith.constant 1.250000e+00 : f32
    %223 = vector.broadcast %cst_94 : f32 to vector<2x3xf32>
    %224 = arith.mulf %222, %223 : vector<2x3xf32>
    %cst_95 = arith.constant -1.000000e+00 : f32
    %225 = vector.broadcast %cst_95 : f32 to vector<2x3xf32>
    %226 = arith.subf %225, %22 : vector<2x3xf32>
    %cst_96 = arith.constant 1.250000e+00 : f32
    %227 = vector.broadcast %cst_96 : f32 to vector<2x3xf32>
    %228 = arith.mulf %226, %227 : vector<2x3xf32>
    %229 = arith.mulf %224, %121 : vector<2x3xf32>
    %230 = arith.mulf %228, %132 : vector<2x3xf32>
    %231 = arith.addf %229, %230 : vector<2x3xf32>
    %cst_97 = arith.constant -1.800000e+00 : f32
    %232 = vector.broadcast %cst_97 : f32 to vector<2x3xf32>
    %233 = arith.subf %22, %232 : vector<2x3xf32>
    %cst_98 = arith.constant 1.250000e+00 : f32
    %234 = vector.broadcast %cst_98 : f32 to vector<2x3xf32>
    %235 = arith.mulf %233, %234 : vector<2x3xf32>
    %cst_99 = arith.constant -6.000000e-01 : f32
    %236 = vector.broadcast %cst_99 : f32 to vector<2x3xf32>
    %237 = arith.subf %236, %22 : vector<2x3xf32>
    %cst_100 = arith.constant 1.250000e+00 : f32
    %238 = vector.broadcast %cst_100 : f32 to vector<2x3xf32>
    %239 = arith.mulf %237, %238 : vector<2x3xf32>
    %240 = arith.mulf %235, %132 : vector<2x3xf32>
    %241 = arith.mulf %239, %143 : vector<2x3xf32>
    %242 = arith.addf %240, %241 : vector<2x3xf32>
    %cst_101 = arith.constant -1.400000e+00 : f32
    %243 = vector.broadcast %cst_101 : f32 to vector<2x3xf32>
    %244 = arith.subf %22, %243 : vector<2x3xf32>
    %cst_102 = arith.constant 1.250000e+00 : f32
    %245 = vector.broadcast %cst_102 : f32 to vector<2x3xf32>
    %246 = arith.mulf %244, %245 : vector<2x3xf32>
    %cst_103 = arith.constant -2.000000e-01 : f32
    %247 = vector.broadcast %cst_103 : f32 to vector<2x3xf32>
    %248 = arith.subf %247, %22 : vector<2x3xf32>
    %cst_104 = arith.constant 1.250000e+00 : f32
    %249 = vector.broadcast %cst_104 : f32 to vector<2x3xf32>
    %250 = arith.mulf %248, %249 : vector<2x3xf32>
    %251 = arith.mulf %246, %143 : vector<2x3xf32>
    %252 = arith.mulf %250, %154 : vector<2x3xf32>
    %253 = arith.addf %251, %252 : vector<2x3xf32>
    %cst_105 = arith.constant -1.000000e+00 : f32
    %254 = vector.broadcast %cst_105 : f32 to vector<2x3xf32>
    %255 = arith.subf %22, %254 : vector<2x3xf32>
    %cst_106 = arith.constant 1.250000e+00 : f32
    %256 = vector.broadcast %cst_106 : f32 to vector<2x3xf32>
    %257 = arith.mulf %255, %256 : vector<2x3xf32>
    %cst_107 = arith.constant 2.000000e-01 : f32
    %258 = vector.broadcast %cst_107 : f32 to vector<2x3xf32>
    %259 = arith.subf %258, %22 : vector<2x3xf32>
    %cst_108 = arith.constant 1.250000e+00 : f32
    %260 = vector.broadcast %cst_108 : f32 to vector<2x3xf32>
    %261 = arith.mulf %259, %260 : vector<2x3xf32>
    %262 = arith.mulf %257, %154 : vector<2x3xf32>
    %263 = arith.mulf %261, %165 : vector<2x3xf32>
    %264 = arith.addf %262, %263 : vector<2x3xf32>
    %cst_109 = arith.constant -6.000000e-01 : f32
    %265 = vector.broadcast %cst_109 : f32 to vector<2x3xf32>
    %266 = arith.subf %22, %265 : vector<2x3xf32>
    %cst_110 = arith.constant 1.250000e+00 : f32
    %267 = vector.broadcast %cst_110 : f32 to vector<2x3xf32>
    %268 = arith.mulf %266, %267 : vector<2x3xf32>
    %cst_111 = arith.constant 6.000000e-01 : f32
    %269 = vector.broadcast %cst_111 : f32 to vector<2x3xf32>
    %270 = arith.subf %269, %22 : vector<2x3xf32>
    %cst_112 = arith.constant 1.250000e+00 : f32
    %271 = vector.broadcast %cst_112 : f32 to vector<2x3xf32>
    %272 = arith.mulf %270, %271 : vector<2x3xf32>
    %273 = arith.mulf %268, %165 : vector<2x3xf32>
    %274 = arith.mulf %272, %176 : vector<2x3xf32>
    %275 = arith.addf %273, %274 : vector<2x3xf32>
    %cst_113 = arith.constant -2.000000e-01 : f32
    %276 = vector.broadcast %cst_113 : f32 to vector<2x3xf32>
    %277 = arith.subf %22, %276 : vector<2x3xf32>
    %cst_114 = arith.constant 1.250000e+00 : f32
    %278 = vector.broadcast %cst_114 : f32 to vector<2x3xf32>
    %279 = arith.mulf %277, %278 : vector<2x3xf32>
    %cst_115 = arith.constant 1.000000e+00 : f32
    %280 = vector.broadcast %cst_115 : f32 to vector<2x3xf32>
    %281 = arith.subf %280, %22 : vector<2x3xf32>
    %cst_116 = arith.constant 1.250000e+00 : f32
    %282 = vector.broadcast %cst_116 : f32 to vector<2x3xf32>
    %283 = arith.mulf %281, %282 : vector<2x3xf32>
    %284 = arith.mulf %279, %176 : vector<2x3xf32>
    %285 = arith.mulf %283, %187 : vector<2x3xf32>
    %286 = arith.addf %284, %285 : vector<2x3xf32>
    %cst_117 = arith.constant 2.000000e-01 : f32
    %287 = vector.broadcast %cst_117 : f32 to vector<2x3xf32>
    %288 = arith.subf %22, %287 : vector<2x3xf32>
    %cst_118 = arith.constant 1.250000e+00 : f32
    %289 = vector.broadcast %cst_118 : f32 to vector<2x3xf32>
    %290 = arith.mulf %288, %289 : vector<2x3xf32>
    %cst_119 = arith.constant 1.400000e+00 : f32
    %291 = vector.broadcast %cst_119 : f32 to vector<2x3xf32>
    %292 = arith.subf %291, %22 : vector<2x3xf32>
    %cst_120 = arith.constant 1.250000e+00 : f32
    %293 = vector.broadcast %cst_120 : f32 to vector<2x3xf32>
    %294 = arith.mulf %292, %293 : vector<2x3xf32>
    %295 = arith.mulf %290, %187 : vector<2x3xf32>
    %296 = arith.mulf %294, %198 : vector<2x3xf32>
    %297 = arith.addf %295, %296 : vector<2x3xf32>
    %cst_121 = arith.constant 6.000000e-01 : f32
    %298 = vector.broadcast %cst_121 : f32 to vector<2x3xf32>
    %299 = arith.subf %22, %298 : vector<2x3xf32>
    %cst_122 = arith.constant 1.250000e+00 : f32
    %300 = vector.broadcast %cst_122 : f32 to vector<2x3xf32>
    %301 = arith.mulf %299, %300 : vector<2x3xf32>
    %cst_123 = arith.constant 1.800000e+00 : f32
    %302 = vector.broadcast %cst_123 : f32 to vector<2x3xf32>
    %303 = arith.subf %302, %22 : vector<2x3xf32>
    %cst_124 = arith.constant 1.250000e+00 : f32
    %304 = vector.broadcast %cst_124 : f32 to vector<2x3xf32>
    %305 = arith.mulf %303, %304 : vector<2x3xf32>
    %306 = arith.mulf %301, %198 : vector<2x3xf32>
    %307 = arith.mulf %305, %209 : vector<2x3xf32>
    %308 = arith.addf %306, %307 : vector<2x3xf32>
    %cst_125 = arith.constant 1.000000e+00 : f32
    %309 = vector.broadcast %cst_125 : f32 to vector<2x3xf32>
    %310 = arith.subf %22, %309 : vector<2x3xf32>
    %cst_126 = arith.constant 1.250000e+00 : f32
    %311 = vector.broadcast %cst_126 : f32 to vector<2x3xf32>
    %312 = arith.mulf %310, %311 : vector<2x3xf32>
    %cst_127 = arith.constant 2.200000e+00 : f32
    %313 = vector.broadcast %cst_127 : f32 to vector<2x3xf32>
    %314 = arith.subf %313, %22 : vector<2x3xf32>
    %cst_128 = arith.constant 1.250000e+00 : f32
    %315 = vector.broadcast %cst_128 : f32 to vector<2x3xf32>
    %316 = arith.mulf %314, %315 : vector<2x3xf32>
    %317 = arith.mulf %312, %209 : vector<2x3xf32>
    %318 = arith.mulf %316, %220 : vector<2x3xf32>
    %319 = arith.addf %317, %318 : vector<2x3xf32>
    %cst_129 = arith.constant -2.200000e+00 : f32
    %320 = vector.broadcast %cst_129 : f32 to vector<2x3xf32>
    %321 = arith.subf %22, %320 : vector<2x3xf32>
    %cst_130 = arith.constant 0.833333313 : f32
    %322 = vector.broadcast %cst_130 : f32 to vector<2x3xf32>
    %323 = arith.mulf %321, %322 : vector<2x3xf32>
    %cst_131 = arith.constant -6.000000e-01 : f32
    %324 = vector.broadcast %cst_131 : f32 to vector<2x3xf32>
    %325 = arith.subf %324, %22 : vector<2x3xf32>
    %cst_132 = arith.constant 0.833333313 : f32
    %326 = vector.broadcast %cst_132 : f32 to vector<2x3xf32>
    %327 = arith.mulf %325, %326 : vector<2x3xf32>
    %328 = arith.mulf %323, %231 : vector<2x3xf32>
    %329 = arith.mulf %327, %242 : vector<2x3xf32>
    %330 = arith.addf %328, %329 : vector<2x3xf32>
    %cst_133 = arith.constant -1.800000e+00 : f32
    %331 = vector.broadcast %cst_133 : f32 to vector<2x3xf32>
    %332 = arith.subf %22, %331 : vector<2x3xf32>
    %cst_134 = arith.constant 0.833333313 : f32
    %333 = vector.broadcast %cst_134 : f32 to vector<2x3xf32>
    %334 = arith.mulf %332, %333 : vector<2x3xf32>
    %cst_135 = arith.constant -2.000000e-01 : f32
    %335 = vector.broadcast %cst_135 : f32 to vector<2x3xf32>
    %336 = arith.subf %335, %22 : vector<2x3xf32>
    %cst_136 = arith.constant 0.833333313 : f32
    %337 = vector.broadcast %cst_136 : f32 to vector<2x3xf32>
    %338 = arith.mulf %336, %337 : vector<2x3xf32>
    %339 = arith.mulf %334, %242 : vector<2x3xf32>
    %340 = arith.mulf %338, %253 : vector<2x3xf32>
    %341 = arith.addf %339, %340 : vector<2x3xf32>
    %cst_137 = arith.constant -1.400000e+00 : f32
    %342 = vector.broadcast %cst_137 : f32 to vector<2x3xf32>
    %343 = arith.subf %22, %342 : vector<2x3xf32>
    %cst_138 = arith.constant 0.833333313 : f32
    %344 = vector.broadcast %cst_138 : f32 to vector<2x3xf32>
    %345 = arith.mulf %343, %344 : vector<2x3xf32>
    %cst_139 = arith.constant 2.000000e-01 : f32
    %346 = vector.broadcast %cst_139 : f32 to vector<2x3xf32>
    %347 = arith.subf %346, %22 : vector<2x3xf32>
    %cst_140 = arith.constant 0.833333313 : f32
    %348 = vector.broadcast %cst_140 : f32 to vector<2x3xf32>
    %349 = arith.mulf %347, %348 : vector<2x3xf32>
    %350 = arith.mulf %345, %253 : vector<2x3xf32>
    %351 = arith.mulf %349, %264 : vector<2x3xf32>
    %352 = arith.addf %350, %351 : vector<2x3xf32>
    %cst_141 = arith.constant -1.000000e+00 : f32
    %353 = vector.broadcast %cst_141 : f32 to vector<2x3xf32>
    %354 = arith.subf %22, %353 : vector<2x3xf32>
    %cst_142 = arith.constant 0.833333313 : f32
    %355 = vector.broadcast %cst_142 : f32 to vector<2x3xf32>
    %356 = arith.mulf %354, %355 : vector<2x3xf32>
    %cst_143 = arith.constant 6.000000e-01 : f32
    %357 = vector.broadcast %cst_143 : f32 to vector<2x3xf32>
    %358 = arith.subf %357, %22 : vector<2x3xf32>
    %cst_144 = arith.constant 0.833333313 : f32
    %359 = vector.broadcast %cst_144 : f32 to vector<2x3xf32>
    %360 = arith.mulf %358, %359 : vector<2x3xf32>
    %361 = arith.mulf %356, %264 : vector<2x3xf32>
    %362 = arith.mulf %360, %275 : vector<2x3xf32>
    %363 = arith.addf %361, %362 : vector<2x3xf32>
    %cst_145 = arith.constant -6.000000e-01 : f32
    %364 = vector.broadcast %cst_145 : f32 to vector<2x3xf32>
    %365 = arith.subf %22, %364 : vector<2x3xf32>
    %cst_146 = arith.constant 0.833333313 : f32
    %366 = vector.broadcast %cst_146 : f32 to vector<2x3xf32>
    %367 = arith.mulf %365, %366 : vector<2x3xf32>
    %cst_147 = arith.constant 1.000000e+00 : f32
    %368 = vector.broadcast %cst_147 : f32 to vector<2x3xf32>
    %369 = arith.subf %368, %22 : vector<2x3xf32>
    %cst_148 = arith.constant 0.833333313 : f32
    %370 = vector.broadcast %cst_148 : f32 to vector<2x3xf32>
    %371 = arith.mulf %369, %370 : vector<2x3xf32>
    %372 = arith.mulf %367, %275 : vector<2x3xf32>
    %373 = arith.mulf %371, %286 : vector<2x3xf32>
    %374 = arith.addf %372, %373 : vector<2x3xf32>
    %cst_149 = arith.constant -2.000000e-01 : f32
    %375 = vector.broadcast %cst_149 : f32 to vector<2x3xf32>
    %376 = arith.subf %22, %375 : vector<2x3xf32>
    %cst_150 = arith.constant 0.833333313 : f32
    %377 = vector.broadcast %cst_150 : f32 to vector<2x3xf32>
    %378 = arith.mulf %376, %377 : vector<2x3xf32>
    %cst_151 = arith.constant 1.400000e+00 : f32
    %379 = vector.broadcast %cst_151 : f32 to vector<2x3xf32>
    %380 = arith.subf %379, %22 : vector<2x3xf32>
    %cst_152 = arith.constant 0.833333313 : f32
    %381 = vector.broadcast %cst_152 : f32 to vector<2x3xf32>
    %382 = arith.mulf %380, %381 : vector<2x3xf32>
    %383 = arith.mulf %378, %286 : vector<2x3xf32>
    %384 = arith.mulf %382, %297 : vector<2x3xf32>
    %385 = arith.addf %383, %384 : vector<2x3xf32>
    %cst_153 = arith.constant 2.000000e-01 : f32
    %386 = vector.broadcast %cst_153 : f32 to vector<2x3xf32>
    %387 = arith.subf %22, %386 : vector<2x3xf32>
    %cst_154 = arith.constant 0.833333313 : f32
    %388 = vector.broadcast %cst_154 : f32 to vector<2x3xf32>
    %389 = arith.mulf %387, %388 : vector<2x3xf32>
    %cst_155 = arith.constant 1.800000e+00 : f32
    %390 = vector.broadcast %cst_155 : f32 to vector<2x3xf32>
    %391 = arith.subf %390, %22 : vector<2x3xf32>
    %cst_156 = arith.constant 0.833333313 : f32
    %392 = vector.broadcast %cst_156 : f32 to vector<2x3xf32>
    %393 = arith.mulf %391, %392 : vector<2x3xf32>
    %394 = arith.mulf %389, %297 : vector<2x3xf32>
    %395 = arith.mulf %393, %308 : vector<2x3xf32>
    %396 = arith.addf %394, %395 : vector<2x3xf32>
    %cst_157 = arith.constant 6.000000e-01 : f32
    %397 = vector.broadcast %cst_157 : f32 to vector<2x3xf32>
    %398 = arith.subf %22, %397 : vector<2x3xf32>
    %cst_158 = arith.constant 0.833333313 : f32
    %399 = vector.broadcast %cst_158 : f32 to vector<2x3xf32>
    %400 = arith.mulf %398, %399 : vector<2x3xf32>
    %cst_159 = arith.constant 2.200000e+00 : f32
    %401 = vector.broadcast %cst_159 : f32 to vector<2x3xf32>
    %402 = arith.subf %401, %22 : vector<2x3xf32>
    %cst_160 = arith.constant 0.833333313 : f32
    %403 = vector.broadcast %cst_160 : f32 to vector<2x3xf32>
    %404 = arith.mulf %402, %403 : vector<2x3xf32>
    %405 = arith.mulf %400, %308 : vector<2x3xf32>
    %406 = arith.mulf %404, %319 : vector<2x3xf32>
    %407 = arith.addf %405, %406 : vector<2x3xf32>
    %408 = tpu.concatenate %330, %341, %352, %363, %374, %385, %396, %407 in 1 : vector<2x3xf32>, vector<2x3xf32>, vector<2x3xf32>, vector<2x3xf32>, vector<2x3xf32>, vector<2x3xf32>, vector<2x3xf32>, vector<2x3xf32> -> vector<2x24xf32>
    %409 = arith.negf %22 : vector<2x3xf32>
    %410 = math.exp %409 : vector<2x3xf32>
    %cst_161 = arith.constant 1.000000e+00 : f32
    %411 = vector.broadcast %cst_161 : f32 to vector<2x3xf32>
    %412 = arith.addf %411, %410 : vector<2x3xf32>
    %413 = arith.divf %411, %412 : vector<2x3xf32>
    %414 = arith.mulf %22, %413 : vector<2x3xf32>
    %c0_162 = arith.constant 0 : index
    %c0_163 = arith.constant 0 : index
    %415 = vector.load %arg4[%c0_162, %c0_163] : memref<3x64xf32, #tpu.memory_space<vmem>>, vector<3x64xf32>
    %cst_164 = arith.constant dense<0.000000e+00> : vector<2x64xf32>
    %416 = tpu.matmul %414, %415, %cst_164 {dimension_numbers = #tpu.dot_dimension_numbers<[1], [0], [0], [1], [0, 0, 1, 1], [], []>} : vector<2x3xf32>, vector<3x64xf32>, vector<2x64xf32> -> vector<2x64xf32>
    %c0_165 = arith.constant 0 : index
    %c0_166 = arith.constant 0 : index
    %417 = vector.load %arg5[%c0_165, %c0_166] : memref<24x64xf32, #tpu.memory_space<vmem>>, vector<24x64xf32>
    %cst_167 = arith.constant dense<0.000000e+00> : vector<2x64xf32>
    %418 = tpu.matmul %408, %417, %cst_167 {dimension_numbers = #tpu.dot_dimension_numbers<[1], [0], [0], [1], [0, 0, 1, 1], [], []>} : vector<2x24xf32>, vector<24x64xf32>, vector<2x64xf32> -> vector<2x64xf32>
    %419 = arith.addf %416, %418 : vector<2x64xf32>
    %cst_168 = arith.constant -2.200000e+00 : f32
    %420 = vector.broadcast %cst_168 : f32 to vector<2x64xf32>
    %421 = arith.cmpf oge, %419, %420 : vector<2x64xf32>
    %cst_169 = arith.constant -1.800000e+00 : f32
    %422 = vector.broadcast %cst_169 : f32 to vector<2x64xf32>
    %423 = arith.cmpf olt, %419, %422 : vector<2x64xf32>
    %424 = arith.andi %421, %423 : vector<2x64xi1>
    %cst_170 = arith.constant 1.000000e+00 : f32
    %cst_171 = arith.constant 0.000000e+00 : f32
    %425 = vector.broadcast %cst_170 : f32 to vector<2x64xf32>
    %426 = vector.broadcast %cst_171 : f32 to vector<2x64xf32>
    %427 = arith.select %424, %425, %426 : vector<2x64xi1>, vector<2x64xf32>
    %cst_172 = arith.constant -1.800000e+00 : f32
    %428 = vector.broadcast %cst_172 : f32 to vector<2x64xf32>
    %429 = arith.cmpf oge, %419, %428 : vector<2x64xf32>
    %cst_173 = arith.constant -1.400000e+00 : f32
    %430 = vector.broadcast %cst_173 : f32 to vector<2x64xf32>
    %431 = arith.cmpf olt, %419, %430 : vector<2x64xf32>
    %432 = arith.andi %429, %431 : vector<2x64xi1>
    %cst_174 = arith.constant 1.000000e+00 : f32
    %cst_175 = arith.constant 0.000000e+00 : f32
    %433 = vector.broadcast %cst_174 : f32 to vector<2x64xf32>
    %434 = vector.broadcast %cst_175 : f32 to vector<2x64xf32>
    %435 = arith.select %432, %433, %434 : vector<2x64xi1>, vector<2x64xf32>
    %cst_176 = arith.constant -1.400000e+00 : f32
    %436 = vector.broadcast %cst_176 : f32 to vector<2x64xf32>
    %437 = arith.cmpf oge, %419, %436 : vector<2x64xf32>
    %cst_177 = arith.constant -1.000000e+00 : f32
    %438 = vector.broadcast %cst_177 : f32 to vector<2x64xf32>
    %439 = arith.cmpf olt, %419, %438 : vector<2x64xf32>
    %440 = arith.andi %437, %439 : vector<2x64xi1>
    %cst_178 = arith.constant 1.000000e+00 : f32
    %cst_179 = arith.constant 0.000000e+00 : f32
    %441 = vector.broadcast %cst_178 : f32 to vector<2x64xf32>
    %442 = vector.broadcast %cst_179 : f32 to vector<2x64xf32>
    %443 = arith.select %440, %441, %442 : vector<2x64xi1>, vector<2x64xf32>
    %cst_180 = arith.constant -1.000000e+00 : f32
    %444 = vector.broadcast %cst_180 : f32 to vector<2x64xf32>
    %445 = arith.cmpf oge, %419, %444 : vector<2x64xf32>
    %cst_181 = arith.constant -6.000000e-01 : f32
    %446 = vector.broadcast %cst_181 : f32 to vector<2x64xf32>
    %447 = arith.cmpf olt, %419, %446 : vector<2x64xf32>
    %448 = arith.andi %445, %447 : vector<2x64xi1>
    %cst_182 = arith.constant 1.000000e+00 : f32
    %cst_183 = arith.constant 0.000000e+00 : f32
    %449 = vector.broadcast %cst_182 : f32 to vector<2x64xf32>
    %450 = vector.broadcast %cst_183 : f32 to vector<2x64xf32>
    %451 = arith.select %448, %449, %450 : vector<2x64xi1>, vector<2x64xf32>
    %cst_184 = arith.constant -6.000000e-01 : f32
    %452 = vector.broadcast %cst_184 : f32 to vector<2x64xf32>
    %453 = arith.cmpf oge, %419, %452 : vector<2x64xf32>
    %cst_185 = arith.constant -2.000000e-01 : f32
    %454 = vector.broadcast %cst_185 : f32 to vector<2x64xf32>
    %455 = arith.cmpf olt, %419, %454 : vector<2x64xf32>
    %456 = arith.andi %453, %455 : vector<2x64xi1>
    %cst_186 = arith.constant 1.000000e+00 : f32
    %cst_187 = arith.constant 0.000000e+00 : f32
    %457 = vector.broadcast %cst_186 : f32 to vector<2x64xf32>
    %458 = vector.broadcast %cst_187 : f32 to vector<2x64xf32>
    %459 = arith.select %456, %457, %458 : vector<2x64xi1>, vector<2x64xf32>
    %cst_188 = arith.constant -2.000000e-01 : f32
    %460 = vector.broadcast %cst_188 : f32 to vector<2x64xf32>
    %461 = arith.cmpf oge, %419, %460 : vector<2x64xf32>
    %cst_189 = arith.constant 2.000000e-01 : f32
    %462 = vector.broadcast %cst_189 : f32 to vector<2x64xf32>
    %463 = arith.cmpf olt, %419, %462 : vector<2x64xf32>
    %464 = arith.andi %461, %463 : vector<2x64xi1>
    %cst_190 = arith.constant 1.000000e+00 : f32
    %cst_191 = arith.constant 0.000000e+00 : f32
    %465 = vector.broadcast %cst_190 : f32 to vector<2x64xf32>
    %466 = vector.broadcast %cst_191 : f32 to vector<2x64xf32>
    %467 = arith.select %464, %465, %466 : vector<2x64xi1>, vector<2x64xf32>
    %cst_192 = arith.constant 2.000000e-01 : f32
    %468 = vector.broadcast %cst_192 : f32 to vector<2x64xf32>
    %469 = arith.cmpf oge, %419, %468 : vector<2x64xf32>
    %cst_193 = arith.constant 6.000000e-01 : f32
    %470 = vector.broadcast %cst_193 : f32 to vector<2x64xf32>
    %471 = arith.cmpf olt, %419, %470 : vector<2x64xf32>
    %472 = arith.andi %469, %471 : vector<2x64xi1>
    %cst_194 = arith.constant 1.000000e+00 : f32
    %cst_195 = arith.constant 0.000000e+00 : f32
    %473 = vector.broadcast %cst_194 : f32 to vector<2x64xf32>
    %474 = vector.broadcast %cst_195 : f32 to vector<2x64xf32>
    %475 = arith.select %472, %473, %474 : vector<2x64xi1>, vector<2x64xf32>
    %cst_196 = arith.constant 6.000000e-01 : f32
    %476 = vector.broadcast %cst_196 : f32 to vector<2x64xf32>
    %477 = arith.cmpf oge, %419, %476 : vector<2x64xf32>
    %cst_197 = arith.constant 1.000000e+00 : f32
    %478 = vector.broadcast %cst_197 : f32 to vector<2x64xf32>
    %479 = arith.cmpf olt, %419, %478 : vector<2x64xf32>
    %480 = arith.andi %477, %479 : vector<2x64xi1>
    %cst_198 = arith.constant 1.000000e+00 : f32
    %cst_199 = arith.constant 0.000000e+00 : f32
    %481 = vector.broadcast %cst_198 : f32 to vector<2x64xf32>
    %482 = vector.broadcast %cst_199 : f32 to vector<2x64xf32>
    %483 = arith.select %480, %481, %482 : vector<2x64xi1>, vector<2x64xf32>
    %cst_200 = arith.constant 1.000000e+00 : f32
    %484 = vector.broadcast %cst_200 : f32 to vector<2x64xf32>
    %485 = arith.cmpf oge, %419, %484 : vector<2x64xf32>
    %cst_201 = arith.constant 1.400000e+00 : f32
    %486 = vector.broadcast %cst_201 : f32 to vector<2x64xf32>
    %487 = arith.cmpf olt, %419, %486 : vector<2x64xf32>
    %488 = arith.andi %485, %487 : vector<2x64xi1>
    %cst_202 = arith.constant 1.000000e+00 : f32
    %cst_203 = arith.constant 0.000000e+00 : f32
    %489 = vector.broadcast %cst_202 : f32 to vector<2x64xf32>
    %490 = vector.broadcast %cst_203 : f32 to vector<2x64xf32>
    %491 = arith.select %488, %489, %490 : vector<2x64xi1>, vector<2x64xf32>
    %cst_204 = arith.constant 1.400000e+00 : f32
    %492 = vector.broadcast %cst_204 : f32 to vector<2x64xf32>
    %493 = arith.cmpf oge, %419, %492 : vector<2x64xf32>
    %cst_205 = arith.constant 1.800000e+00 : f32
    %494 = vector.broadcast %cst_205 : f32 to vector<2x64xf32>
    %495 = arith.cmpf olt, %419, %494 : vector<2x64xf32>
    %496 = arith.andi %493, %495 : vector<2x64xi1>
    %cst_206 = arith.constant 1.000000e+00 : f32
    %cst_207 = arith.constant 0.000000e+00 : f32
    %497 = vector.broadcast %cst_206 : f32 to vector<2x64xf32>
    %498 = vector.broadcast %cst_207 : f32 to vector<2x64xf32>
    %499 = arith.select %496, %497, %498 : vector<2x64xi1>, vector<2x64xf32>
    %cst_208 = arith.constant 1.800000e+00 : f32
    %500 = vector.broadcast %cst_208 : f32 to vector<2x64xf32>
    %501 = arith.cmpf oge, %419, %500 : vector<2x64xf32>
    %cst_209 = arith.constant 2.200000e+00 : f32
    %502 = vector.broadcast %cst_209 : f32 to vector<2x64xf32>
    %503 = arith.cmpf olt, %419, %502 : vector<2x64xf32>
    %504 = arith.andi %501, %503 : vector<2x64xi1>
    %cst_210 = arith.constant 1.000000e+00 : f32
    %cst_211 = arith.constant 0.000000e+00 : f32
    %505 = vector.broadcast %cst_210 : f32 to vector<2x64xf32>
    %506 = vector.broadcast %cst_211 : f32 to vector<2x64xf32>
    %507 = arith.select %504, %505, %506 : vector<2x64xi1>, vector<2x64xf32>
    %cst_212 = arith.constant -2.200000e+00 : f32
    %508 = vector.broadcast %cst_212 : f32 to vector<2x64xf32>
    %509 = arith.subf %419, %508 : vector<2x64xf32>
    %cst_213 = arith.constant 2.500000e+00 : f32
    %510 = vector.broadcast %cst_213 : f32 to vector<2x64xf32>
    %511 = arith.mulf %509, %510 : vector<2x64xf32>
    %cst_214 = arith.constant -1.400000e+00 : f32
    %512 = vector.broadcast %cst_214 : f32 to vector<2x64xf32>
    %513 = arith.subf %512, %419 : vector<2x64xf32>
    %cst_215 = arith.constant 2.500000e+00 : f32
    %514 = vector.broadcast %cst_215 : f32 to vector<2x64xf32>
    %515 = arith.mulf %513, %514 : vector<2x64xf32>
    %516 = arith.mulf %511, %427 : vector<2x64xf32>
    %517 = arith.mulf %515, %435 : vector<2x64xf32>
    %518 = arith.addf %516, %517 : vector<2x64xf32>
    %cst_216 = arith.constant -1.800000e+00 : f32
    %519 = vector.broadcast %cst_216 : f32 to vector<2x64xf32>
    %520 = arith.subf %419, %519 : vector<2x64xf32>
    %cst_217 = arith.constant 2.500000e+00 : f32
    %521 = vector.broadcast %cst_217 : f32 to vector<2x64xf32>
    %522 = arith.mulf %520, %521 : vector<2x64xf32>
    %cst_218 = arith.constant -1.000000e+00 : f32
    %523 = vector.broadcast %cst_218 : f32 to vector<2x64xf32>
    %524 = arith.subf %523, %419 : vector<2x64xf32>
    %cst_219 = arith.constant 2.500000e+00 : f32
    %525 = vector.broadcast %cst_219 : f32 to vector<2x64xf32>
    %526 = arith.mulf %524, %525 : vector<2x64xf32>
    %527 = arith.mulf %522, %435 : vector<2x64xf32>
    %528 = arith.mulf %526, %443 : vector<2x64xf32>
    %529 = arith.addf %527, %528 : vector<2x64xf32>
    %cst_220 = arith.constant -1.400000e+00 : f32
    %530 = vector.broadcast %cst_220 : f32 to vector<2x64xf32>
    %531 = arith.subf %419, %530 : vector<2x64xf32>
    %cst_221 = arith.constant 2.500000e+00 : f32
    %532 = vector.broadcast %cst_221 : f32 to vector<2x64xf32>
    %533 = arith.mulf %531, %532 : vector<2x64xf32>
    %cst_222 = arith.constant -6.000000e-01 : f32
    %534 = vector.broadcast %cst_222 : f32 to vector<2x64xf32>
    %535 = arith.subf %534, %419 : vector<2x64xf32>
    %cst_223 = arith.constant 2.500000e+00 : f32
    %536 = vector.broadcast %cst_223 : f32 to vector<2x64xf32>
    %537 = arith.mulf %535, %536 : vector<2x64xf32>
    %538 = arith.mulf %533, %443 : vector<2x64xf32>
    %539 = arith.mulf %537, %451 : vector<2x64xf32>
    %540 = arith.addf %538, %539 : vector<2x64xf32>
    %cst_224 = arith.constant -1.000000e+00 : f32
    %541 = vector.broadcast %cst_224 : f32 to vector<2x64xf32>
    %542 = arith.subf %419, %541 : vector<2x64xf32>
    %cst_225 = arith.constant 2.500000e+00 : f32
    %543 = vector.broadcast %cst_225 : f32 to vector<2x64xf32>
    %544 = arith.mulf %542, %543 : vector<2x64xf32>
    %cst_226 = arith.constant -2.000000e-01 : f32
    %545 = vector.broadcast %cst_226 : f32 to vector<2x64xf32>
    %546 = arith.subf %545, %419 : vector<2x64xf32>
    %cst_227 = arith.constant 2.500000e+00 : f32
    %547 = vector.broadcast %cst_227 : f32 to vector<2x64xf32>
    %548 = arith.mulf %546, %547 : vector<2x64xf32>
    %549 = arith.mulf %544, %451 : vector<2x64xf32>
    %550 = arith.mulf %548, %459 : vector<2x64xf32>
    %551 = arith.addf %549, %550 : vector<2x64xf32>
    %cst_228 = arith.constant -6.000000e-01 : f32
    %552 = vector.broadcast %cst_228 : f32 to vector<2x64xf32>
    %553 = arith.subf %419, %552 : vector<2x64xf32>
    %cst_229 = arith.constant 2.500000e+00 : f32
    %554 = vector.broadcast %cst_229 : f32 to vector<2x64xf32>
    %555 = arith.mulf %553, %554 : vector<2x64xf32>
    %cst_230 = arith.constant 2.000000e-01 : f32
    %556 = vector.broadcast %cst_230 : f32 to vector<2x64xf32>
    %557 = arith.subf %556, %419 : vector<2x64xf32>
    %cst_231 = arith.constant 2.500000e+00 : f32
    %558 = vector.broadcast %cst_231 : f32 to vector<2x64xf32>
    %559 = arith.mulf %557, %558 : vector<2x64xf32>
    %560 = arith.mulf %555, %459 : vector<2x64xf32>
    %561 = arith.mulf %559, %467 : vector<2x64xf32>
    %562 = arith.addf %560, %561 : vector<2x64xf32>
    %cst_232 = arith.constant -2.000000e-01 : f32
    %563 = vector.broadcast %cst_232 : f32 to vector<2x64xf32>
    %564 = arith.subf %419, %563 : vector<2x64xf32>
    %cst_233 = arith.constant 2.500000e+00 : f32
    %565 = vector.broadcast %cst_233 : f32 to vector<2x64xf32>
    %566 = arith.mulf %564, %565 : vector<2x64xf32>
    %cst_234 = arith.constant 6.000000e-01 : f32
    %567 = vector.broadcast %cst_234 : f32 to vector<2x64xf32>
    %568 = arith.subf %567, %419 : vector<2x64xf32>
    %cst_235 = arith.constant 2.500000e+00 : f32
    %569 = vector.broadcast %cst_235 : f32 to vector<2x64xf32>
    %570 = arith.mulf %568, %569 : vector<2x64xf32>
    %571 = arith.mulf %566, %467 : vector<2x64xf32>
    %572 = arith.mulf %570, %475 : vector<2x64xf32>
    %573 = arith.addf %571, %572 : vector<2x64xf32>
    %cst_236 = arith.constant 2.000000e-01 : f32
    %574 = vector.broadcast %cst_236 : f32 to vector<2x64xf32>
    %575 = arith.subf %419, %574 : vector<2x64xf32>
    %cst_237 = arith.constant 2.500000e+00 : f32
    %576 = vector.broadcast %cst_237 : f32 to vector<2x64xf32>
    %577 = arith.mulf %575, %576 : vector<2x64xf32>
    %cst_238 = arith.constant 1.000000e+00 : f32
    %578 = vector.broadcast %cst_238 : f32 to vector<2x64xf32>
    %579 = arith.subf %578, %419 : vector<2x64xf32>
    %cst_239 = arith.constant 2.500000e+00 : f32
    %580 = vector.broadcast %cst_239 : f32 to vector<2x64xf32>
    %581 = arith.mulf %579, %580 : vector<2x64xf32>
    %582 = arith.mulf %577, %475 : vector<2x64xf32>
    %583 = arith.mulf %581, %483 : vector<2x64xf32>
    %584 = arith.addf %582, %583 : vector<2x64xf32>
    %cst_240 = arith.constant 6.000000e-01 : f32
    %585 = vector.broadcast %cst_240 : f32 to vector<2x64xf32>
    %586 = arith.subf %419, %585 : vector<2x64xf32>
    %cst_241 = arith.constant 2.500000e+00 : f32
    %587 = vector.broadcast %cst_241 : f32 to vector<2x64xf32>
    %588 = arith.mulf %586, %587 : vector<2x64xf32>
    %cst_242 = arith.constant 1.400000e+00 : f32
    %589 = vector.broadcast %cst_242 : f32 to vector<2x64xf32>
    %590 = arith.subf %589, %419 : vector<2x64xf32>
    %cst_243 = arith.constant 2.500000e+00 : f32
    %591 = vector.broadcast %cst_243 : f32 to vector<2x64xf32>
    %592 = arith.mulf %590, %591 : vector<2x64xf32>
    %593 = arith.mulf %588, %483 : vector<2x64xf32>
    %594 = arith.mulf %592, %491 : vector<2x64xf32>
    %595 = arith.addf %593, %594 : vector<2x64xf32>
    %cst_244 = arith.constant 1.000000e+00 : f32
    %596 = vector.broadcast %cst_244 : f32 to vector<2x64xf32>
    %597 = arith.subf %419, %596 : vector<2x64xf32>
    %cst_245 = arith.constant 2.500000e+00 : f32
    %598 = vector.broadcast %cst_245 : f32 to vector<2x64xf32>
    %599 = arith.mulf %597, %598 : vector<2x64xf32>
    %cst_246 = arith.constant 1.800000e+00 : f32
    %600 = vector.broadcast %cst_246 : f32 to vector<2x64xf32>
    %601 = arith.subf %600, %419 : vector<2x64xf32>
    %cst_247 = arith.constant 2.500000e+00 : f32
    %602 = vector.broadcast %cst_247 : f32 to vector<2x64xf32>
    %603 = arith.mulf %601, %602 : vector<2x64xf32>
    %604 = arith.mulf %599, %491 : vector<2x64xf32>
    %605 = arith.mulf %603, %499 : vector<2x64xf32>
    %606 = arith.addf %604, %605 : vector<2x64xf32>
    %cst_248 = arith.constant 1.400000e+00 : f32
    %607 = vector.broadcast %cst_248 : f32 to vector<2x64xf32>
    %608 = arith.subf %419, %607 : vector<2x64xf32>
    %cst_249 = arith.constant 2.500000e+00 : f32
    %609 = vector.broadcast %cst_249 : f32 to vector<2x64xf32>
    %610 = arith.mulf %608, %609 : vector<2x64xf32>
    %cst_250 = arith.constant 2.200000e+00 : f32
    %611 = vector.broadcast %cst_250 : f32 to vector<2x64xf32>
    %612 = arith.subf %611, %419 : vector<2x64xf32>
    %cst_251 = arith.constant 2.500000e+00 : f32
    %613 = vector.broadcast %cst_251 : f32 to vector<2x64xf32>
    %614 = arith.mulf %612, %613 : vector<2x64xf32>
    %615 = arith.mulf %610, %499 : vector<2x64xf32>
    %616 = arith.mulf %614, %507 : vector<2x64xf32>
    %617 = arith.addf %615, %616 : vector<2x64xf32>
    %cst_252 = arith.constant -2.200000e+00 : f32
    %618 = vector.broadcast %cst_252 : f32 to vector<2x64xf32>
    %619 = arith.subf %419, %618 : vector<2x64xf32>
    %cst_253 = arith.constant 1.250000e+00 : f32
    %620 = vector.broadcast %cst_253 : f32 to vector<2x64xf32>
    %621 = arith.mulf %619, %620 : vector<2x64xf32>
    %cst_254 = arith.constant -1.000000e+00 : f32
    %622 = vector.broadcast %cst_254 : f32 to vector<2x64xf32>
    %623 = arith.subf %622, %419 : vector<2x64xf32>
    %cst_255 = arith.constant 1.250000e+00 : f32
    %624 = vector.broadcast %cst_255 : f32 to vector<2x64xf32>
    %625 = arith.mulf %623, %624 : vector<2x64xf32>
    %626 = arith.mulf %621, %518 : vector<2x64xf32>
    %627 = arith.mulf %625, %529 : vector<2x64xf32>
    %628 = arith.addf %626, %627 : vector<2x64xf32>
    %cst_256 = arith.constant -1.800000e+00 : f32
    %629 = vector.broadcast %cst_256 : f32 to vector<2x64xf32>
    %630 = arith.subf %419, %629 : vector<2x64xf32>
    %cst_257 = arith.constant 1.250000e+00 : f32
    %631 = vector.broadcast %cst_257 : f32 to vector<2x64xf32>
    %632 = arith.mulf %630, %631 : vector<2x64xf32>
    %cst_258 = arith.constant -6.000000e-01 : f32
    %633 = vector.broadcast %cst_258 : f32 to vector<2x64xf32>
    %634 = arith.subf %633, %419 : vector<2x64xf32>
    %cst_259 = arith.constant 1.250000e+00 : f32
    %635 = vector.broadcast %cst_259 : f32 to vector<2x64xf32>
    %636 = arith.mulf %634, %635 : vector<2x64xf32>
    %637 = arith.mulf %632, %529 : vector<2x64xf32>
    %638 = arith.mulf %636, %540 : vector<2x64xf32>
    %639 = arith.addf %637, %638 : vector<2x64xf32>
    %cst_260 = arith.constant -1.400000e+00 : f32
    %640 = vector.broadcast %cst_260 : f32 to vector<2x64xf32>
    %641 = arith.subf %419, %640 : vector<2x64xf32>
    %cst_261 = arith.constant 1.250000e+00 : f32
    %642 = vector.broadcast %cst_261 : f32 to vector<2x64xf32>
    %643 = arith.mulf %641, %642 : vector<2x64xf32>
    %cst_262 = arith.constant -2.000000e-01 : f32
    %644 = vector.broadcast %cst_262 : f32 to vector<2x64xf32>
    %645 = arith.subf %644, %419 : vector<2x64xf32>
    %cst_263 = arith.constant 1.250000e+00 : f32
    %646 = vector.broadcast %cst_263 : f32 to vector<2x64xf32>
    %647 = arith.mulf %645, %646 : vector<2x64xf32>
    %648 = arith.mulf %643, %540 : vector<2x64xf32>
    %649 = arith.mulf %647, %551 : vector<2x64xf32>
    %650 = arith.addf %648, %649 : vector<2x64xf32>
    %cst_264 = arith.constant -1.000000e+00 : f32
    %651 = vector.broadcast %cst_264 : f32 to vector<2x64xf32>
    %652 = arith.subf %419, %651 : vector<2x64xf32>
    %cst_265 = arith.constant 1.250000e+00 : f32
    %653 = vector.broadcast %cst_265 : f32 to vector<2x64xf32>
    %654 = arith.mulf %652, %653 : vector<2x64xf32>
    %cst_266 = arith.constant 2.000000e-01 : f32
    %655 = vector.broadcast %cst_266 : f32 to vector<2x64xf32>
    %656 = arith.subf %655, %419 : vector<2x64xf32>
    %cst_267 = arith.constant 1.250000e+00 : f32
    %657 = vector.broadcast %cst_267 : f32 to vector<2x64xf32>
    %658 = arith.mulf %656, %657 : vector<2x64xf32>
    %659 = arith.mulf %654, %551 : vector<2x64xf32>
    %660 = arith.mulf %658, %562 : vector<2x64xf32>
    %661 = arith.addf %659, %660 : vector<2x64xf32>
    %cst_268 = arith.constant -6.000000e-01 : f32
    %662 = vector.broadcast %cst_268 : f32 to vector<2x64xf32>
    %663 = arith.subf %419, %662 : vector<2x64xf32>
    %cst_269 = arith.constant 1.250000e+00 : f32
    %664 = vector.broadcast %cst_269 : f32 to vector<2x64xf32>
    %665 = arith.mulf %663, %664 : vector<2x64xf32>
    %cst_270 = arith.constant 6.000000e-01 : f32
    %666 = vector.broadcast %cst_270 : f32 to vector<2x64xf32>
    %667 = arith.subf %666, %419 : vector<2x64xf32>
    %cst_271 = arith.constant 1.250000e+00 : f32
    %668 = vector.broadcast %cst_271 : f32 to vector<2x64xf32>
    %669 = arith.mulf %667, %668 : vector<2x64xf32>
    %670 = arith.mulf %665, %562 : vector<2x64xf32>
    %671 = arith.mulf %669, %573 : vector<2x64xf32>
    %672 = arith.addf %670, %671 : vector<2x64xf32>
    %cst_272 = arith.constant -2.000000e-01 : f32
    %673 = vector.broadcast %cst_272 : f32 to vector<2x64xf32>
    %674 = arith.subf %419, %673 : vector<2x64xf32>
    %cst_273 = arith.constant 1.250000e+00 : f32
    %675 = vector.broadcast %cst_273 : f32 to vector<2x64xf32>
    %676 = arith.mulf %674, %675 : vector<2x64xf32>
    %cst_274 = arith.constant 1.000000e+00 : f32
    %677 = vector.broadcast %cst_274 : f32 to vector<2x64xf32>
    %678 = arith.subf %677, %419 : vector<2x64xf32>
    %cst_275 = arith.constant 1.250000e+00 : f32
    %679 = vector.broadcast %cst_275 : f32 to vector<2x64xf32>
    %680 = arith.mulf %678, %679 : vector<2x64xf32>
    %681 = arith.mulf %676, %573 : vector<2x64xf32>
    %682 = arith.mulf %680, %584 : vector<2x64xf32>
    %683 = arith.addf %681, %682 : vector<2x64xf32>
    %cst_276 = arith.constant 2.000000e-01 : f32
    %684 = vector.broadcast %cst_276 : f32 to vector<2x64xf32>
    %685 = arith.subf %419, %684 : vector<2x64xf32>
    %cst_277 = arith.constant 1.250000e+00 : f32
    %686 = vector.broadcast %cst_277 : f32 to vector<2x64xf32>
    %687 = arith.mulf %685, %686 : vector<2x64xf32>
    %cst_278 = arith.constant 1.400000e+00 : f32
    %688 = vector.broadcast %cst_278 : f32 to vector<2x64xf32>
    %689 = arith.subf %688, %419 : vector<2x64xf32>
    %cst_279 = arith.constant 1.250000e+00 : f32
    %690 = vector.broadcast %cst_279 : f32 to vector<2x64xf32>
    %691 = arith.mulf %689, %690 : vector<2x64xf32>
    %692 = arith.mulf %687, %584 : vector<2x64xf32>
    %693 = arith.mulf %691, %595 : vector<2x64xf32>
    %694 = arith.addf %692, %693 : vector<2x64xf32>
    %cst_280 = arith.constant 6.000000e-01 : f32
    %695 = vector.broadcast %cst_280 : f32 to vector<2x64xf32>
    %696 = arith.subf %419, %695 : vector<2x64xf32>
    %cst_281 = arith.constant 1.250000e+00 : f32
    %697 = vector.broadcast %cst_281 : f32 to vector<2x64xf32>
    %698 = arith.mulf %696, %697 : vector<2x64xf32>
    %cst_282 = arith.constant 1.800000e+00 : f32
    %699 = vector.broadcast %cst_282 : f32 to vector<2x64xf32>
    %700 = arith.subf %699, %419 : vector<2x64xf32>
    %cst_283 = arith.constant 1.250000e+00 : f32
    %701 = vector.broadcast %cst_283 : f32 to vector<2x64xf32>
    %702 = arith.mulf %700, %701 : vector<2x64xf32>
    %703 = arith.mulf %698, %595 : vector<2x64xf32>
    %704 = arith.mulf %702, %606 : vector<2x64xf32>
    %705 = arith.addf %703, %704 : vector<2x64xf32>
    %cst_284 = arith.constant 1.000000e+00 : f32
    %706 = vector.broadcast %cst_284 : f32 to vector<2x64xf32>
    %707 = arith.subf %419, %706 : vector<2x64xf32>
    %cst_285 = arith.constant 1.250000e+00 : f32
    %708 = vector.broadcast %cst_285 : f32 to vector<2x64xf32>
    %709 = arith.mulf %707, %708 : vector<2x64xf32>
    %cst_286 = arith.constant 2.200000e+00 : f32
    %710 = vector.broadcast %cst_286 : f32 to vector<2x64xf32>
    %711 = arith.subf %710, %419 : vector<2x64xf32>
    %cst_287 = arith.constant 1.250000e+00 : f32
    %712 = vector.broadcast %cst_287 : f32 to vector<2x64xf32>
    %713 = arith.mulf %711, %712 : vector<2x64xf32>
    %714 = arith.mulf %709, %606 : vector<2x64xf32>
    %715 = arith.mulf %713, %617 : vector<2x64xf32>
    %716 = arith.addf %714, %715 : vector<2x64xf32>
    %cst_288 = arith.constant -2.200000e+00 : f32
    %717 = vector.broadcast %cst_288 : f32 to vector<2x64xf32>
    %718 = arith.subf %419, %717 : vector<2x64xf32>
    %cst_289 = arith.constant 0.833333313 : f32
    %719 = vector.broadcast %cst_289 : f32 to vector<2x64xf32>
    %720 = arith.mulf %718, %719 : vector<2x64xf32>
    %cst_290 = arith.constant -6.000000e-01 : f32
    %721 = vector.broadcast %cst_290 : f32 to vector<2x64xf32>
    %722 = arith.subf %721, %419 : vector<2x64xf32>
    %cst_291 = arith.constant 0.833333313 : f32
    %723 = vector.broadcast %cst_291 : f32 to vector<2x64xf32>
    %724 = arith.mulf %722, %723 : vector<2x64xf32>
    %725 = arith.mulf %720, %628 : vector<2x64xf32>
    %726 = arith.mulf %724, %639 : vector<2x64xf32>
    %727 = arith.addf %725, %726 : vector<2x64xf32>
    %cst_292 = arith.constant -1.800000e+00 : f32
    %728 = vector.broadcast %cst_292 : f32 to vector<2x64xf32>
    %729 = arith.subf %419, %728 : vector<2x64xf32>
    %cst_293 = arith.constant 0.833333313 : f32
    %730 = vector.broadcast %cst_293 : f32 to vector<2x64xf32>
    %731 = arith.mulf %729, %730 : vector<2x64xf32>
    %cst_294 = arith.constant -2.000000e-01 : f32
    %732 = vector.broadcast %cst_294 : f32 to vector<2x64xf32>
    %733 = arith.subf %732, %419 : vector<2x64xf32>
    %cst_295 = arith.constant 0.833333313 : f32
    %734 = vector.broadcast %cst_295 : f32 to vector<2x64xf32>
    %735 = arith.mulf %733, %734 : vector<2x64xf32>
    %736 = arith.mulf %731, %639 : vector<2x64xf32>
    %737 = arith.mulf %735, %650 : vector<2x64xf32>
    %738 = arith.addf %736, %737 : vector<2x64xf32>
    %cst_296 = arith.constant -1.400000e+00 : f32
    %739 = vector.broadcast %cst_296 : f32 to vector<2x64xf32>
    %740 = arith.subf %419, %739 : vector<2x64xf32>
    %cst_297 = arith.constant 0.833333313 : f32
    %741 = vector.broadcast %cst_297 : f32 to vector<2x64xf32>
    %742 = arith.mulf %740, %741 : vector<2x64xf32>
    %cst_298 = arith.constant 2.000000e-01 : f32
    %743 = vector.broadcast %cst_298 : f32 to vector<2x64xf32>
    %744 = arith.subf %743, %419 : vector<2x64xf32>
    %cst_299 = arith.constant 0.833333313 : f32
    %745 = vector.broadcast %cst_299 : f32 to vector<2x64xf32>
    %746 = arith.mulf %744, %745 : vector<2x64xf32>
    %747 = arith.mulf %742, %650 : vector<2x64xf32>
    %748 = arith.mulf %746, %661 : vector<2x64xf32>
    %749 = arith.addf %747, %748 : vector<2x64xf32>
    %cst_300 = arith.constant -1.000000e+00 : f32
    %750 = vector.broadcast %cst_300 : f32 to vector<2x64xf32>
    %751 = arith.subf %419, %750 : vector<2x64xf32>
    %cst_301 = arith.constant 0.833333313 : f32
    %752 = vector.broadcast %cst_301 : f32 to vector<2x64xf32>
    %753 = arith.mulf %751, %752 : vector<2x64xf32>
    %cst_302 = arith.constant 6.000000e-01 : f32
    %754 = vector.broadcast %cst_302 : f32 to vector<2x64xf32>
    %755 = arith.subf %754, %419 : vector<2x64xf32>
    %cst_303 = arith.constant 0.833333313 : f32
    %756 = vector.broadcast %cst_303 : f32 to vector<2x64xf32>
    %757 = arith.mulf %755, %756 : vector<2x64xf32>
    %758 = arith.mulf %753, %661 : vector<2x64xf32>
    %759 = arith.mulf %757, %672 : vector<2x64xf32>
    %760 = arith.addf %758, %759 : vector<2x64xf32>
    %cst_304 = arith.constant -6.000000e-01 : f32
    %761 = vector.broadcast %cst_304 : f32 to vector<2x64xf32>
    %762 = arith.subf %419, %761 : vector<2x64xf32>
    %cst_305 = arith.constant 0.833333313 : f32
    %763 = vector.broadcast %cst_305 : f32 to vector<2x64xf32>
    %764 = arith.mulf %762, %763 : vector<2x64xf32>
    %cst_306 = arith.constant 1.000000e+00 : f32
    %765 = vector.broadcast %cst_306 : f32 to vector<2x64xf32>
    %766 = arith.subf %765, %419 : vector<2x64xf32>
    %cst_307 = arith.constant 0.833333313 : f32
    %767 = vector.broadcast %cst_307 : f32 to vector<2x64xf32>
    %768 = arith.mulf %766, %767 : vector<2x64xf32>
    %769 = arith.mulf %764, %672 : vector<2x64xf32>
    %770 = arith.mulf %768, %683 : vector<2x64xf32>
    %771 = arith.addf %769, %770 : vector<2x64xf32>
    %cst_308 = arith.constant -2.000000e-01 : f32
    %772 = vector.broadcast %cst_308 : f32 to vector<2x64xf32>
    %773 = arith.subf %419, %772 : vector<2x64xf32>
    %cst_309 = arith.constant 0.833333313 : f32
    %774 = vector.broadcast %cst_309 : f32 to vector<2x64xf32>
    %775 = arith.mulf %773, %774 : vector<2x64xf32>
    %cst_310 = arith.constant 1.400000e+00 : f32
    %776 = vector.broadcast %cst_310 : f32 to vector<2x64xf32>
    %777 = arith.subf %776, %419 : vector<2x64xf32>
    %cst_311 = arith.constant 0.833333313 : f32
    %778 = vector.broadcast %cst_311 : f32 to vector<2x64xf32>
    %779 = arith.mulf %777, %778 : vector<2x64xf32>
    %780 = arith.mulf %775, %683 : vector<2x64xf32>
    %781 = arith.mulf %779, %694 : vector<2x64xf32>
    %782 = arith.addf %780, %781 : vector<2x64xf32>
    %cst_312 = arith.constant 2.000000e-01 : f32
    %783 = vector.broadcast %cst_312 : f32 to vector<2x64xf32>
    %784 = arith.subf %419, %783 : vector<2x64xf32>
    %cst_313 = arith.constant 0.833333313 : f32
    %785 = vector.broadcast %cst_313 : f32 to vector<2x64xf32>
    %786 = arith.mulf %784, %785 : vector<2x64xf32>
    %cst_314 = arith.constant 1.800000e+00 : f32
    %787 = vector.broadcast %cst_314 : f32 to vector<2x64xf32>
    %788 = arith.subf %787, %419 : vector<2x64xf32>
    %cst_315 = arith.constant 0.833333313 : f32
    %789 = vector.broadcast %cst_315 : f32 to vector<2x64xf32>
    %790 = arith.mulf %788, %789 : vector<2x64xf32>
    %791 = arith.mulf %786, %694 : vector<2x64xf32>
    %792 = arith.mulf %790, %705 : vector<2x64xf32>
    %793 = arith.addf %791, %792 : vector<2x64xf32>
    %cst_316 = arith.constant 6.000000e-01 : f32
    %794 = vector.broadcast %cst_316 : f32 to vector<2x64xf32>
    %795 = arith.subf %419, %794 : vector<2x64xf32>
    %cst_317 = arith.constant 0.833333313 : f32
    %796 = vector.broadcast %cst_317 : f32 to vector<2x64xf32>
    %797 = arith.mulf %795, %796 : vector<2x64xf32>
    %cst_318 = arith.constant 2.200000e+00 : f32
    %798 = vector.broadcast %cst_318 : f32 to vector<2x64xf32>
    %799 = arith.subf %798, %419 : vector<2x64xf32>
    %cst_319 = arith.constant 0.833333313 : f32
    %800 = vector.broadcast %cst_319 : f32 to vector<2x64xf32>
    %801 = arith.mulf %799, %800 : vector<2x64xf32>
    %802 = arith.mulf %797, %705 : vector<2x64xf32>
    %803 = arith.mulf %801, %716 : vector<2x64xf32>
    %804 = arith.addf %802, %803 : vector<2x64xf32>
    %805 = tpu.concatenate %727, %738, %749, %760, %771, %782, %793, %804 in 1 : vector<2x64xf32>, vector<2x64xf32>, vector<2x64xf32>, vector<2x64xf32>, vector<2x64xf32>, vector<2x64xf32>, vector<2x64xf32>, vector<2x64xf32> -> vector<2x512xf32>
    %806 = arith.negf %419 : vector<2x64xf32>
    %807 = math.exp %806 : vector<2x64xf32>
    %cst_320 = arith.constant 1.000000e+00 : f32
    %808 = vector.broadcast %cst_320 : f32 to vector<2x64xf32>
    %809 = arith.addf %808, %807 : vector<2x64xf32>
    %810 = arith.divf %808, %809 : vector<2x64xf32>
    %811 = arith.mulf %419, %810 : vector<2x64xf32>
    %c0_321 = arith.constant 0 : index
    %c0_322 = arith.constant 0 : index
    %c0_323 = arith.constant 0 : index
    %812 = vector.load %arg6[%c0_321, %c0_322, %c0_323] : memref<3x64x32xf32, #tpu.memory_space<vmem>>, vector<1x64x32xf32>
    %813 = vector.shape_cast %812 : vector<1x64x32xf32> to vector<64x32xf32>
    %cst_324 = arith.constant dense<0.000000e+00> : vector<2x32xf32>
    %814 = tpu.matmul %811, %813, %cst_324 {dimension_numbers = #tpu.dot_dimension_numbers<[1], [0], [0], [1], [0, 0, 1, 1], [], []>} : vector<2x64xf32>, vector<64x32xf32>, vector<2x32xf32> -> vector<2x32xf32>
    %c0_325 = arith.constant 0 : index
    %c0_326 = arith.constant 0 : index
    %c0_327 = arith.constant 0 : index
    %815 = vector.load %arg7[%c0_325, %c0_326, %c0_327] : memref<3x512x32xf32, #tpu.memory_space<vmem>>, vector<1x512x32xf32>
    %816 = vector.shape_cast %815 : vector<1x512x32xf32> to vector<512x32xf32>
    %cst_328 = arith.constant dense<0.000000e+00> : vector<2x32xf32>
    %817 = tpu.matmul %805, %816, %cst_328 {dimension_numbers = #tpu.dot_dimension_numbers<[1], [0], [0], [1], [0, 0, 1, 1], [], []>} : vector<2x512xf32>, vector<512x32xf32>, vector<2x32xf32> -> vector<2x32xf32>
    %818 = arith.addf %814, %817 : vector<2x32xf32>
    %c1 = arith.constant 1 : index
    %c0_329 = arith.constant 0 : index
    %c0_330 = arith.constant 0 : index
    %819 = vector.load %arg6[%c1, %c0_329, %c0_330] : memref<3x64x32xf32, #tpu.memory_space<vmem>>, vector<1x64x32xf32>
    %820 = vector.shape_cast %819 : vector<1x64x32xf32> to vector<64x32xf32>
    %cst_331 = arith.constant dense<0.000000e+00> : vector<2x32xf32>
    %821 = tpu.matmul %811, %820, %cst_331 {dimension_numbers = #tpu.dot_dimension_numbers<[1], [0], [0], [1], [0, 0, 1, 1], [], []>} : vector<2x64xf32>, vector<64x32xf32>, vector<2x32xf32> -> vector<2x32xf32>
    %c1_332 = arith.constant 1 : index
    %c0_333 = arith.constant 0 : index
    %c0_334 = arith.constant 0 : index
    %822 = vector.load %arg7[%c1_332, %c0_333, %c0_334] : memref<3x512x32xf32, #tpu.memory_space<vmem>>, vector<1x512x32xf32>
    %823 = vector.shape_cast %822 : vector<1x512x32xf32> to vector<512x32xf32>
    %cst_335 = arith.constant dense<0.000000e+00> : vector<2x32xf32>
    %824 = tpu.matmul %805, %823, %cst_335 {dimension_numbers = #tpu.dot_dimension_numbers<[1], [0], [0], [1], [0, 0, 1, 1], [], []>} : vector<2x512xf32>, vector<512x32xf32>, vector<2x32xf32> -> vector<2x32xf32>
    %825 = arith.addf %821, %824 : vector<2x32xf32>
    %c2 = arith.constant 2 : index
    %c0_336 = arith.constant 0 : index
    %c0_337 = arith.constant 0 : index
    %826 = vector.load %arg6[%c2, %c0_336, %c0_337] : memref<3x64x32xf32, #tpu.memory_space<vmem>>, vector<1x64x32xf32>
    %827 = vector.shape_cast %826 : vector<1x64x32xf32> to vector<64x32xf32>
    %cst_338 = arith.constant dense<0.000000e+00> : vector<2x32xf32>
    %828 = tpu.matmul %811, %827, %cst_338 {dimension_numbers = #tpu.dot_dimension_numbers<[1], [0], [0], [1], [0, 0, 1, 1], [], []>} : vector<2x64xf32>, vector<64x32xf32>, vector<2x32xf32> -> vector<2x32xf32>
    %c2_339 = arith.constant 2 : index
    %c0_340 = arith.constant 0 : index
    %c0_341 = arith.constant 0 : index
    %829 = vector.load %arg7[%c2_339, %c0_340, %c0_341] : memref<3x512x32xf32, #tpu.memory_space<vmem>>, vector<1x512x32xf32>
    %830 = vector.shape_cast %829 : vector<1x512x32xf32> to vector<512x32xf32>
    %cst_342 = arith.constant dense<0.000000e+00> : vector<2x32xf32>
    %831 = tpu.matmul %805, %830, %cst_342 {dimension_numbers = #tpu.dot_dimension_numbers<[1], [0], [0], [1], [0, 0, 1, 1], [], []>} : vector<2x512xf32>, vector<512x32xf32>, vector<2x32xf32> -> vector<2x32xf32>
    %832 = arith.addf %828, %831 : vector<2x32xf32>
    %c0_343 = arith.constant 0 : index
    %c0_344 = arith.constant 0 : index
    %833 = vector.load %arg0[%c0_343, %c0_344] : memref<6x32xf32, #tpu.memory_space<vmem>>, vector<6x32xf32>
    %834 = tpu.concatenate %833, %818, %825, %832 in 0 : vector<6x32xf32>, vector<2x32xf32>, vector<2x32xf32>, vector<2x32xf32> -> vector<12x32xf32>
    %835 = tpu.iota {dimensions = array<i32: 0>} : vector<12x12xi32>
    %c2_i32 = arith.constant 2 : i32
    %c0_i32 = arith.constant 0 : i32
    %836 = arith.cmpi eq, %c2_i32, %c0_i32 : i32
    %c1_i32 = arith.constant 1 : i32
    %837 = arith.select %836, %c1_i32, %c2_i32 : i32
    %838 = vector.broadcast %837 : i32 to vector<12x12xi32>
    %839 = arith.remsi %835, %838 : vector<12x12xi32>
    %c0_i32_345 = arith.constant 0 : i32
    %840 = vector.broadcast %c0_i32_345 : i32 to vector<12x12xi32>
    %841 = arith.cmpi ne, %839, %840 : vector<12x12xi32>
    %c0_i32_346 = arith.constant 0 : i32
    %842 = vector.broadcast %c0_i32_346 : i32 to vector<12x12xi32>
    %843 = arith.cmpi slt, %839, %842 : vector<12x12xi32>
    %c0_i32_347 = arith.constant 0 : i32
    %844 = arith.cmpi slt, %837, %c0_i32_347 : i32
    %845 = vector.broadcast %844 : i1 to vector<12x12xi1>
    %846 = vector.broadcast %845 : vector<12x12xi1> to vector<12x12xi1>
    %847 = arith.xori %843, %846 : vector<12x12xi1>
    %848 = arith.andi %847, %841 : vector<12x12xi1>
    %849 = vector.broadcast %837 : i32 to vector<12x12xi32>
    %850 = arith.addi %839, %849 : vector<12x12xi32>
    %851 = arith.select %848, %850, %839 : vector<12x12xi1>, vector<12x12xi32>
    %852 = tpu.iota {dimensions = array<i32: 1>} : vector<12x12xi32>
    %c2_i32_348 = arith.constant 2 : i32
    %c0_i32_349 = arith.constant 0 : i32
    %853 = arith.cmpi eq, %c2_i32_348, %c0_i32_349 : i32
    %c1_i32_350 = arith.constant 1 : i32
    %854 = arith.select %853, %c1_i32_350, %c2_i32_348 : i32
    %855 = vector.broadcast %854 : i32 to vector<12x12xi32>
    %856 = arith.remsi %852, %855 : vector<12x12xi32>
    %c0_i32_351 = arith.constant 0 : i32
    %857 = vector.broadcast %c0_i32_351 : i32 to vector<12x12xi32>
    %858 = arith.cmpi ne, %856, %857 : vector<12x12xi32>
    %c0_i32_352 = arith.constant 0 : i32
    %859 = vector.broadcast %c0_i32_352 : i32 to vector<12x12xi32>
    %860 = arith.cmpi slt, %856, %859 : vector<12x12xi32>
    %c0_i32_353 = arith.constant 0 : i32
    %861 = arith.cmpi slt, %854, %c0_i32_353 : i32
    %862 = vector.broadcast %861 : i1 to vector<12x12xi1>
    %863 = vector.broadcast %862 : vector<12x12xi1> to vector<12x12xi1>
    %864 = arith.xori %860, %863 : vector<12x12xi1>
    %865 = arith.andi %864, %858 : vector<12x12xi1>
    %866 = vector.broadcast %854 : i32 to vector<12x12xi32>
    %867 = arith.addi %856, %866 : vector<12x12xi32>
    %868 = arith.select %865, %867, %856 : vector<12x12xi1>, vector<12x12xi32>
    %869 = arith.cmpi eq, %851, %868 : vector<12x12xi32>
    %cst_354 = arith.constant 0.000000e+00 : f32
    %cst_355 = arith.constant -1.000000e+30 : f32
    %870 = vector.broadcast %cst_354 : f32 to vector<12x12xf32>
    %871 = vector.broadcast %cst_355 : f32 to vector<12x12xf32>
    %872 = arith.select %869, %870, %871 : vector<12x12xi1>, vector<12x12xf32>
    %c0_356 = arith.constant 0 : index
    %c0_357 = arith.constant 0 : index
    %873 = vector.load %arg8[%c0_356, %c0_357] : memref<1x32xf32, #tpu.memory_space<vmem>>, vector<1x32xf32>
    %c0_358 = arith.constant 0 : index
    %c0_359 = arith.constant 0 : index
    %874 = vector.load %arg9[%c0_358, %c0_359] : memref<1x32xf32, #tpu.memory_space<vmem>>, vector<1x32xf32>
    %cst_360 = arith.constant dense<0.000000e+00> : vector<12xf32>
    %875 = vector.multi_reduction <add>, %834, %cst_360 [1] : vector<12x32xf32> to vector<12xf32>
    %876 = vector.shape_cast %875 : vector<12xf32> to vector<12x1xf32>
    %cst_361 = arith.constant 3.200000e+01 : f32
    %877 = vector.broadcast %cst_361 : f32 to vector<12x1xf32>
    %878 = arith.divf %876, %877 : vector<12x1xf32>
    %879 = vector.broadcast %878 : vector<12x1xf32> to vector<12x32xf32>
    %880 = arith.subf %834, %879 : vector<12x32xf32>
    %881 = arith.mulf %880, %880 : vector<12x32xf32>
    %cst_362 = arith.constant dense<0.000000e+00> : vector<12xf32>
    %882 = vector.multi_reduction <add>, %881, %cst_362 [1] : vector<12x32xf32> to vector<12xf32>
    %883 = vector.shape_cast %882 : vector<12xf32> to vector<12x1xf32>
    %cst_363 = arith.constant 3.200000e+01 : f32
    %884 = vector.broadcast %cst_363 : f32 to vector<12x1xf32>
    %885 = arith.divf %883, %884 : vector<12x1xf32>
    %cst_364 = arith.constant 9.99999974E-6 : f32
    %886 = vector.broadcast %cst_364 : f32 to vector<12x1xf32>
    %887 = arith.addf %885, %886 : vector<12x1xf32>
    %888 = math.rsqrt %887 : vector<12x1xf32>
    %889 = vector.broadcast %888 : vector<12x1xf32> to vector<12x32xf32>
    %890 = arith.mulf %880, %889 : vector<12x32xf32>
    %891 = vector.broadcast %873 : vector<1x32xf32> to vector<12x32xf32>
    %892 = arith.mulf %890, %891 : vector<12x32xf32>
    %893 = vector.broadcast %874 : vector<1x32xf32> to vector<12x32xf32>
    %894 = arith.addf %892, %893 : vector<12x32xf32>
    %c0_365 = arith.constant 0 : index
    %c0_366 = arith.constant 0 : index
    %895 = vector.load %arg10[%c0_365, %c0_366] : memref<32x96xf32, #tpu.memory_space<vmem>>, vector<32x96xf32>
    %cst_367 = arith.constant dense<0.000000e+00> : vector<12x96xf32>
    %896 = tpu.matmul %894, %895, %cst_367 {dimension_numbers = #tpu.dot_dimension_numbers<[1], [0], [0], [1], [0, 0, 1, 1], [], []>} : vector<12x32xf32>, vector<32x96xf32>, vector<12x96xf32> -> vector<12x96xf32>
    %c0_368 = arith.constant 0 : index
    %c0_369 = arith.constant 0 : index
    %897 = vector.load %arg11[%c0_368, %c0_369] : memref<1x96xf32, #tpu.memory_space<vmem>>, vector<1x96xf32>
    %898 = vector.broadcast %897 : vector<1x96xf32> to vector<12x96xf32>
    %899 = arith.addf %896, %898 : vector<12x96xf32>
    %900 = vector.extract_strided_slice %899 {offsets = [0, 0], sizes = [12, 8], strides = [1, 1]} : vector<12x96xf32> to vector<12x8xf32>
    %901 = vector.extract_strided_slice %899 {offsets = [0, 32], sizes = [12, 8], strides = [1, 1]} : vector<12x96xf32> to vector<12x8xf32>
    %902 = vector.extract_strided_slice %899 {offsets = [0, 64], sizes = [12, 8], strides = [1, 1]} : vector<12x96xf32> to vector<12x8xf32>
    %cst_370 = arith.constant dense<0.000000e+00> : vector<12x12xf32>
    %903 = tpu.matmul %900, %901, %cst_370 {dimension_numbers = #tpu.dot_dimension_numbers<[1], [1], [0], [0], [0, 0, 1, 0], [], []>} : vector<12x8xf32>, vector<12x8xf32>, vector<12x12xf32> -> vector<12x12xf32>
    %cst_371 = arith.constant 0.353553385 : f32
    %904 = vector.broadcast %cst_371 : f32 to vector<12x12xf32>
    %905 = arith.mulf %903, %904 : vector<12x12xf32>
    %906 = arith.addf %905, %872 : vector<12x12xf32>
    %cst_372 = arith.constant dense<0xFF800000> : vector<12xf32>
    %907 = vector.multi_reduction <maximumf>, %906, %cst_372 [1] : vector<12x12xf32> to vector<12xf32>
    %908 = vector.shape_cast %907 : vector<12xf32> to vector<12x1xf32>
    %909 = vector.broadcast %908 : vector<12x1xf32> to vector<12x12xf32>
    %910 = arith.subf %906, %909 : vector<12x12xf32>
    %911 = math.exp %910 : vector<12x12xf32>
    %cst_373 = arith.constant dense<0.000000e+00> : vector<12xf32>
    %912 = vector.multi_reduction <add>, %911, %cst_373 [1] : vector<12x12xf32> to vector<12xf32>
    %913 = vector.shape_cast %912 : vector<12xf32> to vector<12x1xf32>
    %914 = tpu.reciprocal %913 {approx = true} : vector<12x1xf32> -> vector<12x1xf32>
    %915 = vector.broadcast %914 : vector<12x1xf32> to vector<12x12xf32>
    %916 = arith.mulf %911, %915 : vector<12x12xf32>
    %cst_374 = arith.constant dense<0.000000e+00> : vector<12x8xf32>
    %917 = tpu.matmul %916, %902, %cst_374 {dimension_numbers = #tpu.dot_dimension_numbers<[1], [0], [0], [1], [0, 0, 1, 1], [], []>} : vector<12x12xf32>, vector<12x8xf32>, vector<12x8xf32> -> vector<12x8xf32>
    %918 = vector.extract_strided_slice %899 {offsets = [0, 8], sizes = [12, 8], strides = [1, 1]} : vector<12x96xf32> to vector<12x8xf32>
    %919 = vector.extract_strided_slice %899 {offsets = [0, 40], sizes = [12, 8], strides = [1, 1]} : vector<12x96xf32> to vector<12x8xf32>
    %920 = vector.extract_strided_slice %899 {offsets = [0, 72], sizes = [12, 8], strides = [1, 1]} : vector<12x96xf32> to vector<12x8xf32>
    %cst_375 = arith.constant dense<0.000000e+00> : vector<12x12xf32>
    %921 = tpu.matmul %918, %919, %cst_375 {dimension_numbers = #tpu.dot_dimension_numbers<[1], [1], [0], [0], [0, 0, 1, 0], [], []>} : vector<12x8xf32>, vector<12x8xf32>, vector<12x12xf32> -> vector<12x12xf32>
    %cst_376 = arith.constant 0.353553385 : f32
    %922 = vector.broadcast %cst_376 : f32 to vector<12x12xf32>
    %923 = arith.mulf %921, %922 : vector<12x12xf32>
    %924 = arith.addf %923, %872 : vector<12x12xf32>
    %cst_377 = arith.constant dense<0xFF800000> : vector<12xf32>
    %925 = vector.multi_reduction <maximumf>, %924, %cst_377 [1] : vector<12x12xf32> to vector<12xf32>
    %926 = vector.shape_cast %925 : vector<12xf32> to vector<12x1xf32>
    %927 = vector.broadcast %926 : vector<12x1xf32> to vector<12x12xf32>
    %928 = arith.subf %924, %927 : vector<12x12xf32>
    %929 = math.exp %928 : vector<12x12xf32>
    %cst_378 = arith.constant dense<0.000000e+00> : vector<12xf32>
    %930 = vector.multi_reduction <add>, %929, %cst_378 [1] : vector<12x12xf32> to vector<12xf32>
    %931 = vector.shape_cast %930 : vector<12xf32> to vector<12x1xf32>
    %932 = tpu.reciprocal %931 {approx = true} : vector<12x1xf32> -> vector<12x1xf32>
    %933 = vector.broadcast %932 : vector<12x1xf32> to vector<12x12xf32>
    %934 = arith.mulf %929, %933 : vector<12x12xf32>
    %cst_379 = arith.constant dense<0.000000e+00> : vector<12x8xf32>
    %935 = tpu.matmul %934, %920, %cst_379 {dimension_numbers = #tpu.dot_dimension_numbers<[1], [0], [0], [1], [0, 0, 1, 1], [], []>} : vector<12x12xf32>, vector<12x8xf32>, vector<12x8xf32> -> vector<12x8xf32>
    %936 = vector.extract_strided_slice %899 {offsets = [0, 16], sizes = [12, 8], strides = [1, 1]} : vector<12x96xf32> to vector<12x8xf32>
    %937 = vector.extract_strided_slice %899 {offsets = [0, 48], sizes = [12, 8], strides = [1, 1]} : vector<12x96xf32> to vector<12x8xf32>
    %938 = vector.extract_strided_slice %899 {offsets = [0, 80], sizes = [12, 8], strides = [1, 1]} : vector<12x96xf32> to vector<12x8xf32>
    %cst_380 = arith.constant dense<0.000000e+00> : vector<12x12xf32>
    %939 = tpu.matmul %936, %937, %cst_380 {dimension_numbers = #tpu.dot_dimension_numbers<[1], [1], [0], [0], [0, 0, 1, 0], [], []>} : vector<12x8xf32>, vector<12x8xf32>, vector<12x12xf32> -> vector<12x12xf32>
    %cst_381 = arith.constant 0.353553385 : f32
    %940 = vector.broadcast %cst_381 : f32 to vector<12x12xf32>
    %941 = arith.mulf %939, %940 : vector<12x12xf32>
    %942 = arith.addf %941, %872 : vector<12x12xf32>
    %cst_382 = arith.constant dense<0xFF800000> : vector<12xf32>
    %943 = vector.multi_reduction <maximumf>, %942, %cst_382 [1] : vector<12x12xf32> to vector<12xf32>
    %944 = vector.shape_cast %943 : vector<12xf32> to vector<12x1xf32>
    %945 = vector.broadcast %944 : vector<12x1xf32> to vector<12x12xf32>
    %946 = arith.subf %942, %945 : vector<12x12xf32>
    %947 = math.exp %946 : vector<12x12xf32>
    %cst_383 = arith.constant dense<0.000000e+00> : vector<12xf32>
    %948 = vector.multi_reduction <add>, %947, %cst_383 [1] : vector<12x12xf32> to vector<12xf32>
    %949 = vector.shape_cast %948 : vector<12xf32> to vector<12x1xf32>
    %950 = tpu.reciprocal %949 {approx = true} : vector<12x1xf32> -> vector<12x1xf32>
    %951 = vector.broadcast %950 : vector<12x1xf32> to vector<12x12xf32>
    %952 = arith.mulf %947, %951 : vector<12x12xf32>
    %cst_384 = arith.constant dense<0.000000e+00> : vector<12x8xf32>
    %953 = tpu.matmul %952, %938, %cst_384 {dimension_numbers = #tpu.dot_dimension_numbers<[1], [0], [0], [1], [0, 0, 1, 1], [], []>} : vector<12x12xf32>, vector<12x8xf32>, vector<12x8xf32> -> vector<12x8xf32>
    %954 = vector.extract_strided_slice %899 {offsets = [0, 24], sizes = [12, 8], strides = [1, 1]} : vector<12x96xf32> to vector<12x8xf32>
    %955 = vector.extract_strided_slice %899 {offsets = [0, 56], sizes = [12, 8], strides = [1, 1]} : vector<12x96xf32> to vector<12x8xf32>
    %956 = vector.extract_strided_slice %899 {offsets = [0, 88], sizes = [12, 8], strides = [1, 1]} : vector<12x96xf32> to vector<12x8xf32>
    %cst_385 = arith.constant dense<0.000000e+00> : vector<12x12xf32>
    %957 = tpu.matmul %954, %955, %cst_385 {dimension_numbers = #tpu.dot_dimension_numbers<[1], [1], [0], [0], [0, 0, 1, 0], [], []>} : vector<12x8xf32>, vector<12x8xf32>, vector<12x12xf32> -> vector<12x12xf32>
    %cst_386 = arith.constant 0.353553385 : f32
    %958 = vector.broadcast %cst_386 : f32 to vector<12x12xf32>
    %959 = arith.mulf %957, %958 : vector<12x12xf32>
    %960 = arith.addf %959, %872 : vector<12x12xf32>
    %cst_387 = arith.constant dense<0xFF800000> : vector<12xf32>
    %961 = vector.multi_reduction <maximumf>, %960, %cst_387 [1] : vector<12x12xf32> to vector<12xf32>
    %962 = vector.shape_cast %961 : vector<12xf32> to vector<12x1xf32>
    %963 = vector.broadcast %962 : vector<12x1xf32> to vector<12x12xf32>
    %964 = arith.subf %960, %963 : vector<12x12xf32>
    %965 = math.exp %964 : vector<12x12xf32>
    %cst_388 = arith.constant dense<0.000000e+00> : vector<12xf32>
    %966 = vector.multi_reduction <add>, %965, %cst_388 [1] : vector<12x12xf32> to vector<12xf32>
    %967 = vector.shape_cast %966 : vector<12xf32> to vector<12x1xf32>
    %968 = tpu.reciprocal %967 {approx = true} : vector<12x1xf32> -> vector<12x1xf32>
    %969 = vector.broadcast %968 : vector<12x1xf32> to vector<12x12xf32>
    %970 = arith.mulf %965, %969 : vector<12x12xf32>
    %cst_389 = arith.constant dense<0.000000e+00> : vector<12x8xf32>
    %971 = tpu.matmul %970, %956, %cst_389 {dimension_numbers = #tpu.dot_dimension_numbers<[1], [0], [0], [1], [0, 0, 1, 1], [], []>} : vector<12x12xf32>, vector<12x8xf32>, vector<12x8xf32> -> vector<12x8xf32>
    %972 = tpu.concatenate %917, %935, %953, %971 in 1 : vector<12x8xf32>, vector<12x8xf32>, vector<12x8xf32>, vector<12x8xf32> -> vector<12x32xf32>
    %c0_390 = arith.constant 0 : index
    %c0_391 = arith.constant 0 : index
    %973 = vector.load %arg12[%c0_390, %c0_391] : memref<32x32xf32, #tpu.memory_space<vmem>>, vector<32x32xf32>
    %cst_392 = arith.constant dense<0.000000e+00> : vector<12x32xf32>
    %974 = tpu.matmul %972, %973, %cst_392 {dimension_numbers = #tpu.dot_dimension_numbers<[1], [0], [0], [1], [0, 0, 1, 1], [], []>} : vector<12x32xf32>, vector<32x32xf32>, vector<12x32xf32> -> vector<12x32xf32>
    %c0_393 = arith.constant 0 : index
    %c0_394 = arith.constant 0 : index
    %975 = vector.load %arg13[%c0_393, %c0_394] : memref<1x32xf32, #tpu.memory_space<vmem>>, vector<1x32xf32>
    %976 = vector.broadcast %975 : vector<1x32xf32> to vector<12x32xf32>
    %977 = arith.addf %974, %976 : vector<12x32xf32>
    %978 = arith.addf %834, %977 : vector<12x32xf32>
    %c0_395 = arith.constant 0 : index
    %c0_396 = arith.constant 0 : index
    %979 = vector.load %arg14[%c0_395, %c0_396] : memref<1x32xf32, #tpu.memory_space<vmem>>, vector<1x32xf32>
    %c0_397 = arith.constant 0 : index
    %c0_398 = arith.constant 0 : index
    %980 = vector.load %arg15[%c0_397, %c0_398] : memref<1x32xf32, #tpu.memory_space<vmem>>, vector<1x32xf32>
    %cst_399 = arith.constant dense<0.000000e+00> : vector<12xf32>
    %981 = vector.multi_reduction <add>, %978, %cst_399 [1] : vector<12x32xf32> to vector<12xf32>
    %982 = vector.shape_cast %981 : vector<12xf32> to vector<12x1xf32>
    %cst_400 = arith.constant 3.200000e+01 : f32
    %983 = vector.broadcast %cst_400 : f32 to vector<12x1xf32>
    %984 = arith.divf %982, %983 : vector<12x1xf32>
    %985 = vector.broadcast %984 : vector<12x1xf32> to vector<12x32xf32>
    %986 = arith.subf %978, %985 : vector<12x32xf32>
    %987 = arith.mulf %986, %986 : vector<12x32xf32>
    %cst_401 = arith.constant dense<0.000000e+00> : vector<12xf32>
    %988 = vector.multi_reduction <add>, %987, %cst_401 [1] : vector<12x32xf32> to vector<12xf32>
    %989 = vector.shape_cast %988 : vector<12xf32> to vector<12x1xf32>
    %cst_402 = arith.constant 3.200000e+01 : f32
    %990 = vector.broadcast %cst_402 : f32 to vector<12x1xf32>
    %991 = arith.divf %989, %990 : vector<12x1xf32>
    %cst_403 = arith.constant 9.99999974E-6 : f32
    %992 = vector.broadcast %cst_403 : f32 to vector<12x1xf32>
    %993 = arith.addf %991, %992 : vector<12x1xf32>
    %994 = math.rsqrt %993 : vector<12x1xf32>
    %995 = vector.broadcast %994 : vector<12x1xf32> to vector<12x32xf32>
    %996 = arith.mulf %986, %995 : vector<12x32xf32>
    %997 = vector.broadcast %979 : vector<1x32xf32> to vector<12x32xf32>
    %998 = arith.mulf %996, %997 : vector<12x32xf32>
    %999 = vector.broadcast %980 : vector<1x32xf32> to vector<12x32xf32>
    %1000 = arith.addf %998, %999 : vector<12x32xf32>
    %c0_404 = arith.constant 0 : index
    %c0_405 = arith.constant 0 : index
    %1001 = vector.load %arg16[%c0_404, %c0_405] : memref<32x64xf32, #tpu.memory_space<vmem>>, vector<32x64xf32>
    %cst_406 = arith.constant dense<0.000000e+00> : vector<12x64xf32>
    %1002 = tpu.matmul %1000, %1001, %cst_406 {dimension_numbers = #tpu.dot_dimension_numbers<[1], [0], [0], [1], [0, 0, 1, 1], [], []>} : vector<12x32xf32>, vector<32x64xf32>, vector<12x64xf32> -> vector<12x64xf32>
    %c0_407 = arith.constant 0 : index
    %c0_408 = arith.constant 0 : index
    %1003 = vector.load %arg17[%c0_407, %c0_408] : memref<1x64xf32, #tpu.memory_space<vmem>>, vector<1x64xf32>
    %1004 = vector.broadcast %1003 : vector<1x64xf32> to vector<12x64xf32>
    %1005 = arith.addf %1002, %1004 : vector<12x64xf32>
    %cst_409 = arith.constant 5.000000e-01 : f32
    %1006 = vector.broadcast %cst_409 : f32 to vector<12x64xf32>
    %1007 = arith.mulf %1006, %1005 : vector<12x64xf32>
    %cst_410 = arith.constant 0.707106769 : f32
    %1008 = vector.broadcast %cst_410 : f32 to vector<12x64xf32>
    %1009 = arith.mulf %1005, %1008 : vector<12x64xf32>
    %1010 = math.absf %1009 : vector<12x64xf32>
    %cst_411 = arith.constant 0.327591091 : f32
    %1011 = vector.broadcast %cst_411 : f32 to vector<12x64xf32>
    %1012 = arith.mulf %1011, %1010 : vector<12x64xf32>
    %cst_412 = arith.constant 1.000000e+00 : f32
    %1013 = vector.broadcast %cst_412 : f32 to vector<12x64xf32>
    %1014 = arith.addf %1013, %1012 : vector<12x64xf32>
    %cst_413 = arith.constant 1.000000e+00 : f32
    %1015 = vector.broadcast %cst_413 : f32 to vector<12x64xf32>
    %1016 = arith.divf %1015, %1014 : vector<12x64xf32>
    %cst_414 = arith.constant 1.06140542 : f32
    %1017 = vector.broadcast %cst_414 : f32 to vector<12x64xf32>
    %1018 = arith.mulf %1017, %1016 : vector<12x64xf32>
    %cst_415 = arith.constant -1.45315206 : f32
    %1019 = vector.broadcast %cst_415 : f32 to vector<12x64xf32>
    %1020 = arith.addf %1018, %1019 : vector<12x64xf32>
    %1021 = arith.mulf %1020, %1016 : vector<12x64xf32>
    %cst_416 = arith.constant 1.42141378 : f32
    %1022 = vector.broadcast %cst_416 : f32 to vector<12x64xf32>
    %1023 = arith.addf %1021, %1022 : vector<12x64xf32>
    %1024 = arith.mulf %1023, %1016 : vector<12x64xf32>
    %cst_417 = arith.constant -0.284496725 : f32
    %1025 = vector.broadcast %cst_417 : f32 to vector<12x64xf32>
    %1026 = arith.addf %1024, %1025 : vector<12x64xf32>
    %1027 = arith.mulf %1026, %1016 : vector<12x64xf32>
    %cst_418 = arith.constant 0.254829586 : f32
    %1028 = vector.broadcast %cst_418 : f32 to vector<12x64xf32>
    %1029 = arith.addf %1027, %1028 : vector<12x64xf32>
    %1030 = arith.mulf %1029, %1016 : vector<12x64xf32>
    %cst_419 = arith.constant 0.000000e+00 : f32
    %1031 = vector.broadcast %cst_419 : f32 to vector<12x64xf32>
    %1032 = arith.subf %1031, %1010 : vector<12x64xf32>
    %1033 = arith.mulf %1032, %1010 : vector<12x64xf32>
    %1034 = math.exp %1033 : vector<12x64xf32>
    %1035 = arith.mulf %1030, %1034 : vector<12x64xf32>
    %cst_420 = arith.constant 1.000000e+00 : f32
    %1036 = vector.broadcast %cst_420 : f32 to vector<12x64xf32>
    %1037 = arith.subf %1036, %1035 : vector<12x64xf32>
    %cst_421 = arith.constant 0.000000e+00 : f32
    %1038 = vector.broadcast %cst_421 : f32 to vector<12x64xf32>
    %1039 = arith.cmpf oge, %1009, %1038 : vector<12x64xf32>
    %cst_422 = arith.constant 0.000000e+00 : f32
    %1040 = vector.broadcast %cst_422 : f32 to vector<12x64xf32>
    %1041 = arith.subf %1040, %1037 : vector<12x64xf32>
    %1042 = arith.select %1039, %1037, %1041 : vector<12x64xi1>, vector<12x64xf32>
    %cst_423 = arith.constant 1.000000e+00 : f32
    %1043 = vector.broadcast %cst_423 : f32 to vector<12x64xf32>
    %1044 = arith.addf %1043, %1042 : vector<12x64xf32>
    %1045 = arith.mulf %1007, %1044 : vector<12x64xf32>
    %c0_424 = arith.constant 0 : index
    %c0_425 = arith.constant 0 : index
    %1046 = vector.load %arg18[%c0_424, %c0_425] : memref<64x32xf32, #tpu.memory_space<vmem>>, vector<64x32xf32>
    %cst_426 = arith.constant dense<0.000000e+00> : vector<12x32xf32>
    %1047 = tpu.matmul %1045, %1046, %cst_426 {dimension_numbers = #tpu.dot_dimension_numbers<[1], [0], [0], [1], [0, 0, 1, 1], [], []>} : vector<12x64xf32>, vector<64x32xf32>, vector<12x32xf32> -> vector<12x32xf32>
    %c0_427 = arith.constant 0 : index
    %c0_428 = arith.constant 0 : index
    %1048 = vector.load %arg19[%c0_427, %c0_428] : memref<1x32xf32, #tpu.memory_space<vmem>>, vector<1x32xf32>
    %1049 = vector.broadcast %1048 : vector<1x32xf32> to vector<12x32xf32>
    %1050 = arith.addf %1047, %1049 : vector<12x32xf32>
    %1051 = arith.addf %978, %1050 : vector<12x32xf32>
    %c0_429 = arith.constant 0 : index
    %c0_430 = arith.constant 0 : index
    %1052 = vector.load %arg20[%c0_429, %c0_430] : memref<1x32xf32, #tpu.memory_space<vmem>>, vector<1x32xf32>
    %c0_431 = arith.constant 0 : index
    %c0_432 = arith.constant 0 : index
    %1053 = vector.load %arg21[%c0_431, %c0_432] : memref<1x32xf32, #tpu.memory_space<vmem>>, vector<1x32xf32>
    %cst_433 = arith.constant dense<0.000000e+00> : vector<12xf32>
    %1054 = vector.multi_reduction <add>, %1051, %cst_433 [1] : vector<12x32xf32> to vector<12xf32>
    %1055 = vector.shape_cast %1054 : vector<12xf32> to vector<12x1xf32>
    %cst_434 = arith.constant 3.200000e+01 : f32
    %1056 = vector.broadcast %cst_434 : f32 to vector<12x1xf32>
    %1057 = arith.divf %1055, %1056 : vector<12x1xf32>
    %1058 = vector.broadcast %1057 : vector<12x1xf32> to vector<12x32xf32>
    %1059 = arith.subf %1051, %1058 : vector<12x32xf32>
    %1060 = arith.mulf %1059, %1059 : vector<12x32xf32>
    %cst_435 = arith.constant dense<0.000000e+00> : vector<12xf32>
    %1061 = vector.multi_reduction <add>, %1060, %cst_435 [1] : vector<12x32xf32> to vector<12xf32>
    %1062 = vector.shape_cast %1061 : vector<12xf32> to vector<12x1xf32>
    %cst_436 = arith.constant 3.200000e+01 : f32
    %1063 = vector.broadcast %cst_436 : f32 to vector<12x1xf32>
    %1064 = arith.divf %1062, %1063 : vector<12x1xf32>
    %cst_437 = arith.constant 9.99999974E-6 : f32
    %1065 = vector.broadcast %cst_437 : f32 to vector<12x1xf32>
    %1066 = arith.addf %1064, %1065 : vector<12x1xf32>
    %1067 = math.rsqrt %1066 : vector<12x1xf32>
    %1068 = vector.broadcast %1067 : vector<12x1xf32> to vector<12x32xf32>
    %1069 = arith.mulf %1059, %1068 : vector<12x32xf32>
    %1070 = vector.broadcast %1052 : vector<1x32xf32> to vector<12x32xf32>
    %1071 = arith.mulf %1069, %1070 : vector<12x32xf32>
    %1072 = vector.broadcast %1053 : vector<1x32xf32> to vector<12x32xf32>
    %1073 = arith.addf %1071, %1072 : vector<12x32xf32>
    %c0_438 = arith.constant 0 : index
    %c0_439 = arith.constant 0 : index
    %1074 = vector.load %arg22[%c0_438, %c0_439] : memref<32x96xf32, #tpu.memory_space<vmem>>, vector<32x96xf32>
    %cst_440 = arith.constant dense<0.000000e+00> : vector<12x96xf32>
    %1075 = tpu.matmul %1073, %1074, %cst_440 {dimension_numbers = #tpu.dot_dimension_numbers<[1], [0], [0], [1], [0, 0, 1, 1], [], []>} : vector<12x32xf32>, vector<32x96xf32>, vector<12x96xf32> -> vector<12x96xf32>
    %c0_441 = arith.constant 0 : index
    %c0_442 = arith.constant 0 : index
    %1076 = vector.load %arg23[%c0_441, %c0_442] : memref<1x96xf32, #tpu.memory_space<vmem>>, vector<1x96xf32>
    %1077 = vector.broadcast %1076 : vector<1x96xf32> to vector<12x96xf32>
    %1078 = arith.addf %1075, %1077 : vector<12x96xf32>
    %1079 = vector.extract_strided_slice %1078 {offsets = [0, 0], sizes = [12, 8], strides = [1, 1]} : vector<12x96xf32> to vector<12x8xf32>
    %1080 = vector.extract_strided_slice %1078 {offsets = [0, 32], sizes = [12, 8], strides = [1, 1]} : vector<12x96xf32> to vector<12x8xf32>
    %1081 = vector.extract_strided_slice %1078 {offsets = [0, 64], sizes = [12, 8], strides = [1, 1]} : vector<12x96xf32> to vector<12x8xf32>
    %cst_443 = arith.constant dense<0.000000e+00> : vector<12x12xf32>
    %1082 = tpu.matmul %1079, %1080, %cst_443 {dimension_numbers = #tpu.dot_dimension_numbers<[1], [1], [0], [0], [0, 0, 1, 0], [], []>} : vector<12x8xf32>, vector<12x8xf32>, vector<12x12xf32> -> vector<12x12xf32>
    %cst_444 = arith.constant 0.353553385 : f32
    %1083 = vector.broadcast %cst_444 : f32 to vector<12x12xf32>
    %1084 = arith.mulf %1082, %1083 : vector<12x12xf32>
    %1085 = arith.addf %1084, %872 : vector<12x12xf32>
    %cst_445 = arith.constant dense<0xFF800000> : vector<12xf32>
    %1086 = vector.multi_reduction <maximumf>, %1085, %cst_445 [1] : vector<12x12xf32> to vector<12xf32>
    %1087 = vector.shape_cast %1086 : vector<12xf32> to vector<12x1xf32>
    %1088 = vector.broadcast %1087 : vector<12x1xf32> to vector<12x12xf32>
    %1089 = arith.subf %1085, %1088 : vector<12x12xf32>
    %1090 = math.exp %1089 : vector<12x12xf32>
    %cst_446 = arith.constant dense<0.000000e+00> : vector<12xf32>
    %1091 = vector.multi_reduction <add>, %1090, %cst_446 [1] : vector<12x12xf32> to vector<12xf32>
    %1092 = vector.shape_cast %1091 : vector<12xf32> to vector<12x1xf32>
    %1093 = tpu.reciprocal %1092 {approx = true} : vector<12x1xf32> -> vector<12x1xf32>
    %1094 = vector.broadcast %1093 : vector<12x1xf32> to vector<12x12xf32>
    %1095 = arith.mulf %1090, %1094 : vector<12x12xf32>
    %cst_447 = arith.constant dense<0.000000e+00> : vector<12x8xf32>
    %1096 = tpu.matmul %1095, %1081, %cst_447 {dimension_numbers = #tpu.dot_dimension_numbers<[1], [0], [0], [1], [0, 0, 1, 1], [], []>} : vector<12x12xf32>, vector<12x8xf32>, vector<12x8xf32> -> vector<12x8xf32>
    %1097 = vector.extract_strided_slice %1078 {offsets = [0, 8], sizes = [12, 8], strides = [1, 1]} : vector<12x96xf32> to vector<12x8xf32>
    %1098 = vector.extract_strided_slice %1078 {offsets = [0, 40], sizes = [12, 8], strides = [1, 1]} : vector<12x96xf32> to vector<12x8xf32>
    %1099 = vector.extract_strided_slice %1078 {offsets = [0, 72], sizes = [12, 8], strides = [1, 1]} : vector<12x96xf32> to vector<12x8xf32>
    %cst_448 = arith.constant dense<0.000000e+00> : vector<12x12xf32>
    %1100 = tpu.matmul %1097, %1098, %cst_448 {dimension_numbers = #tpu.dot_dimension_numbers<[1], [1], [0], [0], [0, 0, 1, 0], [], []>} : vector<12x8xf32>, vector<12x8xf32>, vector<12x12xf32> -> vector<12x12xf32>
    %cst_449 = arith.constant 0.353553385 : f32
    %1101 = vector.broadcast %cst_449 : f32 to vector<12x12xf32>
    %1102 = arith.mulf %1100, %1101 : vector<12x12xf32>
    %1103 = arith.addf %1102, %872 : vector<12x12xf32>
    %cst_450 = arith.constant dense<0xFF800000> : vector<12xf32>
    %1104 = vector.multi_reduction <maximumf>, %1103, %cst_450 [1] : vector<12x12xf32> to vector<12xf32>
    %1105 = vector.shape_cast %1104 : vector<12xf32> to vector<12x1xf32>
    %1106 = vector.broadcast %1105 : vector<12x1xf32> to vector<12x12xf32>
    %1107 = arith.subf %1103, %1106 : vector<12x12xf32>
    %1108 = math.exp %1107 : vector<12x12xf32>
    %cst_451 = arith.constant dense<0.000000e+00> : vector<12xf32>
    %1109 = vector.multi_reduction <add>, %1108, %cst_451 [1] : vector<12x12xf32> to vector<12xf32>
    %1110 = vector.shape_cast %1109 : vector<12xf32> to vector<12x1xf32>
    %1111 = tpu.reciprocal %1110 {approx = true} : vector<12x1xf32> -> vector<12x1xf32>
    %1112 = vector.broadcast %1111 : vector<12x1xf32> to vector<12x12xf32>
    %1113 = arith.mulf %1108, %1112 : vector<12x12xf32>
    %cst_452 = arith.constant dense<0.000000e+00> : vector<12x8xf32>
    %1114 = tpu.matmul %1113, %1099, %cst_452 {dimension_numbers = #tpu.dot_dimension_numbers<[1], [0], [0], [1], [0, 0, 1, 1], [], []>} : vector<12x12xf32>, vector<12x8xf32>, vector<12x8xf32> -> vector<12x8xf32>
    %1115 = vector.extract_strided_slice %1078 {offsets = [0, 16], sizes = [12, 8], strides = [1, 1]} : vector<12x96xf32> to vector<12x8xf32>
    %1116 = vector.extract_strided_slice %1078 {offsets = [0, 48], sizes = [12, 8], strides = [1, 1]} : vector<12x96xf32> to vector<12x8xf32>
    %1117 = vector.extract_strided_slice %1078 {offsets = [0, 80], sizes = [12, 8], strides = [1, 1]} : vector<12x96xf32> to vector<12x8xf32>
    %cst_453 = arith.constant dense<0.000000e+00> : vector<12x12xf32>
    %1118 = tpu.matmul %1115, %1116, %cst_453 {dimension_numbers = #tpu.dot_dimension_numbers<[1], [1], [0], [0], [0, 0, 1, 0], [], []>} : vector<12x8xf32>, vector<12x8xf32>, vector<12x12xf32> -> vector<12x12xf32>
    %cst_454 = arith.constant 0.353553385 : f32
    %1119 = vector.broadcast %cst_454 : f32 to vector<12x12xf32>
    %1120 = arith.mulf %1118, %1119 : vector<12x12xf32>
    %1121 = arith.addf %1120, %872 : vector<12x12xf32>
    %cst_455 = arith.constant dense<0xFF800000> : vector<12xf32>
    %1122 = vector.multi_reduction <maximumf>, %1121, %cst_455 [1] : vector<12x12xf32> to vector<12xf32>
    %1123 = vector.shape_cast %1122 : vector<12xf32> to vector<12x1xf32>
    %1124 = vector.broadcast %1123 : vector<12x1xf32> to vector<12x12xf32>
    %1125 = arith.subf %1121, %1124 : vector<12x12xf32>
    %1126 = math.exp %1125 : vector<12x12xf32>
    %cst_456 = arith.constant dense<0.000000e+00> : vector<12xf32>
    %1127 = vector.multi_reduction <add>, %1126, %cst_456 [1] : vector<12x12xf32> to vector<12xf32>
    %1128 = vector.shape_cast %1127 : vector<12xf32> to vector<12x1xf32>
    %1129 = tpu.reciprocal %1128 {approx = true} : vector<12x1xf32> -> vector<12x1xf32>
    %1130 = vector.broadcast %1129 : vector<12x1xf32> to vector<12x12xf32>
    %1131 = arith.mulf %1126, %1130 : vector<12x12xf32>
    %cst_457 = arith.constant dense<0.000000e+00> : vector<12x8xf32>
    %1132 = tpu.matmul %1131, %1117, %cst_457 {dimension_numbers = #tpu.dot_dimension_numbers<[1], [0], [0], [1], [0, 0, 1, 1], [], []>} : vector<12x12xf32>, vector<12x8xf32>, vector<12x8xf32> -> vector<12x8xf32>
    %1133 = vector.extract_strided_slice %1078 {offsets = [0, 24], sizes = [12, 8], strides = [1, 1]} : vector<12x96xf32> to vector<12x8xf32>
    %1134 = vector.extract_strided_slice %1078 {offsets = [0, 56], sizes = [12, 8], strides = [1, 1]} : vector<12x96xf32> to vector<12x8xf32>
    %1135 = vector.extract_strided_slice %1078 {offsets = [0, 88], sizes = [12, 8], strides = [1, 1]} : vector<12x96xf32> to vector<12x8xf32>
    %cst_458 = arith.constant dense<0.000000e+00> : vector<12x12xf32>
    %1136 = tpu.matmul %1133, %1134, %cst_458 {dimension_numbers = #tpu.dot_dimension_numbers<[1], [1], [0], [0], [0, 0, 1, 0], [], []>} : vector<12x8xf32>, vector<12x8xf32>, vector<12x12xf32> -> vector<12x12xf32>
    %cst_459 = arith.constant 0.353553385 : f32
    %1137 = vector.broadcast %cst_459 : f32 to vector<12x12xf32>
    %1138 = arith.mulf %1136, %1137 : vector<12x12xf32>
    %1139 = arith.addf %1138, %872 : vector<12x12xf32>
    %cst_460 = arith.constant dense<0xFF800000> : vector<12xf32>
    %1140 = vector.multi_reduction <maximumf>, %1139, %cst_460 [1] : vector<12x12xf32> to vector<12xf32>
    %1141 = vector.shape_cast %1140 : vector<12xf32> to vector<12x1xf32>
    %1142 = vector.broadcast %1141 : vector<12x1xf32> to vector<12x12xf32>
    %1143 = arith.subf %1139, %1142 : vector<12x12xf32>
    %1144 = math.exp %1143 : vector<12x12xf32>
    %cst_461 = arith.constant dense<0.000000e+00> : vector<12xf32>
    %1145 = vector.multi_reduction <add>, %1144, %cst_461 [1] : vector<12x12xf32> to vector<12xf32>
    %1146 = vector.shape_cast %1145 : vector<12xf32> to vector<12x1xf32>
    %1147 = tpu.reciprocal %1146 {approx = true} : vector<12x1xf32> -> vector<12x1xf32>
    %1148 = vector.broadcast %1147 : vector<12x1xf32> to vector<12x12xf32>
    %1149 = arith.mulf %1144, %1148 : vector<12x12xf32>
    %cst_462 = arith.constant dense<0.000000e+00> : vector<12x8xf32>
    %1150 = tpu.matmul %1149, %1135, %cst_462 {dimension_numbers = #tpu.dot_dimension_numbers<[1], [0], [0], [1], [0, 0, 1, 1], [], []>} : vector<12x12xf32>, vector<12x8xf32>, vector<12x8xf32> -> vector<12x8xf32>
    %1151 = tpu.concatenate %1096, %1114, %1132, %1150 in 1 : vector<12x8xf32>, vector<12x8xf32>, vector<12x8xf32>, vector<12x8xf32> -> vector<12x32xf32>
    %c0_463 = arith.constant 0 : index
    %c0_464 = arith.constant 0 : index
    %1152 = vector.load %arg24[%c0_463, %c0_464] : memref<32x32xf32, #tpu.memory_space<vmem>>, vector<32x32xf32>
    %cst_465 = arith.constant dense<0.000000e+00> : vector<12x32xf32>
    %1153 = tpu.matmul %1151, %1152, %cst_465 {dimension_numbers = #tpu.dot_dimension_numbers<[1], [0], [0], [1], [0, 0, 1, 1], [], []>} : vector<12x32xf32>, vector<32x32xf32>, vector<12x32xf32> -> vector<12x32xf32>
    %c0_466 = arith.constant 0 : index
    %c0_467 = arith.constant 0 : index
    %1154 = vector.load %arg25[%c0_466, %c0_467] : memref<1x32xf32, #tpu.memory_space<vmem>>, vector<1x32xf32>
    %1155 = vector.broadcast %1154 : vector<1x32xf32> to vector<12x32xf32>
    %1156 = arith.addf %1153, %1155 : vector<12x32xf32>
    %1157 = arith.addf %1051, %1156 : vector<12x32xf32>
    %c0_468 = arith.constant 0 : index
    %c0_469 = arith.constant 0 : index
    %1158 = vector.load %arg26[%c0_468, %c0_469] : memref<1x32xf32, #tpu.memory_space<vmem>>, vector<1x32xf32>
    %c0_470 = arith.constant 0 : index
    %c0_471 = arith.constant 0 : index
    %1159 = vector.load %arg27[%c0_470, %c0_471] : memref<1x32xf32, #tpu.memory_space<vmem>>, vector<1x32xf32>
    %cst_472 = arith.constant dense<0.000000e+00> : vector<12xf32>
    %1160 = vector.multi_reduction <add>, %1157, %cst_472 [1] : vector<12x32xf32> to vector<12xf32>
    %1161 = vector.shape_cast %1160 : vector<12xf32> to vector<12x1xf32>
    %cst_473 = arith.constant 3.200000e+01 : f32
    %1162 = vector.broadcast %cst_473 : f32 to vector<12x1xf32>
    %1163 = arith.divf %1161, %1162 : vector<12x1xf32>
    %1164 = vector.broadcast %1163 : vector<12x1xf32> to vector<12x32xf32>
    %1165 = arith.subf %1157, %1164 : vector<12x32xf32>
    %1166 = arith.mulf %1165, %1165 : vector<12x32xf32>
    %cst_474 = arith.constant dense<0.000000e+00> : vector<12xf32>
    %1167 = vector.multi_reduction <add>, %1166, %cst_474 [1] : vector<12x32xf32> to vector<12xf32>
    %1168 = vector.shape_cast %1167 : vector<12xf32> to vector<12x1xf32>
    %cst_475 = arith.constant 3.200000e+01 : f32
    %1169 = vector.broadcast %cst_475 : f32 to vector<12x1xf32>
    %1170 = arith.divf %1168, %1169 : vector<12x1xf32>
    %cst_476 = arith.constant 9.99999974E-6 : f32
    %1171 = vector.broadcast %cst_476 : f32 to vector<12x1xf32>
    %1172 = arith.addf %1170, %1171 : vector<12x1xf32>
    %1173 = math.rsqrt %1172 : vector<12x1xf32>
    %1174 = vector.broadcast %1173 : vector<12x1xf32> to vector<12x32xf32>
    %1175 = arith.mulf %1165, %1174 : vector<12x32xf32>
    %1176 = vector.broadcast %1158 : vector<1x32xf32> to vector<12x32xf32>
    %1177 = arith.mulf %1175, %1176 : vector<12x32xf32>
    %1178 = vector.broadcast %1159 : vector<1x32xf32> to vector<12x32xf32>
    %1179 = arith.addf %1177, %1178 : vector<12x32xf32>
    %c0_477 = arith.constant 0 : index
    %c0_478 = arith.constant 0 : index
    %1180 = vector.load %arg28[%c0_477, %c0_478] : memref<32x64xf32, #tpu.memory_space<vmem>>, vector<32x64xf32>
    %cst_479 = arith.constant dense<0.000000e+00> : vector<12x64xf32>
    %1181 = tpu.matmul %1179, %1180, %cst_479 {dimension_numbers = #tpu.dot_dimension_numbers<[1], [0], [0], [1], [0, 0, 1, 1], [], []>} : vector<12x32xf32>, vector<32x64xf32>, vector<12x64xf32> -> vector<12x64xf32>
    %c0_480 = arith.constant 0 : index
    %c0_481 = arith.constant 0 : index
    %1182 = vector.load %arg29[%c0_480, %c0_481] : memref<1x64xf32, #tpu.memory_space<vmem>>, vector<1x64xf32>
    %1183 = vector.broadcast %1182 : vector<1x64xf32> to vector<12x64xf32>
    %1184 = arith.addf %1181, %1183 : vector<12x64xf32>
    %cst_482 = arith.constant 5.000000e-01 : f32
    %1185 = vector.broadcast %cst_482 : f32 to vector<12x64xf32>
    %1186 = arith.mulf %1185, %1184 : vector<12x64xf32>
    %cst_483 = arith.constant 0.707106769 : f32
    %1187 = vector.broadcast %cst_483 : f32 to vector<12x64xf32>
    %1188 = arith.mulf %1184, %1187 : vector<12x64xf32>
    %1189 = math.absf %1188 : vector<12x64xf32>
    %cst_484 = arith.constant 0.327591091 : f32
    %1190 = vector.broadcast %cst_484 : f32 to vector<12x64xf32>
    %1191 = arith.mulf %1190, %1189 : vector<12x64xf32>
    %cst_485 = arith.constant 1.000000e+00 : f32
    %1192 = vector.broadcast %cst_485 : f32 to vector<12x64xf32>
    %1193 = arith.addf %1192, %1191 : vector<12x64xf32>
    %cst_486 = arith.constant 1.000000e+00 : f32
    %1194 = vector.broadcast %cst_486 : f32 to vector<12x64xf32>
    %1195 = arith.divf %1194, %1193 : vector<12x64xf32>
    %cst_487 = arith.constant 1.06140542 : f32
    %1196 = vector.broadcast %cst_487 : f32 to vector<12x64xf32>
    %1197 = arith.mulf %1196, %1195 : vector<12x64xf32>
    %cst_488 = arith.constant -1.45315206 : f32
    %1198 = vector.broadcast %cst_488 : f32 to vector<12x64xf32>
    %1199 = arith.addf %1197, %1198 : vector<12x64xf32>
    %1200 = arith.mulf %1199, %1195 : vector<12x64xf32>
    %cst_489 = arith.constant 1.42141378 : f32
    %1201 = vector.broadcast %cst_489 : f32 to vector<12x64xf32>
    %1202 = arith.addf %1200, %1201 : vector<12x64xf32>
    %1203 = arith.mulf %1202, %1195 : vector<12x64xf32>
    %cst_490 = arith.constant -0.284496725 : f32
    %1204 = vector.broadcast %cst_490 : f32 to vector<12x64xf32>
    %1205 = arith.addf %1203, %1204 : vector<12x64xf32>
    %1206 = arith.mulf %1205, %1195 : vector<12x64xf32>
    %cst_491 = arith.constant 0.254829586 : f32
    %1207 = vector.broadcast %cst_491 : f32 to vector<12x64xf32>
    %1208 = arith.addf %1206, %1207 : vector<12x64xf32>
    %1209 = arith.mulf %1208, %1195 : vector<12x64xf32>
    %cst_492 = arith.constant 0.000000e+00 : f32
    %1210 = vector.broadcast %cst_492 : f32 to vector<12x64xf32>
    %1211 = arith.subf %1210, %1189 : vector<12x64xf32>
    %1212 = arith.mulf %1211, %1189 : vector<12x64xf32>
    %1213 = math.exp %1212 : vector<12x64xf32>
    %1214 = arith.mulf %1209, %1213 : vector<12x64xf32>
    %cst_493 = arith.constant 1.000000e+00 : f32
    %1215 = vector.broadcast %cst_493 : f32 to vector<12x64xf32>
    %1216 = arith.subf %1215, %1214 : vector<12x64xf32>
    %cst_494 = arith.constant 0.000000e+00 : f32
    %1217 = vector.broadcast %cst_494 : f32 to vector<12x64xf32>
    %1218 = arith.cmpf oge, %1188, %1217 : vector<12x64xf32>
    %cst_495 = arith.constant 0.000000e+00 : f32
    %1219 = vector.broadcast %cst_495 : f32 to vector<12x64xf32>
    %1220 = arith.subf %1219, %1216 : vector<12x64xf32>
    %1221 = arith.select %1218, %1216, %1220 : vector<12x64xi1>, vector<12x64xf32>
    %cst_496 = arith.constant 1.000000e+00 : f32
    %1222 = vector.broadcast %cst_496 : f32 to vector<12x64xf32>
    %1223 = arith.addf %1222, %1221 : vector<12x64xf32>
    %1224 = arith.mulf %1186, %1223 : vector<12x64xf32>
    %c0_497 = arith.constant 0 : index
    %c0_498 = arith.constant 0 : index
    %1225 = vector.load %arg30[%c0_497, %c0_498] : memref<64x32xf32, #tpu.memory_space<vmem>>, vector<64x32xf32>
    %cst_499 = arith.constant dense<0.000000e+00> : vector<12x32xf32>
    %1226 = tpu.matmul %1224, %1225, %cst_499 {dimension_numbers = #tpu.dot_dimension_numbers<[1], [0], [0], [1], [0, 0, 1, 1], [], []>} : vector<12x64xf32>, vector<64x32xf32>, vector<12x32xf32> -> vector<12x32xf32>
    %c0_500 = arith.constant 0 : index
    %c0_501 = arith.constant 0 : index
    %1227 = vector.load %arg31[%c0_500, %c0_501] : memref<1x32xf32, #tpu.memory_space<vmem>>, vector<1x32xf32>
    %1228 = vector.broadcast %1227 : vector<1x32xf32> to vector<12x32xf32>
    %1229 = arith.addf %1226, %1228 : vector<12x32xf32>
    %1230 = arith.addf %1157, %1229 : vector<12x32xf32>
    %c0_502 = arith.constant 0 : index
    %c0_503 = arith.constant 0 : index
    %1231 = vector.load %arg32[%c0_502, %c0_503] : memref<1x32xf32, #tpu.memory_space<vmem>>, vector<1x32xf32>
    %c0_504 = arith.constant 0 : index
    %c0_505 = arith.constant 0 : index
    %1232 = vector.load %arg33[%c0_504, %c0_505] : memref<1x32xf32, #tpu.memory_space<vmem>>, vector<1x32xf32>
    %cst_506 = arith.constant dense<0.000000e+00> : vector<12xf32>
    %1233 = vector.multi_reduction <add>, %1230, %cst_506 [1] : vector<12x32xf32> to vector<12xf32>
    %1234 = vector.shape_cast %1233 : vector<12xf32> to vector<12x1xf32>
    %cst_507 = arith.constant 3.200000e+01 : f32
    %1235 = vector.broadcast %cst_507 : f32 to vector<12x1xf32>
    %1236 = arith.divf %1234, %1235 : vector<12x1xf32>
    %1237 = vector.broadcast %1236 : vector<12x1xf32> to vector<12x32xf32>
    %1238 = arith.subf %1230, %1237 : vector<12x32xf32>
    %1239 = arith.mulf %1238, %1238 : vector<12x32xf32>
    %cst_508 = arith.constant dense<0.000000e+00> : vector<12xf32>
    %1240 = vector.multi_reduction <add>, %1239, %cst_508 [1] : vector<12x32xf32> to vector<12xf32>
    %1241 = vector.shape_cast %1240 : vector<12xf32> to vector<12x1xf32>
    %cst_509 = arith.constant 3.200000e+01 : f32
    %1242 = vector.broadcast %cst_509 : f32 to vector<12x1xf32>
    %1243 = arith.divf %1241, %1242 : vector<12x1xf32>
    %cst_510 = arith.constant 9.99999974E-6 : f32
    %1244 = vector.broadcast %cst_510 : f32 to vector<12x1xf32>
    %1245 = arith.addf %1243, %1244 : vector<12x1xf32>
    %1246 = math.rsqrt %1245 : vector<12x1xf32>
    %1247 = vector.broadcast %1246 : vector<12x1xf32> to vector<12x32xf32>
    %1248 = arith.mulf %1238, %1247 : vector<12x32xf32>
    %1249 = vector.broadcast %1231 : vector<1x32xf32> to vector<12x32xf32>
    %1250 = arith.mulf %1248, %1249 : vector<12x32xf32>
    %1251 = vector.broadcast %1232 : vector<1x32xf32> to vector<12x32xf32>
    %1252 = arith.addf %1250, %1251 : vector<12x32xf32>
    %c0_511 = arith.constant 0 : index
    %c0_512 = arith.constant 0 : index
    %1253 = vector.load %arg35[%c0_511, %c0_512] : memref<1x64xf32, #tpu.memory_space<vmem>>, vector<1x64xf32>
    %1254 = vector.extract_strided_slice %1252 {offsets = [0, 0], sizes = [2, 32], strides = [1, 1]} : vector<12x32xf32> to vector<2x32xf32>
    %c0_513 = arith.constant 0 : index
    %c0_514 = arith.constant 0 : index
    %c0_515 = arith.constant 0 : index
    %1255 = vector.load %arg34[%c0_513, %c0_514, %c0_515] : memref<6x32x64xf32, #tpu.memory_space<vmem>>, vector<1x32x64xf32>
    %1256 = vector.shape_cast %1255 : vector<1x32x64xf32> to vector<32x64xf32>
    %cst_516 = arith.constant dense<0.000000e+00> : vector<2x64xf32>
    %1257 = tpu.matmul %1254, %1256, %cst_516 {dimension_numbers = #tpu.dot_dimension_numbers<[1], [0], [0], [1], [0, 0, 1, 1], [], []>} : vector<2x32xf32>, vector<32x64xf32>, vector<2x64xf32> -> vector<2x64xf32>
    %1258 = vector.broadcast %1253 : vector<1x64xf32> to vector<2x64xf32>
    %1259 = arith.addf %1258, %1257 : vector<2x64xf32>
    %1260 = vector.extract_strided_slice %1252 {offsets = [2, 0], sizes = [2, 32], strides = [1, 1]} : vector<12x32xf32> to vector<2x32xf32>
    %c1_517 = arith.constant 1 : index
    %c0_518 = arith.constant 0 : index
    %c0_519 = arith.constant 0 : index
    %1261 = vector.load %arg34[%c1_517, %c0_518, %c0_519] : memref<6x32x64xf32, #tpu.memory_space<vmem>>, vector<1x32x64xf32>
    %1262 = vector.shape_cast %1261 : vector<1x32x64xf32> to vector<32x64xf32>
    %cst_520 = arith.constant dense<0.000000e+00> : vector<2x64xf32>
    %1263 = tpu.matmul %1260, %1262, %cst_520 {dimension_numbers = #tpu.dot_dimension_numbers<[1], [0], [0], [1], [0, 0, 1, 1], [], []>} : vector<2x32xf32>, vector<32x64xf32>, vector<2x64xf32> -> vector<2x64xf32>
    %1264 = arith.addf %1259, %1263 : vector<2x64xf32>
    %1265 = vector.extract_strided_slice %1252 {offsets = [4, 0], sizes = [2, 32], strides = [1, 1]} : vector<12x32xf32> to vector<2x32xf32>
    %c2_521 = arith.constant 2 : index
    %c0_522 = arith.constant 0 : index
    %c0_523 = arith.constant 0 : index
    %1266 = vector.load %arg34[%c2_521, %c0_522, %c0_523] : memref<6x32x64xf32, #tpu.memory_space<vmem>>, vector<1x32x64xf32>
    %1267 = vector.shape_cast %1266 : vector<1x32x64xf32> to vector<32x64xf32>
    %cst_524 = arith.constant dense<0.000000e+00> : vector<2x64xf32>
    %1268 = tpu.matmul %1265, %1267, %cst_524 {dimension_numbers = #tpu.dot_dimension_numbers<[1], [0], [0], [1], [0, 0, 1, 1], [], []>} : vector<2x32xf32>, vector<32x64xf32>, vector<2x64xf32> -> vector<2x64xf32>
    %1269 = arith.addf %1264, %1268 : vector<2x64xf32>
    %1270 = vector.extract_strided_slice %1252 {offsets = [6, 0], sizes = [2, 32], strides = [1, 1]} : vector<12x32xf32> to vector<2x32xf32>
    %c3 = arith.constant 3 : index
    %c0_525 = arith.constant 0 : index
    %c0_526 = arith.constant 0 : index
    %1271 = vector.load %arg34[%c3, %c0_525, %c0_526] : memref<6x32x64xf32, #tpu.memory_space<vmem>>, vector<1x32x64xf32>
    %1272 = vector.shape_cast %1271 : vector<1x32x64xf32> to vector<32x64xf32>
    %cst_527 = arith.constant dense<0.000000e+00> : vector<2x64xf32>
    %1273 = tpu.matmul %1270, %1272, %cst_527 {dimension_numbers = #tpu.dot_dimension_numbers<[1], [0], [0], [1], [0, 0, 1, 1], [], []>} : vector<2x32xf32>, vector<32x64xf32>, vector<2x64xf32> -> vector<2x64xf32>
    %1274 = arith.addf %1269, %1273 : vector<2x64xf32>
    %1275 = vector.extract_strided_slice %1252 {offsets = [8, 0], sizes = [2, 32], strides = [1, 1]} : vector<12x32xf32> to vector<2x32xf32>
    %c4 = arith.constant 4 : index
    %c0_528 = arith.constant 0 : index
    %c0_529 = arith.constant 0 : index
    %1276 = vector.load %arg34[%c4, %c0_528, %c0_529] : memref<6x32x64xf32, #tpu.memory_space<vmem>>, vector<1x32x64xf32>
    %1277 = vector.shape_cast %1276 : vector<1x32x64xf32> to vector<32x64xf32>
    %cst_530 = arith.constant dense<0.000000e+00> : vector<2x64xf32>
    %1278 = tpu.matmul %1275, %1277, %cst_530 {dimension_numbers = #tpu.dot_dimension_numbers<[1], [0], [0], [1], [0, 0, 1, 1], [], []>} : vector<2x32xf32>, vector<32x64xf32>, vector<2x64xf32> -> vector<2x64xf32>
    %1279 = arith.addf %1274, %1278 : vector<2x64xf32>
    %1280 = vector.extract_strided_slice %1252 {offsets = [10, 0], sizes = [2, 32], strides = [1, 1]} : vector<12x32xf32> to vector<2x32xf32>
    %c5 = arith.constant 5 : index
    %c0_531 = arith.constant 0 : index
    %c0_532 = arith.constant 0 : index
    %1281 = vector.load %arg34[%c5, %c0_531, %c0_532] : memref<6x32x64xf32, #tpu.memory_space<vmem>>, vector<1x32x64xf32>
    %1282 = vector.shape_cast %1281 : vector<1x32x64xf32> to vector<32x64xf32>
    %cst_533 = arith.constant dense<0.000000e+00> : vector<2x64xf32>
    %1283 = tpu.matmul %1280, %1282, %cst_533 {dimension_numbers = #tpu.dot_dimension_numbers<[1], [0], [0], [1], [0, 0, 1, 1], [], []>} : vector<2x32xf32>, vector<32x64xf32>, vector<2x64xf32> -> vector<2x64xf32>
    %1284 = arith.addf %1279, %1283 : vector<2x64xf32>
    %c0_534 = arith.constant 0 : index
    %c0_535 = arith.constant 0 : index
    %1285 = vector.load %arg36[%c0_534, %c0_535] : memref<1x64xf32, #tpu.memory_space<vmem>>, vector<1x64xf32>
    %c0_536 = arith.constant 0 : index
    %c0_537 = arith.constant 0 : index
    %1286 = vector.load %arg37[%c0_536, %c0_537] : memref<1x64xf32, #tpu.memory_space<vmem>>, vector<1x64xf32>
    %cst_538 = arith.constant dense<0.000000e+00> : vector<2xf32>
    %1287 = vector.multi_reduction <add>, %1284, %cst_538 [1] : vector<2x64xf32> to vector<2xf32>
    %1288 = vector.shape_cast %1287 : vector<2xf32> to vector<2x1xf32>
    %cst_539 = arith.constant 6.400000e+01 : f32
    %1289 = vector.broadcast %cst_539 : f32 to vector<2x1xf32>
    %1290 = arith.divf %1288, %1289 : vector<2x1xf32>
    %1291 = vector.broadcast %1290 : vector<2x1xf32> to vector<2x64xf32>
    %1292 = arith.subf %1284, %1291 : vector<2x64xf32>
    %1293 = arith.mulf %1292, %1292 : vector<2x64xf32>
    %cst_540 = arith.constant dense<0.000000e+00> : vector<2xf32>
    %1294 = vector.multi_reduction <add>, %1293, %cst_540 [1] : vector<2x64xf32> to vector<2xf32>
    %1295 = vector.shape_cast %1294 : vector<2xf32> to vector<2x1xf32>
    %cst_541 = arith.constant 6.400000e+01 : f32
    %1296 = vector.broadcast %cst_541 : f32 to vector<2x1xf32>
    %1297 = arith.divf %1295, %1296 : vector<2x1xf32>
    %cst_542 = arith.constant 9.99999974E-6 : f32
    %1298 = vector.broadcast %cst_542 : f32 to vector<2x1xf32>
    %1299 = arith.addf %1297, %1298 : vector<2x1xf32>
    %1300 = math.rsqrt %1299 : vector<2x1xf32>
    %1301 = vector.broadcast %1300 : vector<2x1xf32> to vector<2x64xf32>
    %1302 = arith.mulf %1292, %1301 : vector<2x64xf32>
    %1303 = vector.broadcast %1285 : vector<1x64xf32> to vector<2x64xf32>
    %1304 = arith.mulf %1302, %1303 : vector<2x64xf32>
    %1305 = vector.broadcast %1286 : vector<1x64xf32> to vector<2x64xf32>
    %1306 = arith.addf %1304, %1305 : vector<2x64xf32>
    %cst_543 = arith.constant 0.000000e+00 : f32
    %1307 = vector.broadcast %cst_543 : f32 to vector<2x64xf32>
    %1308 = arith.maximumf %1306, %1307 : vector<2x64xf32>
    %c0_544 = arith.constant 0 : index
    %c0_545 = arith.constant 0 : index
    %1309 = vector.load %arg38[%c0_544, %c0_545] : memref<64x32xf32, #tpu.memory_space<vmem>>, vector<64x32xf32>
    %cst_546 = arith.constant dense<0.000000e+00> : vector<2x32xf32>
    %1310 = tpu.matmul %1308, %1309, %cst_546 {dimension_numbers = #tpu.dot_dimension_numbers<[1], [0], [0], [1], [0, 0, 1, 1], [], []>} : vector<2x64xf32>, vector<64x32xf32>, vector<2x32xf32> -> vector<2x32xf32>
    %c0_547 = arith.constant 0 : index
    %c0_548 = arith.constant 0 : index
    %1311 = vector.load %arg39[%c0_547, %c0_548] : memref<1x32xf32, #tpu.memory_space<vmem>>, vector<1x32xf32>
    %1312 = vector.broadcast %1311 : vector<1x32xf32> to vector<2x32xf32>
    %1313 = arith.addf %1310, %1312 : vector<2x32xf32>
    %c0_549 = arith.constant 0 : index
    %c0_550 = arith.constant 0 : index
    %1314 = vector.load %arg40[%c0_549, %c0_550] : memref<1x32xf32, #tpu.memory_space<vmem>>, vector<1x32xf32>
    %c0_551 = arith.constant 0 : index
    %c0_552 = arith.constant 0 : index
    %1315 = vector.load %arg41[%c0_551, %c0_552] : memref<1x32xf32, #tpu.memory_space<vmem>>, vector<1x32xf32>
    %cst_553 = arith.constant dense<0.000000e+00> : vector<2xf32>
    %1316 = vector.multi_reduction <add>, %1313, %cst_553 [1] : vector<2x32xf32> to vector<2xf32>
    %1317 = vector.shape_cast %1316 : vector<2xf32> to vector<2x1xf32>
    %cst_554 = arith.constant 3.200000e+01 : f32
    %1318 = vector.broadcast %cst_554 : f32 to vector<2x1xf32>
    %1319 = arith.divf %1317, %1318 : vector<2x1xf32>
    %1320 = vector.broadcast %1319 : vector<2x1xf32> to vector<2x32xf32>
    %1321 = arith.subf %1313, %1320 : vector<2x32xf32>
    %1322 = arith.mulf %1321, %1321 : vector<2x32xf32>
    %cst_555 = arith.constant dense<0.000000e+00> : vector<2xf32>
    %1323 = vector.multi_reduction <add>, %1322, %cst_555 [1] : vector<2x32xf32> to vector<2xf32>
    %1324 = vector.shape_cast %1323 : vector<2xf32> to vector<2x1xf32>
    %cst_556 = arith.constant 3.200000e+01 : f32
    %1325 = vector.broadcast %cst_556 : f32 to vector<2x1xf32>
    %1326 = arith.divf %1324, %1325 : vector<2x1xf32>
    %cst_557 = arith.constant 9.99999974E-6 : f32
    %1327 = vector.broadcast %cst_557 : f32 to vector<2x1xf32>
    %1328 = arith.addf %1326, %1327 : vector<2x1xf32>
    %1329 = math.rsqrt %1328 : vector<2x1xf32>
    %1330 = vector.broadcast %1329 : vector<2x1xf32> to vector<2x32xf32>
    %1331 = arith.mulf %1321, %1330 : vector<2x32xf32>
    %1332 = vector.broadcast %1314 : vector<1x32xf32> to vector<2x32xf32>
    %1333 = arith.mulf %1331, %1332 : vector<2x32xf32>
    %1334 = vector.broadcast %1315 : vector<1x32xf32> to vector<2x32xf32>
    %1335 = arith.addf %1333, %1334 : vector<2x32xf32>
    %cst_558 = arith.constant 0.000000e+00 : f32
    %1336 = vector.broadcast %cst_558 : f32 to vector<2x32xf32>
    %1337 = arith.maximumf %1335, %1336 : vector<2x32xf32>
    %c0_559 = arith.constant 0 : index
    %c0_560 = arith.constant 0 : index
    %1338 = vector.load %arg42[%c0_559, %c0_560] : memref<32x2xf32, #tpu.memory_space<vmem>>, vector<32x2xf32>
    %cst_561 = arith.constant dense<0.000000e+00> : vector<2x2xf32>
    %1339 = tpu.matmul %1337, %1338, %cst_561 {dimension_numbers = #tpu.dot_dimension_numbers<[1], [0], [0], [1], [0, 0, 1, 1], [], []>} : vector<2x32xf32>, vector<32x2xf32>, vector<2x2xf32> -> vector<2x2xf32>
    %c0_562 = arith.constant 0 : index
    %c0_563 = arith.constant 0 : index
    %1340 = vector.load %arg43[%c0_562, %c0_563] : memref<1x2xf32, #tpu.memory_space<vmem>>, vector<1x2xf32>
    %1341 = vector.broadcast %1340 : vector<1x2xf32> to vector<2x2xf32>
    %1342 = arith.addf %1339, %1341 : vector<2x2xf32>
    %c0_564 = arith.constant 0 : index
    %c0_565 = arith.constant 0 : index
    %1343 = vector.load %arg44[%c0_564, %c0_565] : memref<2x2xf32, #tpu.memory_space<vmem>>, vector<2x2xf32>
    tpu.vector_store %arg44[%c0_564, %c0_565], %1342 {strides = array<i32>} : memref<2x2xf32, #tpu.memory_space<vmem>>, vector<2x2xf32>,
    return
  }
}

</mosaic_0001>

<bundles_post_ra>
// kernel: tabkanet_forward.1
= control target key start
LH: loop header
LB: loop body
LE: loop exit
PB: predicated region body
PF: predicated region fallthrough
CT: control target
= control target key end

     0   :  { %s6616_s6 = smov 1   ;;  %s6617_s10 = smov 2   ;;  %s7978_s0 = inlined_call_operand.smem [shape: u32[45], index: -1, kind: input, shape index: {}] }
   0x1   :  { %s6693_s5 = sld [smem:[%s7978_s0]]   ;;  %s6618_s14 = smov 3  }
   0x2   :  { %s6698_s9 = sld [smem:[%s7978_s0 + %s6616_s6]]   ;;  %s6619_s18 = smov 4  }
   0x3   :  { %s6703_s13 = sld [smem:[%s7978_s0 + %s6617_s10]]   ;;  %s6620_s22 = smov 5  }
   0x4   :  { %s6708_s17 = sld [smem:[%s7978_s0 + %s6618_s14]]   ;;  %s6621_s26 = smov 6  }
   0x5   :  { %s6713_s21 = sld [smem:[%s7978_s0 + %s6619_s18]]   ;;  %s6622_s30 = smov 7  }
   0x6   :  { %s6718_s25 = sld [smem:[%s7978_s0 + %s6620_s22]]   ;;  %s6623_s4 = smov 8  }
   0x7   :  { %s6723_s29 = sld [smem:[%s7978_s0 + %s6621_s26]]   ;;  %s6624_s10 = smov 9  }
   0x8   :  { %s6728_s3 = sld [smem:[%s7978_s0 + %s6622_s30]]   ;;  %s6625_s15 = smov 10  }
   0x9   :  { %s6733_s8 = sld [smem:[%s7978_s0 + %s6623_s4]]   ;;  %s6626_s20 = smov 11  }
   0xa   :  { %s6738_s14 = sld [smem:[%s7978_s0 + %s6624_s10]]   ;;  %s6627_s26 = smov 12  }
   0xb   :  { %s6743_s19 = sld [smem:[%s7978_s0 + %s6625_s15]]   ;;  %s6628_s1 = smov 13  }
   0xc   :  { %s6748_s24 = sld [smem:[%s7978_s0 + %s6626_s20]]   ;;  %s6629_s7 = smov 14  }
   0xd   :  { %s6753_s30 = sld [smem:[%s7978_s0 + %s6627_s26]]   ;;  %s6630_s15 = smov 15  }
   0xe   :  { %s6758_s6 = sld [smem:[%s7978_s0 + %s6628_s1]]   ;;  %s6631_s22 = smov 16  }
   0xf   :  { %s6763_s12 = sld [smem:[%s7978_s0 + %s6629_s7]]   ;;  %s6632_s28 = smov 17  }
  0x10   :  { %s6768_s20 = sld [smem:[%s7978_s0 + %s6630_s15]]   ;;  %s6633_s7 = smov 18  }
  0x11   :  { %s6773_s27 = sld [smem:[%s7978_s0 + %s6631_s22]]   ;;  %s6634_s15 = smov 19  }
  0x12   :  { %s6778_s4 = sld [smem:[%s7978_s0 + %s6632_s28]]   ;;  %s6635_s22 = smov 20  }
  0x13   :  { %s6636_s28 = smov 21  }
  0x15   :  { %7987 = sst [smem:[#allocation5_spill]] %s6763_s12 }
  0x16   :  { %7988 = sst [smem:[#allocation6_spill]] %s6768_s20 }
  0x17   :  { %7989 = sst [smem:[#allocation7_spill]] %s6773_s27 }
  0x18   :  { %7990 = sst [smem:[#allocation8_spill]] %s6778_s4 }
  0x19   :  { %s6783_s12 = sld [smem:[%s7978_s0 + %s6633_s7]]   ;;  %s6637_s7 = smov 22  }
  0x1a   :  { %s6788_s20 = sld [smem:[%s7978_s0 + %s6634_s15]]   ;;  %s6638_s15 = smov 23  }
  0x1b   :  { %s6793_s27 = sld [smem:[%s7978_s0 + %s6635_s22]]   ;;  %s6639_s22 = smov 24  }
  0x1c   :  { %s6798_s4 = sld [smem:[%s7978_s0 + %s6636_s28]]   ;;  %s6640_s28 = smov 25  }
  0x1f   :  { %7991 = sst [smem:[#allocation9_spill]] %s6783_s12 }
  0x20   :  { %7992 = sst [smem:[#allocation10_spill]] %s6788_s20 }
  0x21   :  { %7993 = sst [smem:[#allocation11_spill]] %s6793_s27 }
  0x22   :  { %7994 = sst [smem:[#allocation12_spill]] %s6798_s4 }
  0x23   :  { %s6803_s12 = sld [smem:[%s7978_s0 + %s6637_s7]]   ;;  %s6641_s7 = smov 26  }
  0x24   :  { %s6808_s20 = sld [smem:[%s7978_s0 + %s6638_s15]]   ;;  %s6642_s15 = smov 27  }
  0x25   :  { %s6813_s27 = sld [smem:[%s7978_s0 + %s6639_s22]]   ;;  %s6643_s22 = smov 28  }
  0x26   :  { %s6818_s4 = sld [smem:[%s7978_s0 + %s6640_s28]]   ;;  %s6644_s28 = smov 29  }
  0x29   :  { %7995 = sst [smem:[#allocation13_spill]] %s6803_s12 }
  0x2a   :  { %7996 = sst [smem:[#allocation14_spill]] %s6808_s20 }
  0x2b   :  { %7997 = sst [smem:[#allocation15_spill]] %s6813_s27 }
  0x2c   :  { %7998 = sst [smem:[#allocation16_spill]] %s6818_s4 }
  0x2d   :  { %s6823_s12 = sld [smem:[%s7978_s0 + %s6641_s7]]   ;;  %s6645_s7 = smov 30  }
  0x2e   :  { %s6828_s20 = sld [smem:[%s7978_s0 + %s6642_s15]]   ;;  %s6646_s15 = smov 31  }
  0x2f   :  { %s6833_s27 = sld [smem:[%s7978_s0 + %s6643_s22]]   ;;  %s6647_s22 = smov 32  }
  0x30   :  { %s6838_s4 = sld [smem:[%s7978_s0 + %s6644_s28]]   ;;  %s6648_s28 = smov 33  }
  0x33   :  { %7999 = sst [smem:[#allocation17_spill]] %s6823_s12 }
  0x34   :  { %8000 = sst [smem:[#allocation18_spill]] %s6828_s20 }
  0x35   :  { %8001 = sst [smem:[#allocation19_spill]] %s6833_s27 }
  0x36   :  { %8002 = sst [smem:[#allocation20_spill]] %s6838_s4 }
  0x37   :  { %s6843_s12 = sld [smem:[%s7978_s0 + %s6645_s7]]   ;;  %s6649_s7 = smov 34  }
  0x38   :  { %s6848_s20 = sld [smem:[%s7978_s0 + %s6646_s15]]   ;;  %s6650_s15 = smov 35  }
  0x39   :  { %s6853_s27 = sld [smem:[%s7978_s0 + %s6647_s22]]   ;;  %s6651_s22 = smov 36  }
  0x3a   :  { %s6858_s4 = sld [smem:[%s7978_s0 + %s6648_s28]]   ;;  %s6652_s28 = smov 37  }
  0x3d   :  { %8003 = sst [smem:[#allocation21_spill]] %s6843_s12 }
  0x3e   :  { %8004 = sst [smem:[#allocation22_spill]] %s6848_s20 }
  0x3f   :  { %8005 = sst [smem:[#allocation23_spill]] %s6853_s27 }
  0x40   :  { %8006 = sst [smem:[#allocation24_spill]] %s6858_s4 }
  0x41   :  { %s6863_s12 = sld [smem:[%s7978_s0 + %s6649_s7]]   ;;  %s6653_s7 = smov 38  }
  0x42   :  { %s6868_s20 = sld [smem:[%s7978_s0 + %s6650_s15]]   ;;  %s6654_s15 = smov 39  }
  0x43   :  { %s6873_s27 = sld [smem:[%s7978_s0 + %s6651_s22]]   ;;  %s6655_s22 = smov 40  }
  0x44   :  { %s6878_s4 = sld [smem:[%s7978_s0 + %s6652_s28]]   ;;  %s6656_s28 = smov 41  }
  0x47   :  { %8007 = sst [smem:[#allocation25_spill]] %s6863_s12 }
  0x48   :  { %8008 = sst [smem:[#allocation26_spill]] %s6868_s20 }
  0x49   :  { %8009 = sst [smem:[#allocation27_spill]] %s6873_s27 }
  0x4a   :  { %8010 = sst [smem:[#allocation28_spill]] %s6878_s4 }
  0x4b   :  { %s6883_s12 = sld [smem:[%s7978_s0 + %s6653_s7]]   ;;  %s6657_s7 = smov 42  }
  0x4c   :  { %s6888_s20 = sld [smem:[%s7978_s0 + %s6654_s15]]   ;;  %s6658_s15 = smov 43  }
  0x4d   :  { %s6893_s27 = sld [smem:[%s7978_s0 + %s6655_s22]]   ;;  %s6659_s22 = smov 44  }
  0x4e   :  { %s6898_s4 = sld [smem:[%s7978_s0 + %s6656_s28]]  }
  0x51   :  { %8011 = sst [smem:[#allocation29_spill]] %s6883_s12 }
  0x52   :  { %8012 = sst [smem:[#allocation30_spill]] %s6888_s20 }
  0x53   :  { %8013 = sst [smem:[#allocation31_spill]] %s6893_s27 }
  0x54   :  { %s6903_s12 = sld [smem:[%s7978_s0 + %s6657_s7]]  }
  0x55   :  { %s6908_s20 = sld [smem:[%s7978_s0 + %s6658_s15]]  }
  0x56   :  { %s6913_s27 = sld [smem:[%s7978_s0 + %s6659_s22]]  }
  0x57   :  { %v183_v0 = vld [vmem:[%s6698_s9] sm:$0x3]  ;;  %vm186_vm0 = vcmask 17408  }
  0x58   :  { %94 = vsyncpa [#allocation3], 0  ;;  %v187_v1 = vsel %vm186_vm0, %v183_v0, 0.0  ;;  %v6660_v7 = vmov 0.0   ;;  %v463_v8 = vld [vmem:[%s6713_s21] sm:$0x7] }
  0x59   :  { %188 = vadd.xlane.f32.xlu0 %v187_v1  ;;  %6027 = vmatprep.subr.mxu1 %v6660_v7  ;;  %vm544_vm1 = vcmask 1042432   ;;  %vm6661_vm2 = vmmov 0   ;;  %v5312_v13 = vld [vmem:[%s6703_s13] ss:$0 sm:$0xff]  ;;  %s6662_s0 = smov 9   ;;  %s6663_s9 = smov 3  }
  0x5a   :  { %6018 = vmatprep.subr.mxu0 %v6660_v7  ;;  %6028 = vmatpush3.msk.msra.mxu1 %vm544_vm1, %v463_v8  ;;  %v5313_v15 = vld [vmem:[%s6708_s17] ss:$0 sm:$0xff]  ;;  %s6664_s13 = smov 6   ;;  %s6665_s17 = smov 12  }
  0x5b   :  { %6029 = vmatprep.mubr.msk.f32.mxu1 %vm6661_vm2, %v6660_v7  ;;  %6024 = vmatprep.mubr.msk.f32.mxu0 %vm6661_vm2, %v6660_v7  ;;  %s6666_s21 = smov 15   ;;  %s6668_s28 = smov 21  }
  0x5c   :  { %s6669_s1 = smov 64   ;;  %s6678_s2 = smov 72  }
  0x5d   :  { %s6679_s7 = smov 104   ;;  %s6680_s10 = smov 40  }
  0x5e   :  { %s6681_s11 = smov 8   ;;  %s6682_s15 = smov 16  }
  0x5f   :  { %s6683_s16 = smov 24   ;;  %s8016_s18 = sld [smem:[#allocation6_spill]] }
  0x60   :  { %s8017_s22 = sld [smem:[#allocation9_spill]] }
  0x61   :  { %s8018_s23 = sld [smem:[#allocation8_spill]] }
  0x62   :  { %s8019_s26 = sld [smem:[#allocation10_spill]] }
  0xe2   :  { %v189_v2 = vpop.xlane.xlu0 %188 }
  0xe3   :  { %v191_v3 = vmul.f32 0.33333334, %v189_v2 }
  0xe5   :  { %v192_v4 = vsub.f32 %v183_v0, %v191_v3 }
  0xe7   :  { %v193_v5 = vmul.f32 %v192_v4, %v192_v4 }
  0xe9   :  { %v194_v6 = vsel %vm186_vm0, %v193_v5, 0.0 }
  0xea   :  { %195 = vadd.xlane.f32.xlu0 %v194_v6 }
 0x173   :  { %v196_v9 = vpop.xlane.xlu0 %195 }
 0x174   :  { %v197_v10 = vmul.f32 0.33333334, %v196_v9 }
 0x176   :  { %v198_v11 = vadd.f32 1e-05, %v197_v10 }
 0x178   :  { %6480 = vrsqrt.f32 %v198_v11 }
 0x185   :  { %v6481_v12 = vpop.eup %6480 }
 0x186   :  { %v200_v14 = vmul.f32 %v6481_v12, %v192_v4 }
 0x188   :  { %v207_v16 = vmul.f32 %v5312_v13, %v200_v14 }
 0x18a   :  { %v6925_v17 = vadd.f32 %v5313_v15, %v207_v16 }
 0x18c   :  { %vm227_vm3 = vcmp.ge.f32.partialorder %v6925_v17, -1.0  ;;  %vm228_vm4 = vcmp.lt.f32.partialorder %v6925_v17, -0.6  ;;  %vm231_vm5 = vcmp.ge.f32.partialorder %v6925_v17, -0.6  ;;  %v5317_v18 = vadd.f32 1.0, %v6925_v17 }
 0x18d   :  { %vm229_vm6 = vmand %vm227_vm3, %vm228_vm4  ;;  %vm232_vm7 = vcmp.lt.f32.partialorder %v6925_v17, -0.2  ;;  %vm235_vm8 = vcmp.ge.f32.partialorder %v6925_v17, -0.2  ;;  %vm236_vm9 = vcmp.lt.f32.partialorder %v6925_v17, 0.2 }
 0x18e   :  { %v6935_v19 = vsel %vm229_vm6, 1.0, %v6660_v7  ;;  %vm233_vm10 = vmand %vm231_vm5, %vm232_vm7  ;;  %vm239_vm11 = vcmp.ge.f32.partialorder %v6925_v17, 0.2  ;;  %vm240_vm12 = vcmp.lt.f32.partialorder %v6925_v17, 0.6  ;;  %v281_v20 = vmul.f32 2.5, %v5317_v18 }
 0x18f   :  { %vm237_vm13 = vmand %vm235_vm8, %vm236_vm9  ;;  %v6940_v21 = vsub.f32 -0.2, %v6925_v17  ;;  %v6943_v22 = vadd.f32 0.6, %v6925_v17  ;;  %v234_v23 = vsel %vm233_vm10, 1.0, %v6660_v7  ;;  %v344_v39 = vmul.f32 1.25, %v5317_v18 }
 0x190   :  { %v238_v24 = vsel %vm237_vm13, 1.0, %v6660_v7  ;;  %vm241_vm14 = vmand %vm239_vm11, %vm240_vm12  ;;  %v289_v25 = vsub.f32 0.2, %v6925_v17  ;;  %v6949_v26 = vadd.f32 0.2, %v6925_v17  ;;  %v284_v28 = vmul.f32 %v281_v20, %v6935_v19 }
 0x191   :  { %v283_v27 = vmul.f32 2.5, %v6940_v21  ;;  %v288_v29 = vmul.f32 2.5, %v6943_v22  ;;  %v296_v30 = vsub.f32 0.6, %v6925_v17  ;;  %v6956_v31 = vsel %vm241_vm14, 1.0, %v6660_v7 }
 0x192   :  { %v290_v32 = vmul.f32 2.5, %v289_v25  ;;  %v295_v33 = vmul.f32 2.5, %v6949_v26  ;;  %v345_v40 = vmul.f32 1.25, %v289_v25  ;;  %vm219_vm15 = vcmp.ge.f32.partialorder %v6925_v17, -1.8 }
 0x193   :  { %v285_v34 = vmul.f32 %v283_v27, %v234_v23  ;;  %v291_v35 = vmul.f32 %v288_v29, %v234_v23  ;;  %v297_v36 = vmul.f32 2.5, %v296_v30  ;;  %vm220_vm0 = vcmp.lt.f32.partialorder %v6925_v17, -1.4 }
 0x194   :  { %v292_v37 = vmul.f32 %v290_v32, %v238_v24  ;;  %v298_v38 = vmul.f32 %v295_v33, %v238_v24  ;;  %v349_v44 = vmul.f32 1.25, %v6943_v22  ;;  %vm221_vm1 = vmand %vm219_vm15, %vm220_vm0  ;;  %vm223_vm3 = vcmp.ge.f32.partialorder %v6925_v17, -1.4 }
 0x195   :  { %v286_v41 = vadd.f32 %v285_v34, %v284_v28  ;;  %v299_v42 = vmul.f32 %v297_v36, %v6956_v31  ;;  %vm224_vm4 = vcmp.lt.f32.partialorder %v6925_v17, -1.0  ;;  %v350_v47 = vmul.f32 1.25, %v296_v30 }
 0x196   :  { %v293_v43 = vadd.f32 %v292_v37, %v291_v35  ;;  %vm225_vm5 = vmand %vm223_vm3, %vm224_vm4  ;;  %v5315_v48 = vadd.f32 1.8, %v6925_v17  ;;  %v389_v51 = vmul.f32 0.8333333, %v5317_v18  ;;  %v6969_v52 = vsel %vm221_vm1, 1.0, %v6660_v7 }
 0x197   :  { %v6965_v45 = vadd.f32 %v299_v42, %v298_v38  ;;  %v346_v46 = vmul.f32 %v344_v39, %v286_v41  ;;  %v268_v55 = vsub.f32 -1.0, %v6925_v17  ;;  %v5316_v56 = vadd.f32 1.4, %v6925_v17 }
 0x198   :  { %v347_v49 = vmul.f32 %v345_v40, %v293_v43  ;;  %v351_v50 = vmul.f32 %v349_v44, %v293_v43  ;;  %v267_v54 = vmul.f32 2.5, %v5315_v48  ;;  %v390_v58 = vmul.f32 0.8333333, %v296_v30 }
 0x199   :  { %v352_v53 = vmul.f32 %v350_v47, %v6965_v45  ;;  %v226_v59 = vsel %vm225_vm5, 1.0, %v6660_v7  ;;  %v275_v60 = vsub.f32 -0.6, %v6925_v17  ;;  %v269_v62 = vmul.f32 2.5, %v268_v55 }
 0x19a   :  { %v348_v57 = vadd.f32 %v347_v49, %v346_v46  ;;  %v270_v63 = vmul.f32 %v267_v54, %v6969_v52  ;;  %v274_v0 = vmul.f32 2.5, %v5316_v56  ;;  %v261_v2 = vsub.f32 -1.4, %v6925_v17 }
 0x19b   :  { %v353_v61 = vadd.f32 %v352_v53, %v351_v50  ;;  %v276_v3 = vmul.f32 2.5, %v275_v60  ;;  %v271_v5 = vmul.f32 %v269_v62, %v226_v59  ;;  %v340_v8 = vmul.f32 1.25, %v6940_v21 }
 0x19c   :  { %v391_v1 = vmul.f32 %v389_v51, %v348_v57  ;;  %v277_v6 = vmul.f32 %v274_v0, %v226_v59  ;;  %v330_v10 = vmul.f32 1.25, %v268_v55  ;;  %v334_v11 = vmul.f32 1.25, %v5315_v48 }
 0x19d   :  { %v392_v4 = vmul.f32 %v390_v58, %v353_v61  ;;  %v278_v9 = vmul.f32 %v276_v3, %v6935_v19  ;;  %v335_v12 = vmul.f32 1.25, %v275_v60  ;;  %v272_v14 = vadd.f32 %v271_v5, %v270_v63 }
 0x19e   :  { %v339_v15 = vmul.f32 1.25, %v5316_v56  ;;  %v342_v16 = vmul.f32 %v340_v8, %v286_v41  ;;  %v375_v20 = vmul.f32 0.8333333, %v275_v60  ;;  %v385_v23 = vmul.f32 0.8333333, %v289_v25 }
 0x19f   :  { %v393_v13 = vadd.f32 %v392_v4, %v391_v1  ;;  %v279_v18 = vadd.f32 %v278_v9, %v277_v6  ;;  %vm243_vm6 = vcmp.ge.f32.partialorder %v6925_v17, 0.6  ;;  %v336_v24 = vmul.f32 %v334_v11, %v272_v14 }
 0x1a0   :  { %v6981_v27 = vmul.f32 %v330_v10, %v272_v14  ;;  %vm244_vm7 = vcmp.lt.f32.partialorder %v6925_v17, 1.0  ;;  %v6985_v19 = vadd.f32 -0.2, %v6925_v17  ;;  %v379_v30 = vmul.f32 0.8333333, %v5315_v48  ;;  %v466_v14 = vld [vmem:[%s6718_s25 + $0x10] sm:$0xff] }
 0x1a1   :  { %423 = vrot.lane.b32.xlu0 %v393_v13, %s6662_s0  ;;  %v337_v28 = vmul.f32 %v335_v12, %v279_v18  ;;  %v341_v29 = vmul.f32 %v339_v15, %v279_v18  ;;  %vm245_vm8 = vmand %vm243_vm6, %vm244_vm7  ;;  %v303_v32 = vsub.f32 1.0, %v6925_v17  ;;  %v380_v25 = vmul.f32 0.8333333, %v6940_v21  ;;  %v465_v15 = vld [vmem:[%s6718_s25 + $0x8] sm:$0xff]  ;;  %6019 = vmatpush3.msra.mxu0 %v466_v14  ;;  %s8020_s0 = sld [smem:[#allocation13_spill]] }
 0x1a2   :  { %v384_v33 = vmul.f32 0.8333333, %v5316_v56  ;;  %v387_v34 = vmul.f32 %v385_v23, %v348_v57  ;;  %v302_v35 = vmul.f32 2.5, %v6985_v19  ;;  %v246_v38 = vsel %vm245_vm8, 1.0, %v6660_v7  ;;  %6020 = vmatprep.subr.mxu0 %v6660_v7 }
 0x1a3   :  { %v338_v36 = vadd.f32 %v337_v28, %v336_v24  ;;  %v343_v37 = vadd.f32 %v342_v16, %v341_v29  ;;  %v304_v39 = vmul.f32 2.5, %v303_v32  ;;  %v354_v41 = vmul.f32 1.25, %v6949_v26  ;;  %6021 = vmatpush3.msra.mxu0 %v465_v15 }
 0x1a4   :  { %v305_v40 = vmul.f32 %v302_v35, %v6956_v31  ;;  %v355_v42 = vmul.f32 1.25, %v303_v32  ;;  %v394_v43 = vmul.f32 0.8333333, %v6943_v22  ;;  %vm247_vm9 = vcmp.ge.f32.partialorder %v6925_v17, 1.0  ;;  %6022 = vmatprep.subr.mxu0 %v6660_v7 }
 0x1a5   :  { %v381_v44 = vmul.f32 %v379_v30, %v338_v36  ;;  %v382_v46 = vmul.f32 %v380_v25, %v343_v37  ;;  %v6994_v47 = vmul.f32 %v375_v20, %v338_v36  ;;  %v386_v21 = vmul.f32 %v384_v33, %v343_v37 }
 0x1a6   :  { %v306_v48 = vmul.f32 %v304_v39, %v246_v38  ;;  %vm248_vm10 = vcmp.lt.f32.partialorder %v6925_v17, 1.4  ;;  %v6999_v49 = vadd.f32 -0.6, %v6925_v17  ;;  %v356_v31 = vmul.f32 %v354_v41, %v6965_v45 }
 0x1a7   :  { %v383_v50 = vadd.f32 %v382_v46, %v381_v44  ;;  %v395_v51 = vmul.f32 0.8333333, %v303_v32  ;;  %vm249_vm11 = vmand %vm247_vm9, %vm248_vm10  ;;  %v310_v22 = vsub.f32 1.4, %v6925_v17  ;;  %v396_v54 = vmul.f32 %v394_v43, %v353_v61  ;;  %v464_v44 = vld [vmem:[%s6718_s25] sm:$0xff]  ;;  %s6667_s25 = smov 18  }
 0x1a8   :  { %v307_v53 = vadd.f32 %v306_v48, %v305_v40  ;;  %v250_v55 = vsel %vm249_vm11, 1.0, %v6660_v7  ;;  %v309_v56 = vmul.f32 2.5, %v6999_v49  ;;  %v388_v57 = vadd.f32 %v387_v34, %v386_v21  ;;  %6023 = vmatpush3.msra.mxu0 %v464_v44  ;;  %v880_v44 = vld [vmem:[%s6728_s3 + $0xd8] sm:$0xff] }
 0x1a9   :  { %415 = vrot.lane.b32.xlu1 %v383_v50, %s6663_s9  ;;  %v311_v58 = vmul.f32 2.5, %v310_v22  ;;  %v359_v59 = vmul.f32 1.25, %v6985_v19  ;;  %vm251_vm12 = vcmp.ge.f32.partialorder %v6925_v17, 1.4  ;;  %v399_v62 = vmul.f32 0.8333333, %v6949_v26 }
 0x1aa   :  { %v357_v60 = vmul.f32 %v355_v42, %v307_v53  ;;  %v312_v45 = vmul.f32 %v309_v56, %v246_v38  ;;  %vm252_vm13 = vcmp.lt.f32.partialorder %v6925_v17, 1.8  ;;  %v360_v61 = vmul.f32 1.25, %v310_v22  ;;  %s8021_s9 = sld [smem:[#allocation11_spill]] }
 0x1ab   :  { %v313_v63 = vmul.f32 %v311_v58, %v250_v55  ;;  %vm253_vm14 = vmand %vm251_vm12, %vm252_vm13  ;;  %v5322_v0 = vadd.f32 -1.0, %v6925_v17  ;;  %v317_v1 = vsub.f32 1.8, %v6925_v17  ;;  %v400_v4 = vmul.f32 0.8333333, %v310_v22 }
 0x1ac   :  { %v358_v3 = vadd.f32 %v357_v60, %v356_v31  ;;  %v254_v5 = vsel %vm253_vm14, 1.0, %v6660_v7  ;;  %v5324_v6 = vmul.f32 -1.442695, %v6925_v17  ;;  %v361_v8 = vmul.f32 %v359_v59, %v307_v53 }
 0x1ad   :  { %419 = vrot.lane.b32.xlu1 %v388_v57, %s6664_s13  ;;  %v314_v26 = vadd.f32 %v313_v63, %v312_v45  ;;  %v316_v9 = vmul.f32 2.5, %v5322_v0  ;;  %v318_v10 = vmul.f32 2.5, %v317_v1  ;;  %v364_v12 = vmul.f32 1.25, %v6999_v49  ;;  %s8022_s13 = sld [smem:[#allocation12_spill]] }
 0x1ae   :  { %v397_v11 = vmul.f32 %v395_v51, %v358_v3  ;;  %v365_v13 = vmul.f32 1.25, %v317_v1  ;;  %6482 = vpow2.f32 %v5324_v6  ;;  %v401_v18 = vmul.f32 %v399_v62, %v358_v3 }
 0x1af   :  { %v362_v16 = vmul.f32 %v360_v61, %v314_v26  ;;  %v319_v20 = vmul.f32 %v316_v9, %v250_v55  ;;  %v320_v23 = vmul.f32 %v318_v10, %v254_v5  ;;  %vm255_vm15 = vcmp.ge.f32.partialorder %v6925_v17, 1.8 }
 0x1b0   :  { %v398_v24 = vadd.f32 %v397_v11, %v396_v54  ;;  %vm256_vm0 = vcmp.lt.f32.partialorder %v6925_v17, 2.2  ;;  %v5323_v28 = vadd.f32 -1.4, %v6925_v17  ;;  %v366_v32 = vmul.f32 %v364_v12, %v314_v26 }
 0x1b1   :  { %v363_v29 = vadd.f32 %v362_v16, %v361_v8  ;;  %v321_v30 = vadd.f32 %v320_v23, %v319_v20  ;;  %vm257_vm1 = vmand %vm255_vm15, %vm256_vm0  ;;  %v324_v25 = vsub.f32 2.2, %v6925_v17  ;;  %v5314_v35 = vadd.f32 2.2, %v6925_v17 }
 0x1b2   :  { %427 = vrot.lane.b32.xlu1 %v398_v24, %s6665_s17  ;;  %v258_v33 = vsel %vm257_vm1, 1.0, %v6660_v7  ;;  %v323_v34 = vmul.f32 2.5, %v5323_v28  ;;  %v404_v38 = vmul.f32 0.8333333, %v6985_v19  ;;  %v262_v40 = vmul.f32 2.5, %v261_v2  ;;  %s8023_s17 = sld [smem:[#allocation14_spill]] }
 0x1b3   :  { %v402_v36 = vmul.f32 %v400_v4, %v363_v29  ;;  %v367_v37 = vmul.f32 %v365_v13, %v321_v30  ;;  %v325_v39 = vmul.f32 2.5, %v324_v25  ;;  %v405_v41 = vmul.f32 0.8333333, %v317_v1 }
 0x1b4   :  { %v326_v42 = vmul.f32 %v323_v34, %v254_v5  ;;  %v369_v43 = vmul.f32 1.25, %v5322_v0  ;;  %v406_v48 = vmul.f32 %v404_v38, %v363_v29  ;;  %v370_v31 = vmul.f32 1.25, %v324_v25  ;;  %v884_v29 = vld [vmem:[%s6728_s3 + $0xf8] sm:$0xff]  ;;  %v882_v34 = vld [vmem:[%s6728_s3 + $0xe8] sm:$0xff]  ;;  %v899_v38 = vld [vmem:[%s6728_s3 + $0x170] sm:$0xff] }
 0x1b5   :  { %v403_v46 = vadd.f32 %v402_v36, %v401_v18  ;;  %v368_v21 = vadd.f32 %v367_v37, %v366_v32  ;;  %v327_v50 = vmul.f32 %v325_v39, %v258_v33  ;;  %v260_v51 = vmul.f32 2.5, %v5314_v35  ;;  %v883_v32 = vld [vmem:[%s6728_s3 + $0xf0] sm:$0xff]  ;;  %5617 = vmatprep.subr.mxu1 %v884_v29  ;;  %v916_v33 = vld [vmem:[%s6728_s3 + $0x1f8] sm:$0xff]  ;;  %v866_v36 = vld [vmem:[%s6728_s3 + $0x68] sm:$0xff] }
 0x1b6   :  { %vm215_vm3 = vcmp.ge.f32.partialorder %v6925_v17, -2.2  ;;  %v371_v53 = vmul.f32 %v369_v43, %v321_v30  ;;  %vm216_vm4 = vcmp.lt.f32.partialorder %v6925_v17, -1.8  ;;  %v264_v2 = vmul.f32 %v262_v40, %v6969_v52  ;;  %v868_v30 = vld [vmem:[%s6728_s3 + $0x78] sm:$0xff]  ;;  %5652 = vmatprep.subr.mxu0 %v916_v33  ;;  %v915_v37 = vld [vmem:[%s6728_s3 + $0x1f0] sm:$0xff] }
 0x1b7   :  { %431 = vrot.lane.b32.xlu1 %v403_v46, %s6666_s21  ;;  %v407_v19 = vmul.f32 %v405_v41, %v368_v21  ;;  %v328_v22 = vadd.f32 %v327_v50, %v326_v42  ;;  %vm217_vm5 = vmand %vm215_vm3, %vm216_vm4  ;;  %v409_v56 = vmul.f32 0.8333333, %v6999_v49  ;;  %v410_v45 = vmul.f32 0.8333333, %v324_v25  ;;  %v867_v25 = vld [vmem:[%s6728_s3 + $0x70] sm:$0xff]  ;;  %v881_v39 = vld [vmem:[%s6728_s3 + $0xe0] sm:$0xff] }
 0x1b8   :  { %v218_v57 = vsel %vm217_vm5, 1.0, %v6660_v7  ;;  %v329_v61 = vmul.f32 1.25, %v5314_v35  ;;  %v374_v4 = vmul.f32 0.8333333, %v5314_v35  ;;  %vm442_vm6 = vcmask 23552   ;;  %v900_v35 = vld [vmem:[%s6728_s3 + $0x178] sm:$0xff] }
 0x1b9   :  { %v408_v54 = vadd.f32 %v407_v19, %v406_v48  ;;  %v372_v55 = vmul.f32 %v370_v31, %v328_v22  ;;  %v263_v58 = vmul.f32 %v260_v51, %v218_v57  ;;  %v411_v62 = vmul.f32 %v409_v56, %v368_v21  ;;  %v914_v40 = vld [vmem:[%s6728_s3 + $0x1e8] sm:$0xff]  ;;  %v865_v41 = vld [vmem:[%s6728_s3 + $0x60] sm:$0xff]  ;;  %v864_v21 = vld [vmem:[%s6728_s3 + $0x58] sm:$0xff]  ;;  %s8024_s21 = sld [smem:[#allocation15_spill]] }
 0x1ba   :  { %vm444_vm7 = vcmask 48128   ;;  %vm446_vm8 = vcmask 72704   ;;  %vm448_vm9 = vcmask 97280   ;;  %vm450_vm10 = vcmask 121856   ;;  %v898_v42 = vld [vmem:[%s6728_s3 + $0x168] sm:$0xff]  ;;  %v913_v43 = vld [vmem:[%s6728_s3 + $0x1e0] sm:$0xff] }
 0x1bb   :  { %v6483_v59 = vpop.eup %6482  ;;  %435 = vrot.lane.b32.xlu1 %v408_v54, %s6667_s25  ;;  %v373_v60 = vadd.f32 %v372_v55, %v371_v53  ;;  %v265_v0 = vadd.f32 %v264_v2, %v263_v58  ;;  %vm452_vm11 = vcmask 146432   ;;  %vm454_vm12 = vcmask 171008   ;;  %v897_v46 = vld [vmem:[%s6728_s3 + $0x160] sm:$0xff]  ;;  %v912_v48 = vld [vmem:[%s6728_s3 + $0x1d8] sm:$0xff]  ;;  %v879_v50 = vld [vmem:[%s6728_s3 + $0xd0] sm:$0xff]  ;;  %s8025_s25 = sld [smem:[#allocation16_spill]] }
 0x1bc   :  { %v459_v63 = vadd.f32 1.0, %v6483_v59  ;;  %vm467_vm13 = vcmask 195584   ;;  %v896_v31 = vld [vmem:[%s6728_s3 + $0x158] sm:$0xff]  ;;  %v863_v51 = vld [vmem:[%s6728_s3 + $0x50] sm:$0xff]  ;;  %v878_v22 = vld [vmem:[%s6728_s3 + $0xc8] sm:$0xff] }
 0x1bd   :  { %v412_v1 = vmul.f32 %v410_v45, %v373_v60  ;;  %v331_v52 = vmul.f32 %v329_v61, %v265_v0  ;;  %v911_v19 = vld [vmem:[%s6728_s3 + $0x1d0] sm:$0xff]  ;;  %v862_v2 = vld [vmem:[%s6728_s3 + $0x48] sm:$0xff]  ;;  %v877_v55 = vld [vmem:[%s6728_s3 + $0xc0] sm:$0xff] }
 0x1be   :  { %6484 = vrcp.f32 %v459_v63  ;;  %v895_v53 = vld [vmem:[%s6728_s3 + $0x150] sm:$0xff]  ;;  %v910_v54 = vld [vmem:[%s6728_s3 + $0x1c8] sm:$0xff]  ;;  %v861_v57 = vld [vmem:[%s6728_s3 + $0x40] sm:$0xff] }
 0x1bf   :  { %v413_v3 = vadd.f32 %v412_v1, %v411_v62  ;;  %v333_v5 = vadd.f32 %v6981_v27, %v331_v52  ;;  %v894_v56 = vld [vmem:[%s6728_s3 + $0x148] sm:$0xff]  ;;  %v909_v58 = vld [vmem:[%s6728_s3 + $0x1c0] sm:$0xff]  ;;  %v876_v59 = vld [vmem:[%s6728_s3 + $0xb8] sm:$0xff] }
 0x1c0   :  { %v893_v60 = vld [vmem:[%s6728_s3 + $0x140] sm:$0xff]  ;;  %v860_v45 = vld [vmem:[%s6728_s3 + $0x38] sm:$0xff]  ;;  %v875_v63 = vld [vmem:[%s6728_s3 + $0xb0] sm:$0xff] }
 0x1c1   :  { %439 = vrot.lane.b32.xlu1 %v413_v3, %s6668_s28  ;;  %v376_v49 = vmul.f32 %v374_v4, %v333_v5  ;;  %v908_v62 = vld [vmem:[%s6728_s3 + $0x1b8] sm:$0xff]  ;;  %v859_v0 = vld [vmem:[%s6728_s3 + $0x30] sm:$0xff]  ;;  %v874_v52 = vld [vmem:[%s6728_s3 + $0xa8] sm:$0xff]  ;;  %s8026_s28 = sld [smem:[#allocation19_spill]] }
 0x1c2   :  { %v892_v61 = vld [vmem:[%s6728_s3 + $0x138] sm:$0xff]  ;;  %v907_v1 = vld [vmem:[%s6728_s3 + $0x1b0] sm:$0xff]  ;;  %v858_v4 = vld [vmem:[%s6728_s3 + $0x28] sm:$0xff] }
 0x1c3   :  { %v378_v6 = vadd.f32 %v6994_v47, %v376_v49  ;;  %v891_v3 = vld [vmem:[%s6728_s3 + $0x130] sm:$0xff]  ;;  %v906_v5 = vld [vmem:[%s6728_s3 + $0x1a8] sm:$0xff]  ;;  %v873_v49 = vld [vmem:[%s6728_s3 + $0xa0] sm:$0xff] }
 0x1cb   :  { %v6485_v26 = vpop.eup %6484 }
 0x1cc   :  { %v462_v8 = vmul.f32 %v6485_v26, %v6925_v17  ;;  %v857_v26 = vld [vmem:[%s6728_s3 + $0x20] sm:$0xff] }
 0x1ce   :  { %6030 = vmatmul.mubr.msk.f32.vlgmr.msra.gmra.mxu1 %vm442_vm6, %v462_v8  ;;  %v905_v8 = vld [vmem:[%s6728_s3 + $0x1a0] sm:$0xff] }
 0x1cf   :  { %5618 = vmatpush3.msra.mxu1 %v868_v30 }
 0x1d0   :  { %5619 = vmatprep.subr.mxu1 %v883_v32 }
 0x1d1   :  { %5620 = vmatpush3.msra.mxu1 %v867_v25 }
 0x1d2   :  { %5621 = vmatprep.subr.mxu1 %v882_v34 }
 0x1d3   :  { %5622 = vmatpush3.msra.mxu1 %v866_v36 }
 0x1d4   :  { %5623 = vmatprep.subr.mxu1 %v881_v39 }
 0x1d5   :  { %5624 = vmatpush3.msra.mxu1 %v865_v41 }
 0x1d6   :  { %5625 = vmatprep.subr.mxu1 %v880_v44 }
 0x1d7   :  { %5626 = vmatpush3.msra.mxu1 %v864_v21 }
 0x1d8   :  { %5627 = vmatprep.subr.mxu1 %v879_v50 }
 0x1d9   :  { %5628 = vmatpush3.msra.mxu1 %v863_v51 }
 0x1da   :  { %5629 = vmatprep.subr.mxu1 %v878_v22 }
 0x1db   :  { %5630 = vmatpush3.msra.mxu1 %v862_v2 }
 0x1dc   :  { %5631 = vmatprep.subr.mxu1 %v877_v55 }
 0x1dd   :  { %5632 = vmatpush3.msra.mxu1 %v861_v57 }
 0x1de   :  { %5633 = vmatprep.subr.mxu1 %v876_v59 }
 0x1df   :  { %5634 = vmatpush3.msra.mxu1 %v860_v45 }
 0x1e0   :  { %5635 = vmatprep.subr.mxu1 %v875_v63 }
 0x1e1   :  { %5636 = vmatpush3.msra.mxu1 %v859_v0 }
 0x1e2   :  { %5637 = vmatprep.subr.mxu1 %v874_v52 }
 0x1e3   :  { %5638 = vmatpush3.msra.mxu1 %v858_v4 }
 0x1e4   :  { %5639 = vmatprep.subr.mxu1 %v873_v49 }
 0x1e5   :  { %5640 = vmatpush3.msra.mxu1 %v857_v26  ;;  %v854_v26 = vld [vmem:[%s6728_s3 + $0x8] sm:$0xff] }
 0x213   :  { %v424_v27 = vpop.permute.xlu0 %423 }
 0x21b   :  { %v416_v9 = vpop.permute.xlu1 %415 }
 0x21c   :  { %v443_v13 = vsel %vm442_vm6, %v378_v6, %v416_v9  ;;  %v890_v6 = vld [vmem:[%s6728_s3 + $0x128] sm:$0xff]  ;;  %v872_v9 = vld [vmem:[%s6728_s3 + $0x98] sm:$0xff] }
 0x21d   :  { %5641 = vmatprep.subr.mxu1 %v872_v9  ;;  %v869_v9 = vld [vmem:[%s6728_s3 + $0x80] sm:$0xff] }
 0x21f   :  { %v420_v10 = vpop.permute.xlu1 %419 }
 0x220   :  { %v445_v14 = vsel %vm444_vm7, %v443_v13, %v420_v10  ;;  %v889_v10 = vld [vmem:[%s6728_s3 + $0x120] sm:$0xff]  ;;  %v871_v13 = vld [vmem:[%s6728_s3 + $0x90] sm:$0xff] }
 0x221   :  { %v447_v47 = vsel %vm446_vm8, %v445_v14, %v424_v27  ;;  %v855_v14 = vld [vmem:[%s6728_s3 + $0x10] sm:$0xff] }
 0x224   :  { %v428_v11 = vpop.permute.xlu1 %427 }
 0x225   :  { %v449_v17 = vsel %vm448_vm9, %v447_v47, %v428_v11  ;;  %v856_v11 = vld [vmem:[%s6728_s3 + $0x18] sm:$0xff] }
 0x226   :  { %5642 = vmatpush3.msra.mxu1 %v856_v11 }
 0x227   :  { %5643 = vmatprep.subr.mxu1 %v871_v13 }
 0x228   :  { %5644 = vmatpush3.msra.mxu1 %v855_v14  ;;  %v903_v14 = vld [vmem:[%s6728_s3 + $0x190] sm:$0xff] }
 0x229   :  { %v432_v12 = vpop.permute.xlu1 %431 }
 0x22a   :  { %v451_v16 = vsel %vm450_vm10, %v449_v17, %v432_v12  ;;  %v904_v12 = vld [vmem:[%s6728_s3 + $0x198] sm:$0xff] }
 0x22d   :  { %v436_v15 = vpop.permute.xlu1 %435 }
 0x22e   :  { %v453_v18 = vsel %vm452_vm11, %v451_v16, %v436_v15  ;;  %v870_v15 = vld [vmem:[%s6728_s3 + $0x88] sm:$0xff] }
 0x22f   :  { %5645 = vmatprep.subr.mxu1 %v870_v15  ;;  %v853_v15 = vld [vmem:[%s6728_s3] sm:$0xff] }
 0x230   :  { %5646 = vmatpush3.msra.mxu1 %v854_v26 }
 0x231   :  { %5647 = vmatprep.subr.mxu1 %v869_v9 }
 0x232   :  { %5648 = vmatpush3.msra.mxu1 %v853_v15 }
 0x233   :  { %v440_v20 = vpop.permute.xlu1 %439  ;;  %6032 = vmatprep.subr.mxu1 %v6660_v7 }
 0x234   :  { %v455_v23 = vsel %vm454_vm12, %v453_v18, %v440_v20 }
 0x235   :  { %6025 = vmatmul.mubr.msk.f32.vlgmr.msra.gmra.mxu0 %vm467_vm13, %v455_v23 }
 0x236   :  { %5653 = vmatpush3.msra.mxu0 %v900_v35 }
 0x237   :  { %5654 = vmatprep.subr.mxu0 %v915_v37 }
 0x238   :  { %5655 = vmatpush3.msra.mxu0 %v899_v38 }
 0x239   :  { %5656 = vmatprep.subr.mxu0 %v914_v40 }
 0x23a   :  { %5657 = vmatpush3.msra.mxu0 %v898_v42 }
 0x23b   :  { %5658 = vmatprep.subr.mxu0 %v913_v43 }
 0x23c   :  { %5659 = vmatpush3.msra.mxu0 %v897_v46 }
 0x23d   :  { %5660 = vmatprep.subr.mxu0 %v912_v48 }
 0x23e   :  { %5661 = vmatpush3.msra.mxu0 %v896_v31 }
 0x23f   :  { %5662 = vmatprep.subr.mxu0 %v911_v19 }
 0x240   :  { %5663 = vmatpush3.msra.mxu0 %v895_v53 }
 0x241   :  { %5664 = vmatprep.subr.mxu0 %v910_v54 }
 0x242   :  { %5665 = vmatpush3.msra.mxu0 %v894_v56 }
 0x243   :  { %5666 = vmatprep.subr.mxu0 %v909_v58 }
 0x244   :  { %5667 = vmatpush3.msra.mxu0 %v893_v60 }
 0x245   :  { %5668 = vmatprep.subr.mxu0 %v908_v62 }
 0x246   :  { %5669 = vmatpush3.msra.mxu0 %v892_v61 }
 0x247   :  { %5670 = vmatprep.subr.mxu0 %v907_v1 }
 0x248   :  { %5671 = vmatpush3.msra.mxu0 %v891_v3 }
 0x249   :  { %5672 = vmatprep.subr.mxu0 %v906_v5 }
 0x24a   :  { %5673 = vmatpush3.msra.mxu0 %v890_v6 }
 0x24b   :  { %5674 = vmatprep.subr.mxu0 %v905_v8  ;;  %v888_v8 = vld [vmem:[%s6728_s3 + $0x118] sm:$0xff] }
 0x24c   :  { %5675 = vmatpush3.msra.mxu0 %v889_v10 }
 0x24d   :  { %5676 = vmatprep.subr.mxu0 %v904_v12 }
 0x24e   :  { %5677 = vmatpush3.msra.mxu0 %v888_v8 }
 0x24f   :  { %5678 = vmatprep.subr.mxu0 %v903_v14 }
 0x28e   :  { %v7038_v24 = vpop.f32.mrf.mxu1 }
 0x290   :  { %v6031_v28 = vpop.f32.mrf.mxu1 }
 0x2f5   :  { %v537_v27 = vpop.f32.mrf.mxu0 }
 0x2f6   :  { %v7095_v47 = vadd.f32 %v7038_v24, %v537_v27  ;;  %v887_v27 = vld [vmem:[%s6728_s3 + $0x110] sm:$0xff] }
 0x2f7   :  { %v6026_v17 = vpop.f32.mrf.mxu0  ;;  %5679 = vmatpush3.msra.mxu0 %v887_v27 }
 0x2f8   :  { %vm622_vm14 = vcmp.ge.f32.partialorder %v7095_v47, -1.8  ;;  %vm623_vm15 = vcmp.lt.f32.partialorder %v7095_v47, -1.4  ;;  %vm626_vm0 = vcmp.ge.f32.partialorder %v7095_v47, -1.4 }
 0x2f9   :  { %vm624_vm1 = vmand %vm622_vm14, %vm623_vm15  ;;  %vm627_vm3 = vcmp.lt.f32.partialorder %v7095_v47, -1.0  ;;  %vm630_vm4 = vcmp.ge.f32.partialorder %v7095_v47, -1.0  ;;  %vm631_vm5 = vcmp.lt.f32.partialorder %v7095_v47, -0.6  ;;  %vm634_vm6 = vcmp.ge.f32.partialorder %v7095_v47, -0.6 }
 0x2fa   :  { %v7105_v16 = vsel %vm624_vm1, 1.0, %v6660_v7  ;;  %vm628_vm7 = vmand %vm626_vm0, %vm627_vm3  ;;  %vm635_vm8 = vcmp.lt.f32.partialorder %v7095_v47, -0.2  ;;  %vm638_vm10 = vcmp.ge.f32.partialorder %v7095_v47, -0.2  ;;  %v671_v18 = vsub.f32 -1.0, %v7095_v47 }
 0x2fb   :  { %v629_v20 = vsel %vm628_vm7, 1.0, %v6660_v7  ;;  %vm632_vm11 = vmand %vm630_vm4, %vm631_vm5  ;;  %vm639_vm12 = vcmp.lt.f32.partialorder %v7095_v47, 0.2  ;;  %vm642_vm14 = vcmp.ge.f32.partialorder %v7095_v47, 0.2  ;;  %v7114_v23 = vadd.f32 1.0, %v7095_v47 }
 0x2fc   :  { %v633_v24 = vsel %vm632_vm11, 1.0, %v6660_v7  ;;  %vm636_vm15 = vmand %vm634_vm6, %vm635_vm8  ;;  %vm643_vm0 = vcmp.lt.f32.partialorder %v7095_v47, 0.6  ;;  %v5329_v28 = vadd.f32 1.8, %v7095_v47  ;;  %v672_v29 = vmul.f32 2.5, %v671_v18 }
 0x2fd   :  { %v637_v30 = vsel %vm636_vm15, 1.0, %v6660_v7  ;;  %vm640_vm1 = vmand %vm638_vm10, %vm639_vm12  ;;  %v7123_v32 = vadd.f32 1.4, %v7095_v47  ;;  %v7126_v25 = vsub.f32 -0.6, %v7095_v47  ;;  %v684_v33 = vmul.f32 2.5, %v7114_v23 }
 0x2fe   :  { %v641_v34 = vsel %vm640_vm1, 1.0, %v6660_v7  ;;  %vm644_vm3 = vmand %vm642_vm14, %vm643_vm0  ;;  %v670_v35 = vmul.f32 2.5, %v5329_v28  ;;  %v674_v36 = vmul.f32 %v672_v29, %v629_v20  ;;  %v685_v37 = vsub.f32 -0.2, %v7095_v47 }
 0x2ff   :  { %v7132_v38 = vsel %vm644_vm3, 1.0, %v6660_v7  ;;  %v677_v39 = vmul.f32 2.5, %v7123_v32  ;;  %v679_v40 = vmul.f32 2.5, %v7126_v25  ;;  %v687_v41 = vmul.f32 %v684_v33, %v633_v24 }
 0x300   :  { %v673_v42 = vmul.f32 %v670_v35, %v7105_v16  ;;  %v686_v43 = vmul.f32 2.5, %v685_v37  ;;  %v7138_v44 = vadd.f32 0.6, %v7095_v47  ;;  %v7141_v46 = vsub.f32 0.2, %v7095_v47 }
 0x301   :  { %v680_v21 = vmul.f32 %v677_v39, %v629_v20  ;;  %v681_v48 = vmul.f32 %v679_v40, %v633_v24  ;;  %v7144_v50 = vadd.f32 0.2, %v7095_v47  ;;  %v699_v31 = vsub.f32 0.6, %v7095_v47 }
 0x302   :  { %v7147_v51 = vadd.f32 %v674_v36, %v673_v42  ;;  %v688_v19 = vmul.f32 %v686_v43, %v637_v30  ;;  %v691_v22 = vmul.f32 2.5, %v7138_v44  ;;  %v693_v53 = vmul.f32 2.5, %v7141_v46 }
 0x303   :  { %v682_v2 = vadd.f32 %v681_v48, %v680_v21  ;;  %v698_v54 = vmul.f32 2.5, %v7144_v50  ;;  %v700_v55 = vmul.f32 2.5, %v699_v31  ;;  %v737_v56 = vmul.f32 1.25, %v5329_v28 }
 0x304   :  { %v689_v57 = vadd.f32 %v688_v19, %v687_v41  ;;  %v694_v58 = vmul.f32 %v691_v22, %v637_v30  ;;  %v695_v59 = vmul.f32 %v693_v53, %v641_v34  ;;  %v738_v60 = vmul.f32 1.25, %v7126_v25  ;;  %v902_v30 = vld [vmem:[%s6728_s3 + $0x188] sm:$0xff] }
 0x305   :  { %v701_v45 = vmul.f32 %v698_v54, %v641_v34  ;;  %v702_v62 = vmul.f32 %v700_v55, %v7132_v38  ;;  %v739_v63 = vmul.f32 %v737_v56, %v7147_v51  ;;  %v742_v61 = vmul.f32 1.25, %v7123_v32  ;;  %5680 = vmatprep.subr.mxu0 %v902_v30 }
 0x306   :  { %v696_v0 = vadd.f32 %v695_v59, %v694_v58  ;;  %v740_v1 = vmul.f32 %v738_v60, %v682_v2  ;;  %v743_v52 = vmul.f32 1.25, %v685_v37  ;;  %v747_v3 = vmul.f32 1.25, %v7114_v23 }
 0x307   :  { %v7157_v4 = vadd.f32 %v702_v62, %v701_v45  ;;  %v744_v5 = vmul.f32 %v742_v61, %v682_v2  ;;  %v748_v49 = vmul.f32 1.25, %v7141_v46  ;;  %v752_v6 = vmul.f32 1.25, %v7138_v44 }
 0x308   :  { %v7164_v10 = vadd.f32 %v740_v1, %v739_v63  ;;  %v745_v11 = vmul.f32 %v743_v52, %v689_v57  ;;  %v749_v12 = vmul.f32 %v747_v3, %v689_v57  ;;  %v753_v13 = vmul.f32 1.25, %v699_v31 }
 0x309   :  { %v750_v17 = vmul.f32 %v748_v49, %v696_v0  ;;  %v754_v20 = vmul.f32 %v752_v6, %v696_v0  ;;  %v782_v24 = vmul.f32 0.8333333, %v5329_v28  ;;  %v783_v29 = vmul.f32 0.8333333, %v685_v37 }
 0x30a   :  { %v7170_v33 = vadd.f32 %v745_v11, %v744_v5  ;;  %v755_v34 = vmul.f32 %v753_v13, %v7157_v4  ;;  %v792_v35 = vmul.f32 0.8333333, %v7114_v23  ;;  %v793_v36 = vmul.f32 0.8333333, %v699_v31 }
 0x30b   :  { %v7174_v39 = vadd.f32 %v750_v17, %v749_v12  ;;  %v784_v40 = vmul.f32 %v782_v24, %v7164_v10  ;;  %vm646_vm4 = vcmp.ge.f32.partialorder %v7095_v47, 0.6  ;;  %vm647_vm5 = vcmp.lt.f32.partialorder %v7095_v47, 1.0 }
 0x30c   :  { %v7180_v28 = vadd.f32 %v755_v34, %v754_v20  ;;  %v785_v37 = vmul.f32 %v783_v29, %v7170_v33  ;;  %vm648_vm6 = vmand %vm646_vm4, %vm647_vm5  ;;  %vm650_vm7 = vcmp.ge.f32.partialorder %v7095_v47, 1.0  ;;  %vm651_vm8 = vcmp.lt.f32.partialorder %v7095_v47, 1.4 }
 0x30d   :  { %v794_v23 = vmul.f32 %v792_v35, %v7174_v39  ;;  %v649_v41 = vsel %vm648_vm6, 1.0, %v6660_v7  ;;  %vm652_vm10 = vmand %vm650_vm7, %vm651_vm8  ;;  %vm654_vm11 = vcmp.ge.f32.partialorder %v7095_v47, 1.4  ;;  %vm655_vm12 = vcmp.lt.f32.partialorder %v7095_v47, 1.8 }
 0x30e   :  { %v786_v42 = vadd.f32 %v785_v37, %v784_v40  ;;  %v795_v43 = vmul.f32 %v793_v36, %v7180_v28  ;;  %v653_v21 = vsel %vm652_vm10, 1.0, %v6660_v7  ;;  %vm656_vm14 = vmand %vm654_vm11, %vm655_vm12  ;;  %vm658_vm15 = vcmp.ge.f32.partialorder %v7095_v47, 1.8  ;;  %v886_v37 = vld [vmem:[%s6728_s3 + $0x108] sm:$0xff] }
 0x30f   :  { %v657_v48 = vsel %vm656_vm14, 1.0, %v6660_v7  ;;  %vm659_vm0 = vcmp.lt.f32.partialorder %v7095_v47, 2.2  ;;  %v7195_v31 = vadd.f32 -0.2, %v7095_v47  ;;  %v7198_v19 = vsub.f32 1.0, %v7095_v47  ;;  %5681 = vmatpush3.msra.mxu0 %v886_v37 }
 0x310   :  { %v796_v22 = vadd.f32 %v795_v43, %v794_v23  ;;  %vm660_vm1 = vmand %vm658_vm15, %vm659_vm0  ;;  %v5335_v53 = vadd.f32 -0.6, %v7095_v47  ;;  %v713_v2 = vsub.f32 1.4, %v7095_v47  ;;  %v5336_v54 = vadd.f32 -1.0, %v7095_v47  ;;  %v901_v23 = vld [vmem:[%s6728_s3 + $0x180] sm:$0xff] }
 0x311   :  { %v661_v55 = vsel %vm660_vm1, 1.0, %v6660_v7  ;;  %v705_v56 = vmul.f32 2.5, %v7195_v31  ;;  %v707_v57 = vmul.f32 2.5, %v7198_v19  ;;  %v7207_v58 = vsub.f32 1.8, %v7095_v47  ;;  %5682 = vmatprep.subr.mxu0 %v901_v23 }
 0x312   :  { %v6470_v59 = vpack.i.bf16 %v786_v42, %v796_v22  ;;  %v712_v60 = vmul.f32 2.5, %v5335_v53  ;;  %v714_v45 = vmul.f32 2.5, %v713_v2  ;;  %v719_v62 = vmul.f32 2.5, %v5336_v54 }
 0x313   :  { %v708_v63 = vmul.f32 %v705_v56, %v7132_v38  ;;  %v709_v61 = vmul.f32 %v707_v57, %v649_v41  ;;  %v721_v0 = vmul.f32 2.5, %v7207_v58  ;;  %v5337_v1 = vadd.f32 -1.4, %v7095_v47 }
 0x314   :  { %6471 = vrot.lane.b32.xlu1 %v6470_v59, %s6669_s1  ;;  %v715_v52 = vmul.f32 %v712_v60, %v649_v41  ;;  %v716_v3 = vmul.f32 %v714_v45, %v653_v21  ;;  %v722_v5 = vmul.f32 %v719_v62, %v653_v21  ;;  %v727_v49 = vsub.f32 2.2, %v7095_v47 }
 0x315   :  { %v710_v6 = vadd.f32 %v709_v61, %v708_v63  ;;  %v723_v26 = vmul.f32 %v721_v0, %v657_v48  ;;  %v726_v8 = vmul.f32 2.5, %v5337_v1  ;;  %v757_v9 = vmul.f32 1.25, %v7144_v50 }
 0x316   :  { %v717_v11 = vadd.f32 %v716_v3, %v715_v52  ;;  %v728_v38 = vmul.f32 2.5, %v727_v49  ;;  %v758_v12 = vmul.f32 1.25, %v7198_v19  ;;  %v762_v13 = vmul.f32 1.25, %v7195_v31 }
 0x317   :  { %v724_v14 = vadd.f32 %v723_v26, %v722_v5  ;;  %v729_v15 = vmul.f32 %v726_v8, %v657_v48  ;;  %v759_v27 = vmul.f32 %v757_v9, %v7157_v4  ;;  %v763_v17 = vmul.f32 1.25, %v713_v2  ;;  %v885_v4 = vld [vmem:[%s6728_s3 + $0x100] sm:$0xff] }
 0x318   :  { %v730_v20 = vmul.f32 %v728_v38, %v661_v55  ;;  %v760_v24 = vmul.f32 %v758_v12, %v710_v6  ;;  %v764_v29 = vmul.f32 %v762_v13, %v710_v6  ;;  %v767_v30 = vmul.f32 1.25, %v5335_v53  ;;  %5683 = vmatpush3.msra.mxu0 %v885_v4  ;;  %v849_v4 = vld [vmem:[%s6723_s29 + $0x20] sm:$0xff] }
 0x319   :  { %v765_v34 = vmul.f32 %v763_v17, %v717_v11  ;;  %v768_v35 = vmul.f32 1.25, %v7207_v58  ;;  %v772_v36 = vmul.f32 1.25, %v5336_v54  ;;  %v773_v40 = vmul.f32 1.25, %v727_v49  ;;  %v5379_v54 = vld [vmem:[%s6728_s3 + $0x2f8] sm:$0xff] }
 0x31a   :  { %v731_v41 = vadd.f32 %v730_v20, %v729_v15  ;;  %v761_v42 = vadd.f32 %v760_v24, %v759_v27  ;;  %v769_v43 = vmul.f32 %v767_v30, %v717_v11  ;;  %v802_v21 = vmul.f32 0.8333333, %v7144_v50  ;;  %5696 = vmatprep.subr.mxu0 %v5379_v54 }
 0x31b   :  { %v766_v48 = vadd.f32 %v765_v34, %v764_v29  ;;  %v770_v22 = vmul.f32 %v768_v35, %v724_v14  ;;  %v774_v55 = vmul.f32 %v772_v36, %v724_v14  ;;  %v803_v56 = vmul.f32 0.8333333, %v713_v2 }
 0x31c   :  { %v775_v57 = vmul.f32 %v773_v40, %v731_v41  ;;  %v804_v59 = vmul.f32 %v802_v21, %v761_v42  ;;  %v812_v60 = vmul.f32 0.8333333, %v5335_v53  ;;  %v787_v63 = vmul.f32 0.8333333, %v7123_v32  ;;  %v850_v21 = vld [vmem:[%s6723_s29 + $0x28] sm:$0xff] }
 0x31d   :  { %v771_v45 = vadd.f32 %v770_v22, %v769_v43  ;;  %v805_v62 = vmul.f32 %v803_v56, %v766_v48  ;;  %v788_v61 = vmul.f32 0.8333333, %v7141_v46  ;;  %v813_v0 = vmul.f32 0.8333333, %v727_v49  ;;  %v851_v43 = vld [vmem:[%s6723_s29 + $0x30] sm:$0xff] }
 0x31e   :  { %v776_v50 = vadd.f32 %v775_v57, %v774_v55  ;;  %vm618_vm3 = vcmp.ge.f32.partialorder %v7095_v47, -2.2  ;;  %vm619_vm4 = vcmp.lt.f32.partialorder %v7095_v47, -1.8  ;;  %v789_v1 = vmul.f32 %v787_v63, %v7170_v33  ;;  %v847_v22 = vld [vmem:[%s6723_s29 + $0x10] sm:$0xff]  ;;  %v846_v55 = vld [vmem:[%s6723_s29 + $0x8] sm:$0xff] }
 0x31f   :  { %v814_v2 = vmul.f32 %v812_v60, %v771_v45  ;;  %v790_v53 = vmul.f32 %v788_v61, %v7174_v39  ;;  %vm620_vm5 = vmand %vm618_vm3, %vm619_vm4  ;;  %v806_v52 = vadd.f32 %v805_v62, %v804_v59  ;;  %v5328_v5 = vadd.f32 2.2, %v7095_v47  ;;  %v845_v57 = vld [vmem:[%s6723_s29] sm:$0xff]  ;;  %v5411_v60 = vld [vmem:[%s6728_s3 + $0x3f8] sm:$0xff] }
 0x320   :  { %v815_v3 = vmul.f32 %v813_v0, %v776_v50  ;;  %v664_v32 = vsub.f32 -1.4, %v7095_v47  ;;  %v621_v6 = vsel %vm620_vm5, 1.0, %v6660_v7  ;;  %v733_v49 = vmul.f32 1.25, %v671_v18  ;;  %v5395_v63 = vld [vmem:[%s6728_s3 + $0x378] sm:$0xff] }
 0x321   :  { %v791_v46 = vadd.f32 %v790_v53, %v789_v1  ;;  %v778_v26 = vmul.f32 0.8333333, %v7126_v25  ;;  %v663_v9 = vmul.f32 2.5, %v5328_v5  ;;  %v807_v39 = vmul.f32 0.8333333, %v7195_v31  ;;  %v5363_v0 = vld [vmem:[%s6728_s3 + $0x278] sm:$0xff] }
 0x322   :  { %v816_v8 = vadd.f32 %v815_v3, %v814_v2  ;;  %v665_v33 = vmul.f32 2.5, %v664_v32  ;;  %v735_v11 = vmul.f32 %v733_v49, %v7147_v51  ;;  %v808_v12 = vmul.f32 0.8333333, %v7207_v58  ;;  %v5410_v2 = vld [vmem:[%s6728_s3 + $0x3f0] sm:$0xff]  ;;  %v5409_v3 = vld [vmem:[%s6728_s3 + $0x3e8] sm:$0xff]  ;;  %v5360_v49 = vld [vmem:[%s6728_s3 + $0x260] sm:$0xff] }
 0x323   :  { %v780_v38 = vmul.f32 %v778_v26, %v7164_v10  ;;  %v666_v14 = vmul.f32 %v663_v9, %v621_v6  ;;  %v809_v27 = vmul.f32 %v807_v39, %v766_v48  ;;  %v797_v18 = vmul.f32 0.8333333, %v7138_v44  ;;  %v848_v48 = vld [vmem:[%s6723_s29 + $0x18] sm:$0xff]  ;;  %v5362_v1 = vld [vmem:[%s6728_s3 + $0x270] sm:$0xff]  ;;  %v5393_v32 = vld [vmem:[%s6728_s3 + $0x368] sm:$0xff] }
 0x324   :  { %v6475_v13 = vpack.i.bf16 %v806_v52, %v816_v8  ;;  %v667_v15 = vmul.f32 %v665_v33, %v7105_v16  ;;  %v810_v17 = vmul.f32 %v808_v12, %v771_v45  ;;  %v798_v25 = vmul.f32 0.8333333, %v7198_v19  ;;  %v5394_v53 = vld [vmem:[%s6728_s3 + $0x370] sm:$0xff]  ;;  %v5377_v52 = vld [vmem:[%s6728_s3 + $0x2e8] sm:$0xff]  ;;  %v5408_v6 = vld [vmem:[%s6728_s3 + $0x3e0] sm:$0xff] }
 0x325   :  { %v732_v31 = vmul.f32 1.25, %v5328_v5  ;;  %v799_v51 = vmul.f32 %v797_v18, %v7180_v28  ;;  %v777_v34 = vmul.f32 0.8333333, %v5328_v5  ;;  %v5338_v44 = vmul.f32 -1.442695, %v7095_v47  ;;  %v5361_v5 = vld [vmem:[%s6728_s3 + $0x268] sm:$0xff] }
 0x326   :  { %6476 = vrot.lane.b32.xlu1 %v6475_v13, %s6669_s1  ;;  %v668_v20 = vadd.f32 %v667_v15, %v666_v14  ;;  %v811_v24 = vadd.f32 %v810_v17, %v809_v27  ;;  %v800_v10 = vmul.f32 %v798_v25, %v761_v42  ;;  %vm833_vm6 = vcmask 523264   ;;  %v852_v42 = vld [vmem:[%s6723_s29 + $0x38] sm:$0xff]  ;;  %v5392_v26 = vld [vmem:[%s6728_s3 + $0x360] sm:$0xff]  ;;  %v5358_v12 = vld [vmem:[%s6728_s3 + $0x250] sm:$0xff] }
 0x327   :  { %6486 = vpow2.f32 %v5338_v44  ;;  %v5375_v8 = vld [vmem:[%s6728_s3 + $0x2d8] sm:$0xff]  ;;  %v5390_v13 = vld [vmem:[%s6728_s3 + $0x350] sm:$0xff]  ;;  %v5373_v14 = vld [vmem:[%s6728_s3 + $0x2c8] sm:$0xff]  ;;  %vm1705_vm7 = vcmask 1045504   ;;  %vm1756_vm8 = vcmask 261120   ;;  %vm1707_vm10 = vcmask 1041408  }
 0x328   :  { %v734_v29 = vmul.f32 %v732_v31, %v668_v20  ;;  %v801_v58 = vadd.f32 %v800_v10, %v799_v51  ;;  %v5407_v9 = vld [vmem:[%s6728_s3 + $0x3d8] sm:$0xff]  ;;  %v5405_v15 = vld [vmem:[%s6728_s3 + $0x3c8] sm:$0xff]  ;;  %v5372_v18 = vld [vmem:[%s6728_s3 + $0x2c0] sm:$0xff]  ;;  %vm1760_vm11 = vcmask 257024   ;;  %vm1899_vm12 = vcmask 64512  }
 0x329   :  { %v5359_v33 = vld [vmem:[%s6728_s3 + $0x258] sm:$0xff]  ;;  %v5357_v27 = vld [vmem:[%s6728_s3 + $0x248] sm:$0xff]  ;;  %v5404_v25 = vld [vmem:[%s6728_s3 + $0x3c0] sm:$0xff]  ;;  %vm1990_vm0 = vcmask 93184   ;;  %vm2021_vm1 = vcmask 1043456   ;;  %vm2740_vm3 = vcmask 130048  }
 0x32a   :  { %v736_v30 = vadd.f32 %v735_v11, %v734_v29  ;;  %v5391_v39 = vld [vmem:[%s6728_s3 + $0x358] sm:$0xff]  ;;  %v5374_v11 = vld [vmem:[%s6728_s3 + $0x2d0] sm:$0xff]  ;;  %v5389_v17 = vld [vmem:[%s6728_s3 + $0x348] sm:$0xff] }
 0x32b   :  { %v5356_v20 = vld [vmem:[%s6728_s3 + $0x240] sm:$0xff]  ;;  %v5403_v51 = vld [vmem:[%s6728_s3 + $0x3b8] sm:$0xff]  ;;  %v5401_v44 = vld [vmem:[%s6728_s3 + $0x3a8] sm:$0xff] }
 0x32c   :  { %v779_v16 = vmul.f32 %v777_v34, %v736_v30  ;;  %v5388_v31 = vld [vmem:[%s6728_s3 + $0x340] sm:$0xff]  ;;  %v5355_v10 = vld [vmem:[%s6728_s3 + $0x238] sm:$0xff]  ;;  %v5402_v30 = vld [vmem:[%s6728_s3 + $0x3b0] sm:$0xff] }
 0x32d   :  { %v5387_v29 = vld [vmem:[%s6728_s3 + $0x338] sm:$0xff]  ;;  %v5354_v34 = vld [vmem:[%s6728_s3 + $0x230] sm:$0xff] }
 0x32e   :  { %v781_v35 = vadd.f32 %v780_v38, %v779_v16  ;;  %v5406_v38 = vld [vmem:[%s6728_s3 + $0x3d0] sm:$0xff] }
 0x32f   :  { %v5386_v16 = vld [vmem:[%s6728_s3 + $0x330] sm:$0xff] }
 0x334   :  { %v6487_v19 = vpop.eup %6486 }
 0x335   :  { %v841_v36 = vadd.f32 1.0, %v6487_v19  ;;  %v5353_v19 = vld [vmem:[%s6728_s3 + $0x228] sm:$0xff] }
 0x337   :  { %6488 = vrcp.f32 %v841_v36  ;;  %v5385_v36 = vld [vmem:[%s6728_s3 + $0x328] sm:$0xff] }
 0x344   :  { %v6489_v56 = vpop.eup %6488 }
 0x345   :  { %v7273_v62 = vmul.f32 %v6489_v56, %v7095_v47  ;;  %v5378_v47 = vld [vmem:[%s6728_s3 + $0x2f0] sm:$0xff] }
 0x346   :  { %v5350_v56 = vld [vmem:[%s6728_s3 + $0x210] sm:$0xff] }
 0x386   :  { %v6472_v40 = vpop.permute.xlu1 %6471 }
 0x387   :  { %v6474_v37 = vunpack.i.h.bf16 %v6472_v40  ;;  %v6473_v28 = vunpack.i.l.bf16 %v6472_v40  ;;  %v5368_v40 = vld [vmem:[%s6728_s3 + $0x2a0] sm:$0xff] }
 0x389   :  { %v7247_v23 = vsel %vm833_vm6, %v791_v46, %v6473_v28  ;;  %v7250_v41 = vsel %vm833_vm6, %v781_v35, %v6474_v37  ;;  %v5376_v46 = vld [vmem:[%s6728_s3 + $0x2e0] sm:$0xff]  ;;  %v5369_v35 = vld [vmem:[%s6728_s3 + $0x2a8] sm:$0xff] }
 0x38a   :  { %981 = vmatprep.mubr.f32.mxu1 %v7247_v23  ;;  %v5400_v37 = vld [vmem:[%s6728_s3 + $0x3a0] sm:$0xff] }
 0x38b   :  { %982 = vmatmul.mubr.f32.vlgmr.msra.gmra.mxu1 %v7250_v41  ;;  %v5352_v28 = vld [vmem:[%s6728_s3 + $0x220] sm:$0xff] }
 0x38c   :  { %6033 = vmatpush3.msra.mxu1 %v852_v42  ;;  %6048 = vmatprep.mubr.msk.f32.mxu1 %vm6661_vm2, %v6660_v7  ;;  %v5384_v42 = vld [vmem:[%s6728_s3 + $0x320] sm:$0xff] }
 0x38d   :  { %6034 = vmatprep.subr.mxu1 %v6660_v7 }
 0x38e   :  { %6035 = vmatpush3.msra.mxu1 %v851_v43  ;;  %v5367_v43 = vld [vmem:[%s6728_s3 + $0x298] sm:$0xff] }
 0x38f   :  { %6036 = vmatprep.subr.mxu1 %v6660_v7 }
 0x390   :  { %6037 = vmatpush3.msra.mxu1 %v850_v21  ;;  %v5399_v21 = vld [vmem:[%s6728_s3 + $0x398] sm:$0xff] }
 0x391   :  { %6038 = vmatprep.subr.mxu1 %v6660_v7 }
 0x392   :  { %6039 = vmatpush3.msra.mxu1 %v849_v4  ;;  %v5351_v4 = vld [vmem:[%s6728_s3 + $0x218] sm:$0xff] }
 0x393   :  { %6040 = vmatprep.subr.mxu1 %v6660_v7 }
 0x394   :  { %6041 = vmatpush3.msra.mxu1 %v848_v48  ;;  %v5383_v48 = vld [vmem:[%s6728_s3 + $0x318] sm:$0xff] }
 0x395   :  { %6042 = vmatprep.subr.mxu1 %v6660_v7 }
 0x396   :  { %6043 = vmatpush3.msra.mxu1 %v847_v22  ;;  %v5366_v22 = vld [vmem:[%s6728_s3 + $0x290] sm:$0xff] }
 0x397   :  { %6044 = vmatprep.subr.mxu1 %v6660_v7 }
 0x398   :  { %v6477_v59 = vpop.permute.xlu1 %6476  ;;  %6045 = vmatpush3.msra.mxu1 %v846_v55  ;;  %v5398_v55 = vld [vmem:[%s6728_s3 + $0x390] sm:$0xff] }
 0x399   :  { %v6479_v54 = vunpack.i.h.bf16 %v6477_v59  ;;  %v6478_v45 = vunpack.i.l.bf16 %v6477_v59  ;;  %6046 = vmatprep.subr.mxu1 %v6660_v7  ;;  %v5365_v59 = vld [vmem:[%s6728_s3 + $0x288] sm:$0xff] }
 0x39a   :  { %6047 = vmatpush3.msra.mxu1 %v845_v57  ;;  %v5382_v57 = vld [vmem:[%s6728_s3 + $0x310] sm:$0xff] }
 0x39b   :  { %v7277_v61 = vsel %vm833_vm6, %v811_v24, %v6478_v45  ;;  %v7280_v50 = vsel %vm833_vm6, %v801_v58, %v6479_v54  ;;  %6049 = vmatmul.mubr.msk.f32.vlgmr.msra.gmra.mxu1 %vm833_vm6, %v7273_v62  ;;  %5731 = vmatprep.subr.mxu1 %v5411_v60  ;;  %v5371_v24 = vld [vmem:[%s6728_s3 + $0x2b8] sm:$0xff]  ;;  %v5370_v58 = vld [vmem:[%s6728_s3 + $0x2b0] sm:$0xff]  ;;  %v5397_v60 = vld [vmem:[%s6728_s3 + $0x388] sm:$0xff] }
 0x39c   :  { %1051 = vmatprep.mubr.f32.mxu0 %v7277_v61  ;;  %5732 = vmatpush3.msra.mxu1 %v5395_v63  ;;  %v5349_v54 = vld [vmem:[%s6728_s3 + $0x208] sm:$0xff]  ;;  %v5364_v63 = vld [vmem:[%s6728_s3 + $0x280] sm:$0xff] }
 0x39d   :  { %1052 = vmatmul.mubr.f32.vlgmr.msra.gmra.mxu0 %v7280_v50  ;;  %1338 = vmatprep.mubr.f32.mxu1 %v7277_v61  ;;  %v5381_v45 = vld [vmem:[%s6728_s3 + $0x308] sm:$0xff] }
 0x39e   :  { %5697 = vmatpush3.msra.mxu0 %v5363_v0  ;;  %1268 = vmatprep.mubr.f32.mxu0 %v7247_v23  ;;  %v5396_v0 = vld [vmem:[%s6728_s3 + $0x380] sm:$0xff] }
 0x39f   :  { %5698 = vmatprep.subr.mxu0 %v5378_v47  ;;  %5733 = vmatprep.subr.mxu1 %v5410_v2  ;;  %v5348_v47 = vld [vmem:[%s6728_s3 + $0x200] sm:$0xff] }
 0x3a0   :  { %5699 = vmatpush3.msra.mxu0 %v5362_v1  ;;  %5734 = vmatpush3.msra.mxu1 %v5394_v53  ;;  %v5380_v2 = vld [vmem:[%s6728_s3 + $0x300] sm:$0xff]  ;;  %v5347_v1 = vld [vmem:[%s6723_s29 + $0x78] sm:$0xff] }
 0x3a1   :  { %5700 = vmatprep.subr.mxu0 %v5377_v52  ;;  %5735 = vmatprep.subr.mxu1 %v5409_v3  ;;  %v5452_v53 = vld [vmem:[%s6728_s3 + $0x4f8] sm:$0xff]  ;;  %v5346_v52 = vld [vmem:[%s6723_s29 + $0x70] sm:$0xff] }
 0x3a2   :  { %5701 = vmatpush3.msra.mxu0 %v5361_v5  ;;  %5736 = vmatpush3.msra.mxu1 %v5393_v32  ;;  %v5436_v3 = vld [vmem:[%s6728_s3 + $0x478] sm:$0xff]  ;;  %v5345_v5 = vld [vmem:[%s6723_s29 + $0x68] sm:$0xff]  ;;  %v5451_v32 = vld [vmem:[%s6728_s3 + $0x4f0] sm:$0xff] }
 0x3a3   :  { %5702 = vmatprep.subr.mxu0 %v5376_v46  ;;  %5737 = vmatprep.subr.mxu1 %v5408_v6  ;;  %v5344_v46 = vld [vmem:[%s6723_s29 + $0x60] sm:$0xff]  ;;  %v5435_v6 = vld [vmem:[%s6728_s3 + $0x470] sm:$0xff] }
 0x3a4   :  { %5703 = vmatpush3.msra.mxu0 %v5360_v49  ;;  %5738 = vmatpush3.msra.mxu1 %v5392_v26  ;;  %v5450_v49 = vld [vmem:[%s6728_s3 + $0x4e8] sm:$0xff]  ;;  %v5343_v26 = vld [vmem:[%s6723_s29 + $0x58] sm:$0xff] }
 0x3a5   :  { %5704 = vmatprep.subr.mxu0 %v5375_v8  ;;  %5739 = vmatprep.subr.mxu1 %v5407_v9  ;;  %v5434_v8 = vld [vmem:[%s6728_s3 + $0x468] sm:$0xff]  ;;  %v5449_v9 = vld [vmem:[%s6728_s3 + $0x4e0] sm:$0xff] }
 0x3a6   :  { %5705 = vmatpush3.msra.mxu0 %v5359_v33  ;;  %5740 = vmatpush3.msra.mxu1 %v5391_v39  ;;  %v5433_v33 = vld [vmem:[%s6728_s3 + $0x460] sm:$0xff]  ;;  %v5448_v39 = vld [vmem:[%s6728_s3 + $0x4d8] sm:$0xff] }
 0x3a7   :  { %5706 = vmatprep.subr.mxu0 %v5374_v11  ;;  %5741 = vmatprep.subr.mxu1 %v5406_v38  ;;  %v5341_v11 = vld [vmem:[%s6723_s29 + $0x48] sm:$0xff]  ;;  %v5432_v38 = vld [vmem:[%s6728_s3 + $0x458] sm:$0xff] }
 0x3a8   :  { %5707 = vmatpush3.msra.mxu0 %v5358_v12  ;;  %5742 = vmatpush3.msra.mxu1 %v5390_v13  ;;  %v5447_v12 = vld [vmem:[%s6728_s3 + $0x4d0] sm:$0xff]  ;;  %v5340_v13 = vld [vmem:[%s6723_s29 + $0x40] sm:$0xff] }
 0x3a9   :  { %5708 = vmatprep.subr.mxu0 %v5373_v14  ;;  %5743 = vmatprep.subr.mxu1 %v5405_v15  ;;  %v5431_v14 = vld [vmem:[%s6728_s3 + $0x450] sm:$0xff]  ;;  %v5484_v15 = vld [vmem:[%s6728_s3 + $0x5f8] sm:$0xff] }
 0x3aa   :  { %5709 = vmatpush3.msra.mxu0 %v5357_v27  ;;  %5744 = vmatpush3.msra.mxu1 %v5389_v17  ;;  %v5468_v27 = vld [vmem:[%s6728_s3 + $0x578] sm:$0xff]  ;;  %v5483_v17 = vld [vmem:[%s6728_s3 + $0x5f0] sm:$0xff] }
 0x3ab   :  { %5710 = vmatprep.subr.mxu0 %v5372_v18  ;;  %5745 = vmatprep.subr.mxu1 %v5404_v25  ;;  %v5446_v18 = vld [vmem:[%s6728_s3 + $0x4c8] sm:$0xff]  ;;  %v5467_v25 = vld [vmem:[%s6728_s3 + $0x570] sm:$0xff] }
 0x3ac   :  { %5711 = vmatpush3.msra.mxu0 %v5356_v20  ;;  %5746 = vmatpush3.msra.mxu1 %v5388_v31  ;;  %v5430_v20 = vld [vmem:[%s6728_s3 + $0x448] sm:$0xff] }
 0x3ad   :  { %5712 = vmatprep.subr.mxu0 %v5371_v24  ;;  %5747 = vmatprep.subr.mxu1 %v5403_v51  ;;  %v5482_v31 = vld [vmem:[%s6728_s3 + $0x5e8] sm:$0xff]  ;;  %v5445_v24 = vld [vmem:[%s6728_s3 + $0x4c0] sm:$0xff] }
 0x3ae   :  { %5713 = vmatpush3.msra.mxu0 %v5355_v10  ;;  %5748 = vmatpush3.msra.mxu1 %v5387_v29  ;;  %v5466_v51 = vld [vmem:[%s6728_s3 + $0x568] sm:$0xff]  ;;  %v5429_v10 = vld [vmem:[%s6728_s3 + $0x440] sm:$0xff] }
 0x3af   :  { %5714 = vmatprep.subr.mxu0 %v5370_v58  ;;  %5749 = vmatprep.subr.mxu1 %v5402_v30  ;;  %v5481_v29 = vld [vmem:[%s6728_s3 + $0x5e0] sm:$0xff]  ;;  %v5444_v58 = vld [vmem:[%s6728_s3 + $0x4b8] sm:$0xff] }
 0x3b0   :  { %5715 = vmatpush3.msra.mxu0 %v5354_v34  ;;  %5750 = vmatpush3.msra.mxu1 %v5386_v16  ;;  %v5465_v30 = vld [vmem:[%s6728_s3 + $0x560] sm:$0xff]  ;;  %v5480_v34 = vld [vmem:[%s6728_s3 + $0x5d8] sm:$0xff]  ;;  %v5443_v16 = vld [vmem:[%s6728_s3 + $0x4b0] sm:$0xff] }
 0x3b1   :  { %5716 = vmatprep.subr.mxu0 %v5369_v35  ;;  %5751 = vmatprep.subr.mxu1 %v5401_v44  ;;  %v5464_v35 = vld [vmem:[%s6728_s3 + $0x558] sm:$0xff]  ;;  %v5427_v44 = vld [vmem:[%s6728_s3 + $0x430] sm:$0xff] }
 0x3b2   :  { %5717 = vmatpush3.msra.mxu0 %v5353_v19  ;;  %5752 = vmatpush3.msra.mxu1 %v5385_v36  ;;  %v5479_v19 = vld [vmem:[%s6728_s3 + $0x5d0] sm:$0xff]  ;;  %v5442_v36 = vld [vmem:[%s6728_s3 + $0x4a8] sm:$0xff] }
 0x3b3   :  { %5718 = vmatprep.subr.mxu0 %v5368_v40  ;;  %5753 = vmatprep.subr.mxu1 %v5400_v37  ;;  %v5463_v40 = vld [vmem:[%s6728_s3 + $0x550] sm:$0xff]  ;;  %v5426_v37 = vld [vmem:[%s6728_s3 + $0x428] sm:$0xff] }
 0x3b4   :  { %5719 = vmatpush3.msra.mxu0 %v5352_v28  ;;  %5754 = vmatpush3.msra.mxu1 %v5384_v42  ;;  %v5478_v28 = vld [vmem:[%s6728_s3 + $0x5c8] sm:$0xff]  ;;  %v5441_v42 = vld [vmem:[%s6728_s3 + $0x4a0] sm:$0xff] }
 0x3b5   :  { %5720 = vmatprep.subr.mxu0 %v5367_v43  ;;  %5755 = vmatprep.subr.mxu1 %v5399_v21  ;;  %v5462_v43 = vld [vmem:[%s6728_s3 + $0x548] sm:$0xff]  ;;  %v5425_v21 = vld [vmem:[%s6728_s3 + $0x420] sm:$0xff] }
 0x3b6   :  { %5721 = vmatpush3.msra.mxu0 %v5351_v4  ;;  %5756 = vmatpush3.msra.mxu1 %v5383_v48  ;;  %v5477_v4 = vld [vmem:[%s6728_s3 + $0x5c0] sm:$0xff]  ;;  %v5440_v48 = vld [vmem:[%s6728_s3 + $0x498] sm:$0xff] }
 0x3b7   :  { %5722 = vmatprep.subr.mxu0 %v5366_v22  ;;  %5757 = vmatprep.subr.mxu1 %v5398_v55  ;;  %v5461_v22 = vld [vmem:[%s6728_s3 + $0x540] sm:$0xff]  ;;  %v5424_v55 = vld [vmem:[%s6728_s3 + $0x418] sm:$0xff] }
 0x3b8   :  { %5723 = vmatpush3.msra.mxu0 %v5350_v56  ;;  %5758 = vmatpush3.msra.mxu1 %v5382_v57  ;;  %v5476_v56 = vld [vmem:[%s6728_s3 + $0x5b8] sm:$0xff]  ;;  %v5439_v57 = vld [vmem:[%s6728_s3 + $0x490] sm:$0xff] }
 0x3b9   :  { %5724 = vmatprep.subr.mxu0 %v5365_v59  ;;  %5759 = vmatprep.subr.mxu1 %v5397_v60  ;;  %v5460_v59 = vld [vmem:[%s6728_s3 + $0x538] sm:$0xff]  ;;  %v5423_v60 = vld [vmem:[%s6728_s3 + $0x410] sm:$0xff] }
 0x3ba   :  { %5725 = vmatpush3.msra.mxu0 %v5349_v54  ;;  %5760 = vmatpush3.msra.mxu1 %v5381_v45  ;;  %v5475_v54 = vld [vmem:[%s6728_s3 + $0x5b0] sm:$0xff]  ;;  %v5438_v45 = vld [vmem:[%s6728_s3 + $0x488] sm:$0xff] }
 0x3bb   :  { %5726 = vmatprep.subr.mxu0 %v5364_v63  ;;  %5761 = vmatprep.subr.mxu1 %v5396_v0  ;;  %v5459_v63 = vld [vmem:[%s6728_s3 + $0x530] sm:$0xff]  ;;  %v5422_v0 = vld [vmem:[%s6728_s3 + $0x408] sm:$0xff] }
 0x3bc   :  { %5727 = vmatpush3.msra.mxu0 %v5348_v47  ;;  %5762 = vmatpush3.msra.mxu1 %v5380_v2  ;;  %v5474_v47 = vld [vmem:[%s6728_s3 + $0x5a8] sm:$0xff]  ;;  %v5437_v2 = vld [vmem:[%s6728_s3 + $0x480] sm:$0xff] }
 0x3bd   :  { %1269 = vmatmul.mubr.f32.vlgmr.msra.gmra.mxu0 %v7250_v41  ;;  %6051 = vmatprep.subr.mxu0 %v6660_v7 }
 0x3be   :  { %6052 = vmatpush3.msra.mxu0 %v5347_v1  ;;  %1339 = vmatmul.mubr.f32.vlgmr.msra.gmra.mxu1 %v7280_v50  ;;  %v5458_v1 = vld [vmem:[%s6728_s3 + $0x528] sm:$0xff] }
 0x3bf   :  { %6053 = vmatprep.subr.mxu0 %v6660_v7  ;;  %5775 = vmatprep.subr.mxu1 %v5452_v53  ;;  %v5421_v53 = vld [vmem:[%s6728_s3 + $0x400] sm:$0xff] }
 0x3c0   :  { %6054 = vmatpush3.msra.mxu0 %v5346_v52  ;;  %5776 = vmatpush3.msra.mxu1 %v5436_v3  ;;  %v5473_v52 = vld [vmem:[%s6728_s3 + $0x5a0] sm:$0xff] }
 0x3c1   :  { %6055 = vmatprep.subr.mxu0 %v6660_v7  ;;  %1552 = vmatprep.mubr.f32.mxu1 %v7247_v23  ;;  %v5342_v23 = vld [vmem:[%s6723_s29 + $0x50] sm:$0xff]  ;;  %v5457_v3 = vld [vmem:[%s6728_s3 + $0x520] sm:$0xff] }
 0x3c2   :  { %6056 = vmatpush3.msra.mxu0 %v5345_v5  ;;  %5777 = vmatprep.subr.mxu1 %v5451_v32  ;;  %v5472_v5 = vld [vmem:[%s6728_s3 + $0x598] sm:$0xff] }
 0x3c3   :  { %6057 = vmatprep.subr.mxu0 %v6660_v7  ;;  %6067 = vmatprep.mubr.msk.f32.mxu0 %vm6661_vm2, %v6660_v7  ;;  %v5420_v32 = vld [vmem:[%s6723_s29 + $0xb8] sm:$0xff] }
 0x3c4   :  { %6058 = vmatpush3.msra.mxu0 %v5344_v46  ;;  %5778 = vmatpush3.msra.mxu1 %v5435_v6  ;;  %v5456_v46 = vld [vmem:[%s6728_s3 + $0x518] sm:$0xff]  ;;  %v5471_v6 = vld [vmem:[%s6728_s3 + $0x590] sm:$0xff] }
 0x3c5   :  { %6059 = vmatprep.subr.mxu0 %v6660_v7  ;;  %5779 = vmatprep.subr.mxu1 %v5450_v49  ;;  %v5419_v49 = vld [vmem:[%s6723_s29 + $0xb0] sm:$0xff] }
 0x3c6   :  { %6060 = vmatpush3.msra.mxu0 %v5343_v26  ;;  %5780 = vmatpush3.msra.mxu1 %v5434_v8  ;;  %v5455_v26 = vld [vmem:[%s6728_s3 + $0x510] sm:$0xff]  ;;  %v5470_v8 = vld [vmem:[%s6728_s3 + $0x588] sm:$0xff] }
 0x3c7   :  { %6061 = vmatprep.subr.mxu0 %v6660_v7  ;;  %5781 = vmatprep.subr.mxu1 %v5449_v9  ;;  %v5418_v9 = vld [vmem:[%s6723_s29 + $0xa8] sm:$0xff] }
 0x3c8   :  { %6062 = vmatpush3.msra.mxu0 %v5342_v23  ;;  %5782 = vmatpush3.msra.mxu1 %v5433_v33  ;;  %v5454_v23 = vld [vmem:[%s6728_s3 + $0x508] sm:$0xff]  ;;  %v5417_v33 = vld [vmem:[%s6723_s29 + $0xa0] sm:$0xff] }
 0x3c9   :  { %6063 = vmatprep.subr.mxu0 %v6660_v7  ;;  %5783 = vmatprep.subr.mxu1 %v5448_v39  ;;  %v5453_v39 = vld [vmem:[%s6728_s3 + $0x500] sm:$0xff] }
 0x3ca   :  { %6064 = vmatpush3.msra.mxu0 %v5341_v11  ;;  %5784 = vmatpush3.msra.mxu1 %v5432_v38  ;;  %v5416_v11 = vld [vmem:[%s6723_s29 + $0x98] sm:$0xff]  ;;  %v5415_v38 = vld [vmem:[%s6723_s29 + $0x90] sm:$0xff] }
 0x3cb   :  { %6065 = vmatprep.subr.mxu0 %v6660_v7  ;;  %5785 = vmatprep.subr.mxu1 %v5447_v12  ;;  %v5414_v12 = vld [vmem:[%s6723_s29 + $0x88] sm:$0xff] }
 0x3cc   :  { %6066 = vmatpush3.msra.mxu0 %v5340_v13  ;;  %5786 = vmatpush3.msra.mxu1 %v5431_v14  ;;  %v5413_v13 = vld [vmem:[%s6723_s29 + $0x80] sm:$0xff]  ;;  %s6671_s29 = smov 88  }
 0x3cd   :  { %6068 = vmatmul.mubr.msk.f32.vlgmr.msra.gmra.mxu0 %vm833_vm6, %v7273_v62  ;;  %5810 = vmatprep.subr.mxu0 %v5484_v15 }
 0x3ce   :  { %5811 = vmatpush3.msra.mxu0 %v5468_v27  ;;  %1622 = vmatprep.mubr.f32.mxu0 %v7277_v61  ;;  %v5428_v61 = vld [vmem:[%s6728_s3 + $0x438] sm:$0xff] }
 0x3cf   :  { %5812 = vmatprep.subr.mxu0 %v5483_v17  ;;  %5787 = vmatprep.subr.mxu1 %v5446_v18 }
 0x3d0   :  { %5813 = vmatpush3.msra.mxu0 %v5467_v25  ;;  %5788 = vmatpush3.msra.mxu1 %v5430_v20 }
 0x3d1   :  { %5814 = vmatprep.subr.mxu0 %v5482_v31  ;;  %5789 = vmatprep.subr.mxu1 %v5445_v24 }
 0x3d2   :  { %5815 = vmatpush3.msra.mxu0 %v5466_v51  ;;  %5790 = vmatpush3.msra.mxu1 %v5429_v10  ;;  %v1698_v51 = vld [vmem:[%s6693_s5] sm:$0x3f]  ;;  %s6670_s5 = smov 96  }
 0x3d3   :  { %5816 = vmatprep.subr.mxu0 %v5481_v29  ;;  %5791 = vmatprep.subr.mxu1 %v5444_v58 }
 0x3d4   :  { %5817 = vmatpush3.msra.mxu0 %v5465_v30  ;;  %5792 = vmatpush3.msra.mxu1 %v5428_v61 }
 0x3d5   :  { %5818 = vmatprep.subr.mxu0 %v5480_v34  ;;  %5793 = vmatprep.subr.mxu1 %v5443_v16 }
 0x3d6   :  { %5819 = vmatpush3.msra.mxu0 %v5464_v35  ;;  %5794 = vmatpush3.msra.mxu1 %v5427_v44 }
 0x3d7   :  { %5820 = vmatprep.subr.mxu0 %v5479_v19  ;;  %5795 = vmatprep.subr.mxu1 %v5442_v36 }
 0x3d8   :  { %5821 = vmatpush3.msra.mxu0 %v5463_v40  ;;  %5796 = vmatpush3.msra.mxu1 %v5426_v37 }
 0x3d9   :  { %5822 = vmatprep.subr.mxu0 %v5478_v28  ;;  %5797 = vmatprep.subr.mxu1 %v5441_v42 }
 0x3da   :  { %5823 = vmatpush3.msra.mxu0 %v5462_v43  ;;  %5798 = vmatpush3.msra.mxu1 %v5425_v21 }
 0x3db   :  { %5824 = vmatprep.subr.mxu0 %v5477_v4  ;;  %5799 = vmatprep.subr.mxu1 %v5440_v48 }
 0x3dc   :  { %5825 = vmatpush3.msra.mxu0 %v5461_v22  ;;  %5800 = vmatpush3.msra.mxu1 %v5424_v55 }
 0x3dd   :  { %5826 = vmatprep.subr.mxu0 %v5476_v56  ;;  %5801 = vmatprep.subr.mxu1 %v5439_v57 }
 0x3de   :  { %5827 = vmatpush3.msra.mxu0 %v5460_v59  ;;  %5802 = vmatpush3.msra.mxu1 %v5423_v60 }
 0x3df   :  { %5828 = vmatprep.subr.mxu0 %v5475_v54  ;;  %5803 = vmatprep.subr.mxu1 %v5438_v45 }
 0x3e0   :  { %5829 = vmatpush3.msra.mxu0 %v5459_v63  ;;  %5804 = vmatpush3.msra.mxu1 %v5422_v0 }
 0x3e1   :  { %5830 = vmatprep.subr.mxu0 %v5474_v47  ;;  %5805 = vmatprep.subr.mxu1 %v5437_v2 }
 0x3e2   :  { %5831 = vmatpush3.msra.mxu0 %v5458_v1  ;;  %5806 = vmatpush3.msra.mxu1 %v5421_v53 }
 0x3e3   :  { %5832 = vmatprep.subr.mxu0 %v5473_v52  ;;  %1553 = vmatmul.mubr.f32.vlgmr.msra.gmra.mxu1 %v7250_v41  ;;  %v5469_v41 = vld [vmem:[%s6728_s3 + $0x580] sm:$0xff]  ;;  %s6672_s3 = smov 120  }
 0x3e4   :  { %5833 = vmatpush3.msra.mxu0 %v5457_v3  ;;  %6070 = vmatprep.subr.mxu1 %v6660_v7 }
 0x3e5   :  { %5834 = vmatprep.subr.mxu0 %v5472_v5  ;;  %6071 = vmatpush3.msra.mxu1 %v5420_v32  ;;  %v1804_v5 = vld [vmem:[%s6743_s19 + $0x18] sm:$0xff]  ;;  %v1803_v32 = vld [vmem:[%s6743_s19 + $0x10] sm:$0xff] }
 0x3e6   :  { %5835 = vmatpush3.msra.mxu0 %v5456_v46  ;;  %6072 = vmatprep.subr.mxu1 %v6660_v7  ;;  %v1802_v46 = vld [vmem:[%s6743_s19 + $0x8] sm:$0xff] }
 0x3e7   :  { %5836 = vmatprep.subr.mxu0 %v5471_v6  ;;  %6073 = vmatpush3.msra.mxu1 %v5419_v49  ;;  %v1801_v6 = vld [vmem:[%s6743_s19] sm:$0xff]  ;;  %s6676_s19 = smov 112  }
 0x3e8   :  { %5837 = vmatpush3.msra.mxu0 %v5455_v26  ;;  %6074 = vmatprep.subr.mxu1 %v6660_v7 }
 0x3e9   :  { %5838 = vmatprep.subr.mxu0 %v5470_v8  ;;  %6075 = vmatpush3.msra.mxu1 %v5418_v9 }
 0x3ea   :  { %5839 = vmatpush3.msra.mxu0 %v5454_v23  ;;  %6076 = vmatprep.subr.mxu1 %v6660_v7  ;;  %v5486_v23 = vld [vmem:[%s6733_s8] ss:$0 sm:$0xff]  ;;  %s6674_s8 = smov 56  }
 0x3eb   :  { %5840 = vmatprep.subr.mxu0 %v5469_v41  ;;  %6077 = vmatpush3.msra.mxu1 %v5417_v33  ;;  %v5487_v33 = vld [vmem:[%s6738_s14] ss:$0 sm:$0xff]  ;;  %s6675_s14 = smov 80  }
 0x3ec   :  { %5841 = vmatpush3.msra.mxu0 %v5453_v39  ;;  %6078 = vmatprep.subr.mxu1 %v6660_v7 }
 0x3ed   :  { %1623 = vmatmul.mubr.f32.vlgmr.msra.gmra.mxu0 %v7280_v50  ;;  %6079 = vmatpush3.msra.mxu1 %v5416_v11 }
 0x3ee   :  { %6080 = vmatprep.subr.mxu1 %v6660_v7  ;;  %6086 = vmatprep.mubr.msk.f32.mxu1 %vm6661_vm2, %v6660_v7 }
 0x3ef   :  { %6081 = vmatpush3.msra.mxu1 %v5415_v38  ;;  %6089 = vmatprep.subr.mxu0 %v1804_v5 }
 0x3f0   :  { %6082 = vmatprep.subr.mxu1 %v6660_v7  ;;  %6090 = vmatpush3.msra.mxu0 %v1804_v5 }
 0x3f1   :  { %6083 = vmatpush3.msra.mxu1 %v5414_v12  ;;  %6091 = vmatprep.subr.mxu0 %v1803_v32 }
 0x3f2   :  { %6084 = vmatprep.subr.mxu1 %v6660_v7  ;;  %6092 = vmatpush3.msra.mxu0 %v1803_v32 }
 0x3f3   :  { %6085 = vmatpush3.msra.mxu1 %v5413_v13  ;;  %6093 = vmatprep.subr.mxu0 %v1802_v46 }
 0x3f4   :  { %6087 = vmatmul.mubr.msk.f32.vlgmr.msra.gmra.mxu1 %vm833_vm6, %v7273_v62  ;;  %6094 = vmatpush3.msra.mxu0 %v1802_v46 }
 0x3f5   :  { %6095 = vmatprep.subr.mxu0 %v1801_v6 }
 0x3f6   :  { %6096 = vmatpush3.msra.mxu0 %v1801_v6 }
 0x44b   :  { %v5649_v50 = vpop.f32.mrf.mxu1 }
 0x44d   :  { %v5650_v14 = vpop.f32.mrf.mxu1 }
 0x44e   :  { %v5651_v25 = vadd.f32 %v5650_v14, %v5649_v50 }
 0x45b   :  { %v1126_v15 = vpop.f32.mrf.mxu1 }
 0x45d   :  { %v5684_v27 = vpop.f32.mrf.mxu0  ;;  %v6050_v17 = vpop.f32.mrf.mxu1 }
 0x45e   :  { %v5488_v17 = vld [vmem:[%s6748_s24] ss:$0 sm:$0xff]  ;;  %s6677_s24 = smov 48  }
 0x45f   :  { %v5685_v18 = vpop.f32.mrf.mxu0 }
 0x460   :  { %v5686_v20 = vadd.f32 %v5685_v18, %v5684_v27 }
 0x462   :  { %v1054_v31 = vadd.f32 %v5686_v20, %v5651_v25 }
 0x464   :  { %v1127_v24 = vadd.f32 %v1126_v15, %v1054_v31 }
 0x466   :  { %v1700_v10 = vrot.slane %v1127_v24, 2 }
 0x468   :  { %v7460_v29 = vsel %vm1705_vm7, %v1698_v51, %v1700_v10  ;;  %vm5139_vm7 = vcmask 254976  }
 0x469   :  { %v1757_v58 = vsel %vm1756_vm8, %v7460_v29, 0.0 }
 0x46a   :  { %1758 = vadd.xlane.f32.xlu0 %v1757_v58 }
 0x47d   :  { %v5728_v62 = vpop.f32.mrf.mxu0 }
 0x47e   :  { %v5763_v16 = vpop.f32.mrf.mxu1 }
 0x47f   :  { %v5729_v30 = vpop.f32.mrf.mxu0 }
 0x480   :  { %v5764_v35 = vpop.f32.mrf.mxu1  ;;  %v5730_v42 = vadd.f32 %v5729_v30, %v5728_v62 }
 0x481   :  { %v5765_v40 = vadd.f32 %v5764_v35, %v5763_v16 }
 0x483   :  { %v1341_v21 = vadd.f32 %v5765_v40, %v5730_v42 }
 0x48d   :  { %v1410_v61 = vpop.f32.mrf.mxu0 }
 0x48e   :  { %v1411_v56 = vadd.f32 %v1410_v61, %v1341_v21  ;;  %v1709_v61 = vlaneseq }
 0x48f   :  { %v6069_v34 = vpop.f32.mrf.mxu0 }
 0x490   :  { %v1710_v34 = vshrl.u32 %v1709_v61, 7  ;;  %v1737_v35 = vand.u32 127, %v1709_v61 }
 0x492   :  { %v1711_v16 = vadd.s32 8, %v1710_v34 }
 0x4a3   :  { %v5807_v44 = vpop.f32.mrf.mxu1 }
 0x4a5   :  { %v5808_v36 = vpop.f32.mrf.mxu1 }
 0x4a6   :  { %v5809_v43 = vadd.f32 %v5808_v36, %v5807_v44  ;;  %v1723_v44 = vand.u32 1, %v1711_v16  ;;  %v1716_v36 = vand.u32 1, %v1710_v34 }
 0x4ad   :  { %v5842_v19 = vpop.f32.mrf.mxu0 }
 0x4af   :  { %v5843_v37 = vpop.f32.mrf.mxu0 }
 0x4b0   :  { %v5844_v28 = vadd.f32 %v5843_v37, %v5842_v19  ;;  %v1742_v19 = vand.u32 1, %v1737_v35  ;;  %v6673_v37 = vmov -1e+30  }
 0x4b2   :  { %v1625_v4 = vadd.f32 %v5844_v28, %v5809_v43  ;;  %vm1751_vm14 = vcmp.eq.s32.totalorder %v1723_v44, %v1742_v19  ;;  %vm1750_vm15 = vcmp.eq.s32.totalorder %v1716_v36, %v1742_v19 }
 0x4b3   :  { %v7511_v28 = vsel %vm1751_vm14, 0.0, %v6673_v37  ;;  %v7513_v21 = vsel %vm1750_vm15, 0.0, %v6673_v37 }
 0x4b4   :  { %v1694_v48 = vpop.f32.mrf.mxu1 }
 0x4b5   :  { %v1695_v22 = vadd.f32 %v1694_v48, %v1625_v4 }
 0x4b6   :  { %v6088_v55 = vpop.f32.mrf.mxu1 }
 0x4b7   :  { %v1703_v57 = vrot.slane %v1695_v22, 6 }
 0x4b9   :  { %v7464_v59 = vsel %vm1707_vm10, %v1411_v56, %v1703_v57 }
 0x4ba   :  { %v1761_v60 = vsel %vm1760_vm11, %v7464_v59, 0.0 }
 0x4bb   :  { %1762 = vadd.xlane.f32.xlu1 %v1761_v60 }
 0x4f3   :  { %v1759_v54 = vpop.xlane.xlu0 %1758 }
 0x4f4   :  { %v1765_v45 = vmul.f32 0.03125, %v1759_v54 }
 0x4f6   :  { %v1767_v63 = vsub.f32 %v7460_v29, %v1765_v45 }
 0x4f8   :  { %v1769_v0 = vmul.f32 %v1767_v63, %v1767_v63 }
 0x4fa   :  { %v1771_v47 = vsel %vm1756_vm8, %v1769_v0, 0.0 }
 0x4fb   :  { %1772 = vadd.xlane.f32.xlu0 %v1771_v47 }
 0x544   :  { %v1763_v2 = vpop.xlane.xlu1 %1762 }
 0x545   :  { %v1766_v1 = vmul.f32 0.03125, %v1763_v2 }
 0x547   :  { %v1768_v53 = vsub.f32 %v7464_v59, %v1766_v1 }
 0x549   :  { %v1770_v52 = vmul.f32 %v1768_v53, %v1768_v53 }
 0x54b   :  { %v1774_v3 = vsel %vm1760_vm11, %v1770_v52, 0.0 }
 0x54c   :  { %1775 = vadd.xlane.f32.xlu0 %v1774_v3 }
 0x584   :  { %v1773_v49 = vpop.xlane.xlu0 %1772 }
 0x585   :  { %v1777_v26 = vmul.f32 0.03125, %v1773_v49 }
 0x587   :  { %v1779_v8 = vadd.f32 1e-05, %v1777_v26 }
 0x589   :  { %6490 = vrsqrt.f32 %v1779_v8 }
 0x596   :  { %v6491_v9 = vpop.eup %6490 }
 0x597   :  { %v1783_v41 = vmul.f32 %v6491_v9, %v1767_v63 }
 0x599   :  { %v1791_v39 = vmul.f32 %v5486_v23, %v1783_v41 }
 0x59b   :  { %v1799_v11 = vadd.f32 %v5487_v33, %v1791_v39 }
 0x59d   :  { %6097 = vmatprep.mubr.msk.f32.mxu0 %vm1756_vm8, %v1799_v11 }
 0x5d5   :  { %v1776_v38 = vpop.xlane.xlu0 %1775 }
 0x5d6   :  { %v1778_v12 = vmul.f32 0.03125, %v1776_v38 }
 0x5d8   :  { %v1780_v13 = vadd.f32 1e-05, %v1778_v12 }
 0x5da   :  { %6492 = vrsqrt.f32 %v1780_v13 }
 0x5e7   :  { %v6493_v50 = vpop.eup %6492 }
 0x5e8   :  { %v1784_v14 = vmul.f32 %v6493_v50, %v1768_v53 }
 0x5ea   :  { %v1792_v15 = vmul.f32 %v5486_v23, %v1784_v14 }
 0x5ec   :  { %v1800_v27 = vadd.f32 %v5487_v33, %v1792_v15 }
 0x5ee   :  { %6098 = vmatmul.mubr.msk.f32.vlgmr.msra.gmra.mxu0 %vm1756_vm8, %v1800_v27 }
 0x6ae   :  { %v6099_v18 = vpop.f32.mrf.mxu0 }
 0x6af   :  { %v7481_v25 = vadd.f32 %v6099_v18, %v5488_v17 }
 0x6b0   :  { %v1884_v20 = vpop.f32.mrf.mxu0 }
 0x6b1   :  { %v7483_v31 = vadd.f32 %v5488_v17, %v1884_v20  ;;  %1897 = vrot.lane.b32.xlu1 %v7481_v25, %s6670_s5 }
 0x6b3   :  { %1895 = vrot.lane.b32.xlu0 %v7483_v31, %s6670_s5  ;;  %6104 = vmatprep.mubr.msk.f32.mxu0 %vm1899_vm12, %v7483_v31 }
 0x6b5   :  { %2105 = vrot.lane.b32.xlu1 %v7481_v25, %s6671_s29 }
 0x6b7   :  { %2099 = vrot.lane.b32.xlu0 %v7483_v31, %s6672_s3 }
 0x6b9   :  { %2103 = vrot.lane.b32.xlu1 %v7483_v31, %s6671_s29 }
 0x6bd   :  { %2101 = vrot.lane.b32.xlu1 %v7481_v25, %s6672_s3 }
 0x723   :  { %v1898_v24 = vpop.permute.xlu1 %1897 }
 0x724   :  { %6100 = vmatprep.subr.msk.mxu0 %vm1899_vm12, %v1898_v24 }
 0x725   :  { %6101 = vmatpush3.xpose.msk.msra.mxu0 %vm1899_vm12, %v1898_v24  ;;  %v1896_v51 = vpop.permute.xlu0 %1895 }
 0x726   :  { %6102 = vmatprep.subr.msk.mxu0 %vm1899_vm12, %v1896_v51 }
 0x727   :  { %v2106_v10 = vpop.permute.xlu1 %2105 }
 0x729   :  { %6103 = vmatpush3.xpose.msk.msra.mxu0 %vm1899_vm12, %v1896_v51  ;;  %v2100_v58 = vpop.permute.xlu0 %2099 }
 0x72a   :  { %6114 = vmatprep.subr.msk.mxu0 %vm1899_vm12, %v2106_v10 }
 0x72b   :  { %v2104_v62 = vpop.permute.xlu1 %2103 }
 0x72c   :  { %6105 = vmatmul.mubr.msk.f32.vlgmr.msra.gmra.mxu0 %vm1899_vm12, %v7481_v25 }
 0x72d   :  { %6115 = vmatpush3.xpose.msk.msra.mxu0 %vm1899_vm12, %v2106_v10  ;;  %6118 = vmatprep.mubr.msk.f32.mxu0 %vm1899_vm12, %v2100_v58 }
 0x72e   :  { %6116 = vmatprep.subr.msk.mxu0 %vm1899_vm12, %v2104_v62 }
 0x72f   :  { %v2102_v30 = vpop.permute.xlu1 %2101 }
 0x731   :  { %6117 = vmatpush3.xpose.msk.msra.mxu0 %vm1899_vm12, %v2104_v62 }
 0x734   :  { %6119 = vmatmul.mubr.msk.f32.vlgmr.msra.gmra.mxu0 %vm1899_vm12, %v2102_v30 }
 0x7ec   :  { %v6106_v40 = vpop.f32.mrf.mxu0 }
 0x7ed   :  { %v1984_v42 = vmul.f32 0.35355338, %v6106_v40 }
 0x7ee   :  { %v1974_v43 = vpop.f32.mrf.mxu0 }
 0x7ef   :  { %v1983_v4 = vmul.f32 0.35355338, %v1974_v43  ;;  %v1986_v48 = vadd.f32 %v1984_v42, %v7511_v28 }
 0x7f1   :  { %v1991_v22 = vsel %vm1990_vm0, %v1986_v48, -inf  ;;  %v1985_v55 = vadd.f32 %v1983_v4, %v7513_v21 }
 0x7f2   :  { %1992 = vmax.xlane.f32.xlu1 %v1991_v22 }
 0x7f3   :  { %v1987_v56 = vsel %vm448_vm9, %v1985_v55, -inf }
 0x7f4   :  { %v6120_v57 = vpop.f32.mrf.mxu0  ;;  %1988 = vmax.xlane.f32.xlu0 %v1987_v56 }
 0x7f5   :  { %v2191_v54 = vmul.f32 0.35355338, %v6120_v57 }
 0x7f6   :  { %v2181_v60 = vpop.f32.mrf.mxu0 }
 0x7f7   :  { %v2190_v45 = vmul.f32 0.35355338, %v2181_v60  ;;  %v2193_v47 = vadd.f32 %v2191_v54, %v7511_v28 }
 0x7f9   :  { %v2192_v63 = vadd.f32 %v2190_v45, %v7513_v21  ;;  %v2197_v2 = vsel %vm1990_vm0, %v2193_v47, -inf }
 0x7fb   :  { %v2194_v0 = vsel %vm448_vm9, %v2192_v63, -inf }
 0x7fc   :  { %2195 = vmax.xlane.f32.xlu0 %v2194_v0 }
 0x800   :  { %2198 = vmax.xlane.f32.xlu0 %v2197_v2 }
 0x803   :  { %2012 = vrot.lane.b32.xlu1 %v7481_v25, %s6669_s1 }
 0x807   :  { %2218 = vrot.lane.b32.xlu1 %v7481_v25, %s6674_s8 }
 0x80b   :  { %2216 = vrot.lane.b32.xlu1 %v7483_v31, %s6674_s8 }
 0x816   :  { %2010 = vrot.lane.b32.xlu0 %v7483_v31, %s6669_s1 }
 0x87b   :  { %v1993_v1 = vpop.xlane.xlu1 %1992 }
 0x87c   :  { %v1995_v53 = vsub.f32 %v1986_v48, %v1993_v1 }
 0x87d   :  { %v1989_v52 = vpop.xlane.xlu0 %1988 }
 0x87e   :  { %v1998_v3 = vmul.f32 1.442695, %v1995_v53  ;;  %v1994_v5 = vsub.f32 %v1985_v55, %v1989_v52 }
 0x87f   :  { %v2013_v32 = vpop.permute.xlu1 %2012 }
 0x880   :  { %6494 = vpow2.f32 %v1998_v3  ;;  %v1996_v46 = vmul.f32 1.442695, %v1994_v5  ;;  %6107 = vmatprep.subr.msk.mxu1 %vm2021_vm1, %v2013_v32 }
 0x881   :  { %6108 = vmatpush3.msk.msra.mxu1 %vm2021_vm1, %v2013_v32 }
 0x882   :  { %6496 = vpow2.f32 %v1996_v46 }
 0x883   :  { %v2219_v39 = vpop.permute.xlu1 %2218 }
 0x885   :  { %v2196_v6 = vpop.xlane.xlu0 %2195 }
 0x886   :  { %v2200_v13 = vsub.f32 %v2192_v63, %v2196_v6 }
 0x887   :  { %v2217_v27 = vpop.permute.xlu1 %2216 }
 0x888   :  { %v2202_v50 = vmul.f32 1.442695, %v2200_v13 }
 0x889   :  { %v2199_v49 = vpop.xlane.xlu0 %2198 }
 0x88a   :  { %v2201_v26 = vsub.f32 %v2193_v47, %v2199_v49 }
 0x88c   :  { %v2204_v8 = vmul.f32 1.442695, %v2201_v26 }
 0x88d   :  { %v6495_v9 = vpop.eup %6494  ;;  %v2011_v23 = vpop.permute.xlu0 %2010 }
 0x88e   :  { %6498 = vpow2.f32 %v2204_v8  ;;  %6109 = vmatprep.subr.mxu1 %v2011_v23  ;;  %v2003_v41 = vsel %vm1990_vm0, %v6495_v9, 0.0 }
 0x88f   :  { %v6497_v33 = vpop.eup %6496  ;;  %2004 = vadd.xlane.f32.xlu0 %v2003_v41  ;;  %6110 = vmatpush3.msra.mxu1 %v2011_v23  ;;  %6500 = vpow2.f32 %v2202_v50 }
 0x890   :  { %6121 = vmatprep.subr.msk.mxu1 %vm2021_vm1, %v2219_v39  ;;  %v2000_v11 = vsel %vm448_vm9, %v6497_v33, 0.0 }
 0x891   :  { %2001 = vadd.xlane.f32.xlu1 %v2000_v11 }
 0x89b   :  { %v6499_v38 = vpop.eup %6498 }
 0x89c   :  { %v2209_v12 = vsel %vm1990_vm0, %v6499_v38, 0.0  ;;  %v6501_v14 = vpop.eup %6500 }
 0x89d   :  { %2210 = vadd.xlane.f32.xlu0 %v2209_v12  ;;  %v2206_v15 = vsel %vm448_vm9, %v6501_v14, 0.0 }
 0x8a2   :  { %2308 = vrot.lane.b32.xlu1 %v7483_v31, %s6675_s14 }
 0x8b3   :  { %2310 = vrot.lane.b32.xlu0 %v7481_v25, %s6675_s14 }
 0x8b7   :  { %2304 = vrot.lane.b32.xlu0 %v7483_v31, %s6676_s19 }
 0x8c6   :  { %2207 = vadd.xlane.f32.xlu1 %v2206_v15 }
 0x8d7   :  { %2306 = vrot.lane.b32.xlu1 %v7481_v25, %s6676_s19 }
 0x918   :  { %v2005_v17 = vpop.xlane.xlu0 %2004 }
 0x919   :  { %6502 = vrcp.f32 %v2005_v17 }
 0x91a   :  { %v2002_v18 = vpop.xlane.xlu1 %2001 }
 0x91b   :  { %6504 = vrcp.f32 %v2002_v18 }
 0x91e   :  { %v2309_v30 = vpop.permute.xlu1 %2308 }
 0x926   :  { %v6503_v20 = vpop.eup %6502  ;;  %v2211_v51 = vpop.xlane.xlu0 %2210 }
 0x927   :  { %v2009_v58 = vmul.f32 %v6503_v20, %v6495_v9  ;;  %6506 = vrcp.f32 %v2211_v51 }
 0x928   :  { %v6505_v24 = vpop.eup %6504 }
 0x929   :  { %v2008_v10 = vmul.f32 %v6505_v24, %v6497_v33 }
 0x92a   :  { %v2311_v62 = vpop.permute.xlu0 %2310 }
 0x92b   :  { %6111 = vmatprep.mubr.msk.f32.mxu1 %vm448_vm9, %v2008_v10 }
 0x92c   :  { %6112 = vmatmul.mubr.msk.f32.vlgmr.msra.gmra.mxu1 %vm448_vm9, %v2009_v58 }
 0x92d   :  { %6122 = vmatpush3.msk.msra.mxu1 %vm2021_vm1, %v2219_v39 }
 0x92e   :  { %6123 = vmatprep.subr.mxu1 %v2217_v27  ;;  %v2305_v19 = vpop.permute.xlu0 %2304 }
 0x92f   :  { %6124 = vmatpush3.msra.mxu1 %v2217_v27 }
 0x930   :  { %6128 = vmatprep.subr.msk.mxu1 %vm1899_vm12, %v2311_v62 }
 0x934   :  { %v6507_v34 = vpop.eup %6506 }
 0x935   :  { %v2215_v44 = vmul.f32 %v6507_v34, %v6499_v38 }
 0x94f   :  { %v2208_v61 = vpop.xlane.xlu1 %2207 }
 0x950   :  { %6508 = vrcp.f32 %v2208_v61 }
 0x953   :  { %v2307_v36 = vpop.permute.xlu1 %2306 }
 0x95d   :  { %v6509_v16 = vpop.eup %6508 }
 0x95e   :  { %v2214_v35 = vmul.f32 %v6509_v16, %v6501_v14 }
 0x960   :  { %6125 = vmatprep.mubr.msk.f32.mxu1 %vm448_vm9, %v2214_v35 }
 0x961   :  { %6126 = vmatmul.mubr.msk.f32.vlgmr.msra.gmra.mxu1 %vm448_vm9, %v2215_v44 }
 0x962   :  { %6129 = vmatpush3.xpose.msk.msra.mxu1 %vm1899_vm12, %v2311_v62  ;;  %6132 = vmatprep.mubr.msk.f32.mxu1 %vm1899_vm12, %v2305_v19 }
 0x963   :  { %6130 = vmatprep.subr.msk.mxu1 %vm1899_vm12, %v2309_v30 }
 0x966   :  { %6131 = vmatpush3.xpose.msk.msra.mxu1 %vm1899_vm12, %v2309_v30 }
 0x969   :  { %6133 = vmatmul.mubr.msk.f32.vlgmr.msra.gmra.mxu1 %vm1899_vm12, %v2307_v36 }
 0x9ec   :  { %v7557_v40 = vpop.f32.mrf.mxu1 }
 0x9ee   :  { %v7559_v37 = vpop.f32.mrf.mxu1 }
 0xa21   :  { %v7561_v42 = vpop.f32.mrf.mxu1 }
 0xa23   :  { %v7563_v43 = vpop.f32.mrf.mxu1 }
 0xa29   :  { %v6134_v4 = vpop.f32.mrf.mxu1 }
 0xa2a   :  { %v2396_v48 = vmul.f32 0.35355338, %v6134_v4 }
 0xa2b   :  { %v2386_v22 = vpop.f32.mrf.mxu1 }
 0xa2c   :  { %v2395_v55 = vmul.f32 0.35355338, %v2386_v22  ;;  %v2398_v56 = vadd.f32 %v2396_v48, %v7511_v28  ;;  %v2747_v22 = vld [vmem:[%s6753_s30 + $0x10] sm:$0xff] }
 0xa2e   :  { %v2402_v57 = vsel %vm1990_vm0, %v2398_v56, -inf  ;;  %v2397_v60 = vadd.f32 %v2395_v55, %v7513_v21  ;;  %v2746_v55 = vld [vmem:[%s6753_s30 + $0x8] sm:$0xff] }
 0xa2f   :  { %2403 = vmax.xlane.f32.xlu1 %v2402_v57 }
 0xa30   :  { %v2399_v54 = vsel %vm448_vm9, %v2397_v60, -inf }
 0xa31   :  { %2400 = vmax.xlane.f32.xlu0 %v2399_v54 }
 0xa40   :  { %2423 = vrot.lane.b32.xlu1 %v7481_v25, %s6677_s24 }
 0xa44   :  { %2515 = vrot.lane.b32.xlu1 %v7481_v25, %s6678_s2 }
 0xa48   :  { %2513 = vrot.lane.b32.xlu1 %v7483_v31, %s6678_s2 }
 0xa4c   :  { %2511 = vrot.lane.b32.xlu1 %v7481_v25, %s6679_s7 }
 0xab8   :  { %v2404_v45 = vpop.xlane.xlu1 %2403 }
 0xab9   :  { %v2406_v63 = vsub.f32 %v2398_v56, %v2404_v45  ;;  %v2745_v56 = vld [vmem:[%s6753_s30] sm:$0xff] }
 0xaba   :  { %v2401_v0 = vpop.xlane.xlu0 %2400 }
 0xabb   :  { %v2409_v47 = vmul.f32 1.442695, %v2406_v63  ;;  %v2405_v2 = vsub.f32 %v2397_v60, %v2401_v0 }
 0xabc   :  { %v2424_v1 = vpop.permute.xlu1 %2423 }
 0xabd   :  { %6510 = vpow2.f32 %v2409_v47  ;;  %v2407_v53 = vmul.f32 1.442695, %v2405_v2  ;;  %6135 = vmatprep.subr.msk.mxu0 %vm2021_vm1, %v2424_v1 }
 0xabe   :  { %6136 = vmatpush3.msk.msra.mxu0 %vm2021_vm1, %v2424_v1 }
 0xabf   :  { %6512 = vpow2.f32 %v2407_v53 }
 0xac0   :  { %v2516_v26 = vpop.permute.xlu1 %2515 }
 0xac4   :  { %v2514_v39 = vpop.permute.xlu1 %2513 }
 0xac8   :  { %v2512_v11 = vpop.permute.xlu1 %2511 }
 0xaca   :  { %v6511_v52 = vpop.eup %6510 }
 0xacb   :  { %v2414_v3 = vsel %vm1990_vm0, %v6511_v52, 0.0 }
 0xacc   :  { %v6513_v5 = vpop.eup %6512  ;;  %2415 = vadd.xlane.f32.xlu0 %v2414_v3 }
 0xacd   :  { %v2411_v32 = vsel %vm448_vm9, %v6513_v5, 0.0 }
 0xad0   :  { %2412 = vadd.xlane.f32.xlu0 %v2411_v32 }
 0xae6   :  { %2421 = vrot.lane.b32.xlu0 %v7483_v31, %s6677_s24 }
 0xaea   :  { %2509 = vrot.lane.b32.xlu0 %v7483_v31, %s6679_s7 }
 0xb55   :  { %v2416_v46 = vpop.xlane.xlu0 %2415 }
 0xb56   :  { %6514 = vrcp.f32 %v2416_v46  ;;  %v5519_v46 = vld [vmem:[%s6758_s6] ss:$0 sm:$0xff]  ;;  %s8015_s6 = sld [smem:[#allocation5_spill]] }
 0xb59   :  { %v2413_v6 = vpop.xlane.xlu0 %2412 }
 0xb5a   :  { %6516 = vrcp.f32 %v2413_v6 }
 0xb5d   :  { %v2422_v49 = vpop.permute.xlu0 %2421 }
 0xb5e   :  { %6137 = vmatprep.subr.mxu0 %v2422_v49 }
 0xb5f   :  { %6138 = vmatpush3.msra.mxu0 %v2422_v49 }
 0xb60   :  { %6142 = vmatprep.subr.msk.mxu0 %vm1899_vm12, %v2516_v26 }
 0xb61   :  { %v2510_v33 = vpop.permute.xlu0 %2509 }
 0xb63   :  { %v6515_v8 = vpop.eup %6514 }
 0xb64   :  { %v2420_v41 = vmul.f32 %v6515_v8, %v6511_v52 }
 0xb67   :  { %v6517_v9 = vpop.eup %6516 }
 0xb68   :  { %v2419_v23 = vmul.f32 %v6517_v9, %v6513_v5 }
 0xb6a   :  { %6139 = vmatprep.mubr.msk.f32.mxu0 %vm448_vm9, %v2419_v23 }
 0xb6b   :  { %6140 = vmatmul.mubr.msk.f32.vlgmr.msra.gmra.mxu0 %vm448_vm9, %v2420_v41 }
 0xb6c   :  { %6143 = vmatpush3.xpose.msk.msra.mxu0 %vm1899_vm12, %v2516_v26  ;;  %6146 = vmatprep.mubr.msk.f32.mxu0 %vm1899_vm12, %v2510_v33 }
 0xb6d   :  { %6144 = vmatprep.subr.msk.mxu0 %vm1899_vm12, %v2514_v39 }
 0xb70   :  { %6145 = vmatpush3.xpose.msk.msra.mxu0 %vm1899_vm12, %v2514_v39 }
 0xb73   :  { %6147 = vmatmul.mubr.msk.f32.vlgmr.msra.gmra.mxu0 %vm1899_vm12, %v2512_v11 }
 0xc2b   :  { %v6141_v38 = vpop.f32.mrf.mxu0 }
 0xc2d   :  { %v2500_v12 = vpop.f32.mrf.mxu0 }
 0xc33   :  { %v6148_v13 = vpop.f32.mrf.mxu0 }
 0xc34   :  { %v2601_v50 = vmul.f32 0.35355338, %v6148_v13 }
 0xc35   :  { %v2591_v14 = vpop.f32.mrf.mxu0 }
 0xc36   :  { %v2600_v15 = vmul.f32 0.35355338, %v2591_v14  ;;  %v2603_v27 = vadd.f32 %v2601_v50, %v7511_v28 }
 0xc38   :  { %v2607_v17 = vsel %vm1990_vm0, %v2603_v27, -inf  ;;  %v2602_v18 = vadd.f32 %v2600_v15, %v7513_v21 }
 0xc39   :  { %2608 = vmax.xlane.f32.xlu1 %v2607_v17 }
 0xc3a   :  { %v2604_v20 = vsel %vm448_vm9, %v2602_v18, -inf }
 0xc3b   :  { %2605 = vmax.xlane.f32.xlu0 %v2604_v20 }
 0xc4a   :  { %2628 = vrot.lane.b32.xlu1 %v7481_v25, %s6680_s10 }
 0xc4e   :  { %2716 = vrot.lane.b32.xlu1 %v7563_v43, %s6681_s11 }
 0xc52   :  { %2718 = vrot.lane.b32.xlu1 %v7561_v42, %s6681_s11 }
 0xc56   :  { %2726 = vrot.lane.b32.xlu1 %v6141_v38, %s6682_s15 }
 0xcc2   :  { %v2609_v24 = vpop.xlane.xlu1 %2608 }
 0xcc3   :  { %v2611_v51 = vsub.f32 %v2603_v27, %v2609_v24 }
 0xcc4   :  { %v2606_v10 = vpop.xlane.xlu0 %2605 }
 0xcc5   :  { %v2614_v58 = vmul.f32 1.442695, %v2611_v51  ;;  %v2610_v62 = vsub.f32 %v2602_v18, %v2606_v10 }
 0xcc6   :  { %v2629_v30 = vpop.permute.xlu1 %2628 }
 0xcc7   :  { %6518 = vpow2.f32 %v2614_v58  ;;  %v2612_v61 = vmul.f32 1.442695, %v2610_v62  ;;  %6149 = vmatprep.subr.msk.mxu1 %vm2021_vm1, %v2629_v30 }
 0xcc8   :  { %6150 = vmatpush3.msk.msra.mxu1 %vm2021_vm1, %v2629_v30  ;;  %v5522_v30 = vld [vmem:[%s8015_s6] ss:$0 sm:$0xff] }
 0xcc9   :  { %6520 = vpow2.f32 %v2612_v61 }
 0xcca   :  { %v2717_v54 = vpop.permute.xlu1 %2716 }
 0xccb   :  { %v2738_v47 = vsel %vm1899_vm12, %v7559_v37, %v2717_v54 }
 0xcce   :  { %v2719_v45 = vpop.permute.xlu1 %2718 }
 0xccf   :  { %v2739_v1 = vsel %vm1899_vm12, %v7557_v40, %v2719_v45 }
 0xcd2   :  { %v2727_v63 = vpop.permute.xlu1 %2726 }
 0xcd3   :  { %v2742_v3 = vsel %vm2740_vm3, %v2739_v1, %v2727_v63 }
 0xcd4   :  { %v6519_v25 = vpop.eup %6518 }
 0xcd5   :  { %v2619_v34 = vsel %vm1990_vm0, %v6519_v25, 0.0 }
 0xcd6   :  { %v6521_v16 = vpop.eup %6520  ;;  %2620 = vadd.xlane.f32.xlu0 %v2619_v34 }
 0xcd7   :  { %v2616_v35 = vsel %vm448_vm9, %v6521_v16, 0.0 }
 0xcda   :  { %2617 = vadd.xlane.f32.xlu0 %v2616_v35 }
 0xcf0   :  { %2626 = vrot.lane.b32.xlu0 %v7483_v31, %s6680_s10  ;;  %v2748_v31 = vld [vmem:[%s6753_s30 + $0x18] sm:$0xff]  ;;  %s8014_s30 = sld [smem:[#allocation7_spill]] }
 0xcf4   :  { %2724 = vrot.lane.b32.xlu0 %v2500_v12, %s6682_s15 }
 0xcf6   :  { %v2886_v14 = vld [vmem:[%s8014_s30 + $0x18] sm:$0xff]  ;;  %v2885_v15 = vld [vmem:[%s8014_s30 + $0x10] sm:$0xff]  ;;  %v2884_v27 = vld [vmem:[%s8014_s30 + $0x8] sm:$0xff] }
 0xcf7   :  { %6167 = vmatprep.subr.mxu0 %v2886_v14  ;;  %v2883_v17 = vld [vmem:[%s8014_s30] sm:$0xff] }
 0xcf8   :  { %6168 = vmatpush3.msra.mxu0 %v2886_v14 }
 0xcf9   :  { %6169 = vmatprep.subr.mxu0 %v2885_v15 }
 0xcfa   :  { %6170 = vmatpush3.msra.mxu0 %v2885_v15 }
 0xcfb   :  { %6171 = vmatprep.subr.mxu0 %v2884_v27 }
 0xcfc   :  { %6172 = vmatpush3.msra.mxu0 %v2884_v27 }
 0xcfd   :  { %6173 = vmatprep.subr.mxu0 %v2883_v17 }
 0xcfe   :  { %6174 = vmatpush3.msra.mxu0 %v2883_v17 }
 0xd5f   :  { %v2621_v44 = vpop.xlane.xlu0 %2620 }
 0xd60   :  { %6522 = vrcp.f32 %v2621_v44 }
 0xd63   :  { %v2618_v19 = vpop.xlane.xlu0 %2617 }
 0xd64   :  { %6524 = vrcp.f32 %v2618_v19 }
 0xd67   :  { %v2627_v36 = vpop.permute.xlu0 %2626 }
 0xd68   :  { %6151 = vmatprep.subr.mxu1 %v2627_v36 }
 0xd69   :  { %6152 = vmatpush3.msra.mxu1 %v2627_v36 }
 0xd6a   :  { %6156 = vmatprep.subr.mxu1 %v2748_v31 }
 0xd6b   :  { %v2725_v0 = vpop.permute.xlu0 %2724 }
 0xd6c   :  { %v2741_v53 = vsel %vm2740_vm3, %v2738_v47, %v2725_v0 }
 0xd6d   :  { %v6523_v42 = vpop.eup %6522 }
 0xd6e   :  { %v2625_v48 = vmul.f32 %v6523_v42, %v6519_v25  ;;  %v5523_v25 = vld [vmem:[%s8016_s18] ss:$0 sm:$0xff]  ;;  %v3036_v42 = vld [vmem:[%s8017_s22 + $0x38] sm:$0xff] }
 0xd71   :  { %v6525_v43 = vpop.eup %6524 }
 0xd72   :  { %v2624_v4 = vmul.f32 %v6525_v43, %v6521_v16  ;;  %v3035_v43 = vld [vmem:[%s8017_s22 + $0x30] sm:$0xff] }
 0xd74   :  { %6153 = vmatprep.mubr.msk.f32.mxu1 %vm448_vm9, %v2624_v4  ;;  %v3034_v4 = vld [vmem:[%s8017_s22 + $0x28] sm:$0xff] }
 0xd75   :  { %6154 = vmatmul.mubr.msk.f32.vlgmr.msra.gmra.mxu1 %vm448_vm9, %v2625_v48  ;;  %v3033_v48 = vld [vmem:[%s8017_s22 + $0x20] sm:$0xff] }
 0xd76   :  { %6157 = vmatpush3.msra.mxu1 %v2748_v31  ;;  %v3032_v31 = vld [vmem:[%s8017_s22 + $0x18] sm:$0xff] }
 0xd77   :  { %6158 = vmatprep.subr.mxu1 %v2747_v22 }
 0xd78   :  { %6159 = vmatpush3.msra.mxu1 %v2747_v22  ;;  %v3031_v22 = vld [vmem:[%s8017_s22 + $0x10] sm:$0xff] }
 0xd79   :  { %6160 = vmatprep.subr.mxu1 %v2746_v55 }
 0xd7a   :  { %6161 = vmatpush3.msra.mxu1 %v2746_v55  ;;  %v3030_v55 = vld [vmem:[%s8017_s22 + $0x8] sm:$0xff] }
 0xd7b   :  { %6162 = vmatprep.subr.mxu1 %v2745_v56 }
 0xd7c   :  { %6163 = vmatpush3.msra.mxu1 %v2745_v56  ;;  %v3029_v56 = vld [vmem:[%s8017_s22] sm:$0xff] }
 0xd7d   :  { %6178 = vmatprep.subr.mxu1 %v3036_v42 }
 0xe35   :  { %v6155_v57 = vpop.f32.mrf.mxu1 }
 0xe36   :  { %2734 = vrot.lane.b32.xlu1 %v6155_v57, %s6683_s16  ;;  %v5524_v57 = vld [vmem:[%s8018_s23] ss:$0 sm:$0xff] }
 0xe37   :  { %v2705_v60 = vpop.f32.mrf.mxu1 }
 0xe38   :  { %2732 = vrot.lane.b32.xlu0 %v2705_v60, %s6683_s16 }
 0xea8   :  { %v2735_v2 = vpop.permute.xlu1 %2734 }
 0xea9   :  { %v2744_v32 = vsel %vm467_vm13, %v2742_v3, %v2735_v2 }
 0xeaa   :  { %v2733_v52 = vpop.permute.xlu0 %2732 }
 0xeab   :  { %v2743_v5 = vsel %vm467_vm13, %v2741_v53, %v2733_v52 }
 0xeac   :  { %6164 = vmatprep.mubr.msk.f32.mxu1 %vm1756_vm8, %v2743_v5 }
 0xead   :  { %6165 = vmatmul.mubr.msk.f32.vlgmr.msra.gmra.mxu1 %vm1756_vm8, %v2744_v32 }
 0xeae   :  { %6179 = vmatpush3.msra.mxu1 %v3036_v42 }
 0xeaf   :  { %6180 = vmatprep.subr.mxu1 %v3035_v43 }
 0xeb0   :  { %6181 = vmatpush3.msra.mxu1 %v3035_v43 }
 0xeb1   :  { %6182 = vmatprep.subr.mxu1 %v3034_v4 }
 0xeb2   :  { %6183 = vmatpush3.msra.mxu1 %v3034_v4 }
 0xeb3   :  { %6184 = vmatprep.subr.mxu1 %v3033_v48 }
 0xeb4   :  { %6185 = vmatpush3.msra.mxu1 %v3033_v48 }
 0xeb5   :  { %6186 = vmatprep.subr.mxu1 %v3032_v31 }
 0xeb6   :  { %6187 = vmatpush3.msra.mxu1 %v3032_v31  ;;  %v5527_v31 = vld [vmem:[%s8019_s26] ss:$0 sm:$0xff] }
 0xeb7   :  { %6188 = vmatprep.subr.mxu1 %v3031_v22 }
 0xeb8   :  { %6189 = vmatpush3.msra.mxu1 %v3031_v22 }
 0xeb9   :  { %6190 = vmatprep.subr.mxu1 %v3030_v55 }
 0xeba   :  { %6191 = vmatpush3.msra.mxu1 %v3030_v55 }
 0xebb   :  { %6192 = vmatprep.subr.mxu1 %v3029_v56 }
 0xebc   :  { %6193 = vmatpush3.msra.mxu1 %v3029_v56 }
 0xf6d   :  { %v6166_v6 = vpop.f32.mrf.mxu1 }
 0xf6e   :  { %v2834_v37 = vadd.f32 %v6166_v6, %v5519_v46 }
 0xf6f   :  { %v2828_v49 = vpop.f32.mrf.mxu1 }
 0xf70   :  { %v7631_v26 = vadd.f32 %v2834_v37, %v7464_v59  ;;  %v2829_v40 = vadd.f32 %v5519_v46, %v2828_v49 }
 0xf72   :  { %v7634_v8 = vadd.f32 %v2829_v40, %v7460_v29  ;;  %v2844_v9 = vsel %vm1760_vm11, %v7631_v26, 0.0 }
 0xf73   :  { %2845 = vadd.xlane.f32.xlu1 %v2844_v9 }
 0xf74   :  { %v2841_v23 = vsel %vm1756_vm8, %v7634_v8, 0.0 }
 0xf75   :  { %2842 = vadd.xlane.f32.xlu0 %v2841_v23 }
 0xffc   :  { %v2846_v41 = vpop.xlane.xlu1 %2845 }
 0xffd   :  { %v2848_v33 = vmul.f32 0.03125, %v2846_v41 }
 0xffe   :  { %v2843_v39 = vpop.xlane.xlu0 %2842 }
 0xfff   :  { %v2847_v59 = vmul.f32 0.03125, %v2843_v39  ;;  %v2850_v11 = vsub.f32 %v7631_v26, %v2848_v33 }
0x1001   :  { %v2849_v29 = vsub.f32 %v7634_v8, %v2847_v59  ;;  %v2852_v13 = vmul.f32 %v2850_v11, %v2850_v11 }
0x1003   :  { %v2851_v38 = vmul.f32 %v2849_v29, %v2849_v29  ;;  %v2856_v50 = vsel %vm1760_vm11, %v2852_v13, 0.0 }
0x1005   :  { %v2853_v12 = vsel %vm1756_vm8, %v2851_v38, 0.0 }
0x1006   :  { %2854 = vadd.xlane.f32.xlu0 %v2853_v12 }
0x100a   :  { %2857 = vadd.xlane.f32.xlu0 %v2856_v50 }
0x108f   :  { %v2855_v18 = vpop.xlane.xlu0 %2854 }
0x1090   :  { %v2859_v20 = vmul.f32 0.03125, %v2855_v18 }
0x1092   :  { %v2861_v24 = vadd.f32 1e-05, %v2859_v20 }
0x1093   :  { %v2858_v51 = vpop.xlane.xlu0 %2857 }
0x1094   :  { %6526 = vrsqrt.f32 %v2861_v24  ;;  %v2860_v10 = vmul.f32 0.03125, %v2858_v51 }
0x1096   :  { %v2862_v58 = vadd.f32 1e-05, %v2860_v10 }
0x1098   :  { %6528 = vrsqrt.f32 %v2862_v58 }
0x10a1   :  { %v6527_v62 = vpop.eup %6526 }
0x10a2   :  { %v2865_v61 = vmul.f32 %v6527_v62, %v2849_v29 }
0x10a4   :  { %v2873_v34 = vmul.f32 %v5522_v30, %v2865_v61 }
0x10a5   :  { %v6529_v16 = vpop.eup %6528 }
0x10a6   :  { %v2866_v35 = vmul.f32 %v6529_v16, %v2850_v11  ;;  %v2881_v44 = vadd.f32 %v5523_v25, %v2873_v34 }
0x10a8   :  { %v2874_v19 = vmul.f32 %v5522_v30, %v2866_v35  ;;  %6175 = vmatprep.mubr.msk.f32.mxu0 %vm1756_vm8, %v2881_v44 }
0x10aa   :  { %v2882_v36 = vadd.f32 %v5523_v25, %v2874_v19 }
0x10ac   :  { %6176 = vmatmul.mubr.msk.f32.vlgmr.msra.gmra.mxu0 %vm1756_vm8, %v2882_v36 }
0x116c   :  { %v6177_v60 = vpop.f32.mrf.mxu0 }
0x116d   :  { %v2972_v54 = vadd.f32 %v6177_v60, %v5524_v57 }
0x116e   :  { %v2966_v45 = vpop.f32.mrf.mxu0 }
0x116f   :  { %v2978_v63 = vmul.f32 0.70710677, %v2972_v54  ;;  %v2967_v0 = vadd.f32 %v5524_v57, %v2966_v45  ;;  %v2976_v43 = vmul.f32 0.5, %v2972_v54 }
0x1171   :  { %v2980_v47 = vand.u32 2147483647, %v2978_v63  ;;  %v2977_v2 = vmul.f32 0.70710677, %v2967_v0  ;;  %vm3020_vm4 = vcmp.ge.f32.partialorder %v2978_v63, 0.0  ;;  %v2975_v36 = vmul.f32 0.5, %v2967_v0 }
0x1173   :  { %v2982_v1 = vmul.f32 0.3275911, %v2980_v47  ;;  %v2979_v53 = vand.u32 2147483647, %v2977_v2  ;;  %v3008_v32 = vsub.f32 0.0, %v2980_v47  ;;  %vm3019_vm5 = vcmp.ge.f32.partialorder %v2977_v2, 0.0 }
0x1175   :  { %v2984_v52 = vadd.f32 1.0, %v2982_v1  ;;  %v2981_v3 = vmul.f32 0.3275911, %v2979_v53  ;;  %v3007_v46 = vsub.f32 0.0, %v2979_v53  ;;  %v3010_v6 = vmul.f32 %v3008_v32, %v2980_v47  ;;  %v3174_v32 = vld [vmem:[%s8020_s0 + $0x18] sm:$0xff] }
0x1176   :  { %6197 = vmatprep.subr.mxu0 %v3174_v32 }
0x1177   :  { %6530 = vrcp.f32 %v2984_v52  ;;  %v2983_v5 = vadd.f32 1.0, %v2981_v3  ;;  %v3009_v49 = vmul.f32 %v3007_v46, %v2979_v53  ;;  %v3013_v9 = vmul.f32 1.442695, %v3010_v6  ;;  %v3173_v46 = vld [vmem:[%s8020_s0 + $0x10] sm:$0xff]  ;;  %6198 = vmatpush3.msra.mxu0 %v3174_v32  ;;  %v3172_v6 = vld [vmem:[%s8020_s0 + $0x8] sm:$0xff] }
0x1178   :  { %6199 = vmatprep.subr.mxu0 %v3173_v46 }
0x1179   :  { %6532 = vrcp.f32 %v2983_v5  ;;  %v3011_v39 = vmul.f32 1.442695, %v3009_v49  ;;  %6200 = vmatpush3.msra.mxu0 %v3173_v46 }
0x117a   :  { %6534 = vpow2.f32 %v3013_v9  ;;  %6201 = vmatprep.subr.mxu0 %v3172_v6 }
0x117b   :  { %6536 = vpow2.f32 %v3011_v39  ;;  %6202 = vmatpush3.msra.mxu0 %v3172_v6 }
0x1184   :  { %v6531_v37 = vpop.eup %6530 }
0x1185   :  { %v2990_v40 = vmul.f32 1.0614054, %v6531_v37 }
0x1186   :  { %v6533_v23 = vpop.eup %6532 }
0x1187   :  { %v2992_v41 = vadd.f32 -1.4531521, %v2990_v40  ;;  %v2989_v33 = vmul.f32 1.0614054, %v6533_v23  ;;  %v6535_v24 = vpop.eup %6534 }
0x1188   :  { %v6537_v62 = vpop.eup %6536 }
0x1189   :  { %v2994_v59 = vmul.f32 %v6531_v37, %v2992_v41  ;;  %v2991_v11 = vadd.f32 -1.4531521, %v2989_v33 }
0x118b   :  { %v2996_v29 = vadd.f32 1.4214138, %v2994_v59  ;;  %v2993_v38 = vmul.f32 %v6533_v23, %v2991_v11  ;;  %v5530_v59 = vld [vmem:[%s8021_s9] ss:$0 sm:$0xff] }
0x118d   :  { %v2998_v12 = vmul.f32 %v6531_v37, %v2996_v29  ;;  %v2995_v13 = vadd.f32 1.4214138, %v2993_v38 }
0x118f   :  { %v3000_v50 = vadd.f32 -0.28449672, %v2998_v12  ;;  %v2997_v14 = vmul.f32 %v6533_v23, %v2995_v13  ;;  %v5531_v13 = vld [vmem:[%s8022_s13] ss:$0 sm:$0xff] }
0x1191   :  { %v3002_v15 = vmul.f32 %v6531_v37, %v3000_v50  ;;  %v2999_v27 = vadd.f32 -0.28449672, %v2997_v14 }
0x1193   :  { %v3004_v17 = vadd.f32 0.2548296, %v3002_v15  ;;  %v3001_v18 = vmul.f32 %v6533_v23, %v2999_v27  ;;  %v5532_v27 = vld [vmem:[%s8023_s17] ss:$0 sm:$0xff] }
0x1195   :  { %v3006_v20 = vmul.f32 %v6531_v37, %v3004_v17  ;;  %v3003_v51 = vadd.f32 0.2548296, %v3001_v18  ;;  %v3171_v37 = vld [vmem:[%s8020_s0] sm:$0xff] }
0x1196   :  { %6203 = vmatprep.subr.mxu0 %v3171_v37 }
0x1197   :  { %v3016_v10 = vmul.f32 %v6535_v24, %v3006_v20  ;;  %v3005_v58 = vmul.f32 %v6533_v23, %v3003_v51  ;;  %6204 = vmatpush3.msra.mxu0 %v3171_v37 }
0x1199   :  { %v3018_v30 = vsub.f32 1.0, %v3016_v10  ;;  %v3015_v61 = vmul.f32 %v6537_v62, %v3005_v58 }
0x119b   :  { %v3022_v25 = vsub.f32 0.0, %v3018_v30  ;;  %v3017_v34 = vsub.f32 1.0, %v3015_v61 }
0x119d   :  { %v3024_v16 = vsel %vm3020_vm4, %v3018_v30, %v3022_v25  ;;  %v3021_v35 = vsub.f32 0.0, %v3017_v34 }
0x119e   :  { %v3026_v44 = vadd.f32 1.0, %v3024_v16 }
0x119f   :  { %v3023_v19 = vsel %vm3019_vm5, %v3017_v34, %v3021_v35 }
0x11a0   :  { %v3025_v42 = vadd.f32 1.0, %v3023_v19  ;;  %v3028_v48 = vmul.f32 %v3026_v44, %v2976_v43 }
0x11a2   :  { %v3027_v4 = vmul.f32 %v3025_v42, %v2975_v36 }
0x11a4   :  { %6194 = vmatprep.mubr.msk.f32.mxu1 %vm833_vm6, %v3027_v4 }
0x11a5   :  { %6195 = vmatmul.mubr.msk.f32.vlgmr.msra.gmra.mxu1 %vm833_vm6, %v3028_v48 }
0x1265   :  { %v6196_v22 = vpop.f32.mrf.mxu1 }
0x1266   :  { %v3122_v55 = vadd.f32 %v6196_v22, %v5527_v31 }
0x1267   :  { %v3116_v56 = vpop.f32.mrf.mxu1 }
0x1268   :  { %v7665_v57 = vadd.f32 %v3122_v55, %v7631_v26  ;;  %v3117_v60 = vadd.f32 %v5527_v31, %v3116_v56 }
0x126a   :  { %v7668_v45 = vadd.f32 %v3117_v60, %v7634_v8  ;;  %v3132_v54 = vsel %vm1760_vm11, %v7665_v57, 0.0 }
0x126b   :  { %3133 = vadd.xlane.f32.xlu0 %v3132_v54 }
0x126c   :  { %v3129_v63 = vsel %vm1756_vm8, %v7668_v45, 0.0 }
0x126d   :  { %3130 = vadd.xlane.f32.xlu1 %v3129_v63 }
0x12f4   :  { %v3134_v0 = vpop.xlane.xlu0 %3133 }
0x12f5   :  { %v3136_v47 = vmul.f32 0.03125, %v3134_v0 }
0x12f6   :  { %v3131_v2 = vpop.xlane.xlu1 %3130 }
0x12f7   :  { %v3138_v26 = vsub.f32 %v7665_v57, %v3136_v47  ;;  %v3135_v1 = vmul.f32 0.03125, %v3131_v2 }
0x12f9   :  { %v3137_v8 = vsub.f32 %v7668_v45, %v3135_v1  ;;  %v3140_v53 = vmul.f32 %v3138_v26, %v3138_v26 }
0x12fb   :  { %v3144_v52 = vsel %vm1760_vm11, %v3140_v53, 0.0  ;;  %v3139_v3 = vmul.f32 %v3137_v8, %v3137_v8 }
0x12fc   :  { %3145 = vadd.xlane.f32.xlu0 %v3144_v52 }
0x12fd   :  { %v3141_v5 = vsel %vm1756_vm8, %v3139_v3, 0.0 }
0x12fe   :  { %3142 = vadd.xlane.f32.xlu1 %v3141_v5 }
0x1385   :  { %v3146_v49 = vpop.xlane.xlu0 %3145 }
0x1386   :  { %v3148_v40 = vmul.f32 0.03125, %v3146_v49 }
0x1387   :  { %v3143_v9 = vpop.xlane.xlu1 %3142 }
0x1388   :  { %v3150_v23 = vadd.f32 1e-05, %v3148_v40  ;;  %v3147_v41 = vmul.f32 0.03125, %v3143_v9 }
0x138a   :  { %6538 = vrsqrt.f32 %v3150_v23  ;;  %v3149_v33 = vadd.f32 1e-05, %v3147_v41 }
0x138c   :  { %6540 = vrsqrt.f32 %v3149_v33 }
0x1397   :  { %v6539_v39 = vpop.eup %6538 }
0x1398   :  { %v3154_v11 = vmul.f32 %v6539_v39, %v3138_v26 }
0x1399   :  { %v6541_v29 = vpop.eup %6540 }
0x139a   :  { %v3153_v38 = vmul.f32 %v6541_v29, %v3137_v8  ;;  %v3162_v12 = vmul.f32 %v5530_v59, %v3154_v11 }
0x139c   :  { %v3161_v50 = vmul.f32 %v5530_v59, %v3153_v38  ;;  %v3170_v15 = vadd.f32 %v5531_v13, %v3162_v12 }
0x139e   :  { %v3169_v14 = vadd.f32 %v5531_v13, %v3161_v50 }
0x13a0   :  { %6205 = vmatprep.mubr.msk.f32.mxu0 %vm1756_vm8, %v3169_v14 }
0x13a1   :  { %6206 = vmatmul.mubr.msk.f32.vlgmr.msra.gmra.mxu0 %vm1756_vm8, %v3170_v15 }
0x1461   :  { %v6207_v17 = vpop.f32.mrf.mxu0 }
0x1462   :  { %v7687_v18 = vadd.f32 %v6207_v17, %v5532_v27 }
0x1463   :  { %v3254_v20 = vpop.f32.mrf.mxu0 }
0x1464   :  { %v7689_v24 = vadd.f32 %v5532_v27, %v3254_v20  ;;  %3267 = vrot.lane.b32.xlu1 %v7687_v18, %s6670_s5 }
0x1466   :  { %3265 = vrot.lane.b32.xlu0 %v7689_v24, %s6670_s5  ;;  %6212 = vmatprep.mubr.msk.f32.mxu0 %vm1899_vm12, %v7689_v24  ;;  %s8028_s5 = sld [smem:[#allocation18_spill]] }
0x1468   :  { %3472 = vrot.lane.b32.xlu1 %v7687_v18, %s6671_s29 }
0x146a   :  { %3466 = vrot.lane.b32.xlu0 %v7689_v24, %s6672_s3 }
0x146c   :  { %3470 = vrot.lane.b32.xlu1 %v7689_v24, %s6671_s29  ;;  %s8029_s29 = sld [smem:[#allocation21_spill]] }
0x1470   :  { %3468 = vrot.lane.b32.xlu1 %v7687_v18, %s6672_s3  ;;  %s8030_s3 = sld [smem:[#allocation20_spill]] }
0x14d6   :  { %v3268_v51 = vpop.permute.xlu1 %3267 }
0x14d7   :  { %6208 = vmatprep.subr.msk.mxu0 %vm1899_vm12, %v3268_v51 }
0x14d8   :  { %6209 = vmatpush3.xpose.msk.msra.mxu0 %vm1899_vm12, %v3268_v51  ;;  %v3266_v10 = vpop.permute.xlu0 %3265 }
0x14d9   :  { %6210 = vmatprep.subr.msk.mxu0 %vm1899_vm12, %v3266_v10 }
0x14da   :  { %v3473_v58 = vpop.permute.xlu1 %3472 }
0x14dc   :  { %6211 = vmatpush3.xpose.msk.msra.mxu0 %vm1899_vm12, %v3266_v10  ;;  %v3467_v62 = vpop.permute.xlu0 %3466 }
0x14dd   :  { %6222 = vmatprep.subr.msk.mxu0 %vm1899_vm12, %v3473_v58 }
0x14de   :  { %v3471_v30 = vpop.permute.xlu1 %3470 }
0x14df   :  { %6213 = vmatmul.mubr.msk.f32.vlgmr.msra.gmra.mxu0 %vm1899_vm12, %v7687_v18 }
0x14e0   :  { %6223 = vmatpush3.xpose.msk.msra.mxu0 %vm1899_vm12, %v3473_v58  ;;  %6226 = vmatprep.mubr.msk.f32.mxu0 %vm1899_vm12, %v3467_v62 }
0x14e1   :  { %6224 = vmatprep.subr.msk.mxu0 %vm1899_vm12, %v3471_v30 }
0x14e2   :  { %v3469_v61 = vpop.permute.xlu1 %3468 }
0x14e4   :  { %6225 = vmatpush3.xpose.msk.msra.mxu0 %vm1899_vm12, %v3471_v30 }
0x14e7   :  { %6227 = vmatmul.mubr.msk.f32.vlgmr.msra.gmra.mxu0 %vm1899_vm12, %v3469_v61 }
0x159f   :  { %v6214_v25 = vpop.f32.mrf.mxu0 }
0x15a0   :  { %v3353_v34 = vmul.f32 0.35355338, %v6214_v25 }
0x15a1   :  { %v3343_v16 = vpop.f32.mrf.mxu0 }
0x15a2   :  { %v3352_v35 = vmul.f32 0.35355338, %v3343_v16  ;;  %v3355_v44 = vadd.f32 %v3353_v34, %v7511_v28 }
0x15a4   :  { %v3359_v19 = vsel %vm1990_vm0, %v3355_v44, -inf  ;;  %v3354_v36 = vadd.f32 %v3352_v35, %v7513_v21 }
0x15a5   :  { %3360 = vmax.xlane.f32.xlu1 %v3359_v19 }
0x15a6   :  { %v3356_v42 = vsel %vm448_vm9, %v3354_v36, -inf }
0x15a7   :  { %v6228_v43 = vpop.f32.mrf.mxu0  ;;  %3357 = vmax.xlane.f32.xlu0 %v3356_v42 }
0x15a8   :  { %v3558_v48 = vmul.f32 0.35355338, %v6228_v43 }
0x15a9   :  { %v3548_v4 = vpop.f32.mrf.mxu0 }
0x15aa   :  { %v3557_v31 = vmul.f32 0.35355338, %v3548_v4  ;;  %v3560_v56 = vadd.f32 %v3558_v48, %v7511_v28 }
0x15ac   :  { %v3559_v22 = vadd.f32 %v3557_v31, %v7513_v21  ;;  %v3564_v60 = vsel %vm1990_vm0, %v3560_v56, -inf }
0x15ae   :  { %v3561_v55 = vsel %vm448_vm9, %v3559_v22, -inf }
0x15af   :  { %3562 = vmax.xlane.f32.xlu0 %v3561_v55 }
0x15b3   :  { %3565 = vmax.xlane.f32.xlu0 %v3564_v60 }
0x15b6   :  { %3380 = vrot.lane.b32.xlu1 %v7687_v18, %s6669_s1 }
0x15ba   :  { %3585 = vrot.lane.b32.xlu1 %v7687_v18, %s6674_s8 }
0x15be   :  { %3583 = vrot.lane.b32.xlu1 %v7689_v24, %s6674_s8  ;;  %s8031_s8 = sld [smem:[#allocation22_spill]] }
0x15c9   :  { %3378 = vrot.lane.b32.xlu0 %v7689_v24, %s6669_s1  ;;  %s8027_s1 = sld [smem:[#allocation17_spill]] }
0x162e   :  { %v3361_v54 = vpop.xlane.xlu1 %3360 }
0x162f   :  { %v3363_v63 = vsub.f32 %v3355_v44, %v3361_v54 }
0x1630   :  { %v3358_v0 = vpop.xlane.xlu0 %3357 }
0x1631   :  { %v3366_v47 = vmul.f32 1.442695, %v3363_v63  ;;  %v3362_v2 = vsub.f32 %v3354_v36, %v3358_v0 }
0x1632   :  { %v3381_v26 = vpop.permute.xlu1 %3380 }
0x1633   :  { %6542 = vpow2.f32 %v3366_v47  ;;  %v3364_v1 = vmul.f32 1.442695, %v3362_v2  ;;  %6215 = vmatprep.subr.msk.mxu1 %vm2021_vm1, %v3381_v26 }
0x1634   :  { %6216 = vmatpush3.msk.msra.mxu1 %vm2021_vm1, %v3381_v26 }
0x1635   :  { %6544 = vpow2.f32 %v3364_v1 }
0x1636   :  { %v3586_v37 = vpop.permute.xlu1 %3585 }
0x1638   :  { %v3563_v8 = vpop.xlane.xlu0 %3562 }
0x1639   :  { %v3567_v23 = vsub.f32 %v3559_v22, %v3563_v8 }
0x163a   :  { %v3584_v59 = vpop.permute.xlu1 %3583 }
0x163b   :  { %v3569_v41 = vmul.f32 1.442695, %v3567_v23 }
0x163c   :  { %v3566_v53 = vpop.xlane.xlu0 %3565 }
0x163d   :  { %v3568_v52 = vsub.f32 %v3560_v56, %v3566_v53 }
0x163f   :  { %v3571_v3 = vmul.f32 1.442695, %v3568_v52 }
0x1640   :  { %v6543_v5 = vpop.eup %6542  ;;  %v3379_v32 = vpop.permute.xlu0 %3378 }
0x1641   :  { %6546 = vpow2.f32 %v3571_v3  ;;  %6217 = vmatprep.subr.mxu1 %v3379_v32  ;;  %v3371_v46 = vsel %vm1990_vm0, %v6543_v5, 0.0 }
0x1642   :  { %v6545_v6 = vpop.eup %6544  ;;  %3372 = vadd.xlane.f32.xlu0 %v3371_v46  ;;  %6218 = vmatpush3.msra.mxu1 %v3379_v32  ;;  %6548 = vpow2.f32 %v3569_v41 }
0x1643   :  { %6229 = vmatprep.subr.msk.mxu1 %vm2021_vm1, %v3586_v37  ;;  %v3368_v49 = vsel %vm448_vm9, %v6545_v6, 0.0 }
0x1644   :  { %3369 = vadd.xlane.f32.xlu1 %v3368_v49 }
0x164e   :  { %v6547_v40 = vpop.eup %6546 }
0x164f   :  { %v3576_v9 = vsel %vm1990_vm0, %v6547_v40, 0.0  ;;  %v6549_v33 = vpop.eup %6548 }
0x1650   :  { %3577 = vadd.xlane.f32.xlu0 %v3576_v9  ;;  %v3573_v39 = vsel %vm448_vm9, %v6549_v33, 0.0 }
0x1655   :  { %3675 = vrot.lane.b32.xlu1 %v7689_v24, %s6675_s14 }
0x1666   :  { %3677 = vrot.lane.b32.xlu0 %v7687_v18, %s6675_s14  ;;  %s8032_s14 = sld [smem:[#allocation25_spill]] }
0x166a   :  { %3671 = vrot.lane.b32.xlu0 %v7689_v24, %s6676_s19 }
0x1679   :  { %3574 = vadd.xlane.f32.xlu1 %v3573_v39 }
0x168a   :  { %3673 = vrot.lane.b32.xlu1 %v7687_v18, %s6676_s19  ;;  %s8033_s19 = sld [smem:[#allocation23_spill]] }
0x16cb   :  { %v3373_v11 = vpop.xlane.xlu0 %3372 }
0x16cc   :  { %6550 = vrcp.f32 %v3373_v11 }
0x16cd   :  { %v3370_v29 = vpop.xlane.xlu1 %3369 }
0x16ce   :  { %6552 = vrcp.f32 %v3370_v29 }
0x16d1   :  { %v3676_v27 = vpop.permute.xlu1 %3675 }
0x16d9   :  { %v6551_v38 = vpop.eup %6550  ;;  %v3578_v13 = vpop.xlane.xlu0 %3577 }
0x16da   :  { %v3377_v14 = vmul.f32 %v6551_v38, %v6543_v5  ;;  %6554 = vrcp.f32 %v3578_v13 }
0x16db   :  { %v6553_v12 = vpop.eup %6552 }
0x16dc   :  { %v3376_v50 = vmul.f32 %v6553_v12, %v6545_v6 }
0x16dd   :  { %v3678_v15 = vpop.permute.xlu0 %3677 }
0x16de   :  { %6219 = vmatprep.mubr.msk.f32.mxu1 %vm448_vm9, %v3376_v50 }
0x16df   :  { %6220 = vmatmul.mubr.msk.f32.vlgmr.msra.gmra.mxu1 %vm448_vm9, %v3377_v14 }
0x16e0   :  { %6230 = vmatpush3.msk.msra.mxu1 %vm2021_vm1, %v3586_v37 }
0x16e1   :  { %6231 = vmatprep.subr.mxu1 %v3584_v59  ;;  %v3672_v62 = vpop.permute.xlu0 %3671 }
0x16e2   :  { %6232 = vmatpush3.msra.mxu1 %v3584_v59 }
0x16e3   :  { %6236 = vmatprep.subr.msk.mxu1 %vm1899_vm12, %v3678_v15 }
0x16e7   :  { %v6555_v20 = vpop.eup %6554 }
0x16e8   :  { %v3582_v58 = vmul.f32 %v6555_v20, %v6547_v40 }
0x1702   :  { %v3575_v17 = vpop.xlane.xlu1 %3574 }
0x1703   :  { %6556 = vrcp.f32 %v3575_v17 }
0x1706   :  { %v3674_v30 = vpop.permute.xlu1 %3673 }
0x1710   :  { %v6557_v51 = vpop.eup %6556 }
0x1711   :  { %v3581_v10 = vmul.f32 %v6557_v51, %v6549_v33 }
0x1713   :  { %6233 = vmatprep.mubr.msk.f32.mxu1 %vm448_vm9, %v3581_v10 }
0x1714   :  { %6234 = vmatmul.mubr.msk.f32.vlgmr.msra.gmra.mxu1 %vm448_vm9, %v3582_v58 }
0x1715   :  { %6237 = vmatpush3.xpose.msk.msra.mxu1 %vm1899_vm12, %v3678_v15  ;;  %6240 = vmatprep.mubr.msk.f32.mxu1 %vm1899_vm12, %v3672_v62 }
0x1716   :  { %6238 = vmatprep.subr.msk.mxu1 %vm1899_vm12, %v3676_v27 }
0x1719   :  { %6239 = vmatpush3.xpose.msk.msra.mxu1 %vm1899_vm12, %v3676_v27 }
0x171c   :  { %6241 = vmatmul.mubr.msk.f32.vlgmr.msra.gmra.mxu1 %vm1899_vm12, %v3674_v30 }
0x179f   :  { %v7759_v61 = vpop.f32.mrf.mxu1 }
0x17a1   :  { %v7761_v25 = vpop.f32.mrf.mxu1 }
0x17d4   :  { %v7763_v34 = vpop.f32.mrf.mxu1 }
0x17d6   :  { %v7765_v16 = vpop.f32.mrf.mxu1 }
0x17dc   :  { %v6242_v35 = vpop.f32.mrf.mxu1 }
0x17dd   :  { %v3763_v44 = vmul.f32 0.35355338, %v6242_v35  ;;  %v4113_v35 = vld [vmem:[%s8024_s21 + $0x10] sm:$0xff] }
0x17de   :  { %v3753_v19 = vpop.f32.mrf.mxu1 }
0x17df   :  { %v3762_v36 = vmul.f32 0.35355338, %v3753_v19  ;;  %v3765_v42 = vadd.f32 %v3763_v44, %v7511_v28  ;;  %v4112_v44 = vld [vmem:[%s8024_s21 + $0x8] sm:$0xff]  ;;  %v4111_v19 = vld [vmem:[%s8024_s21] sm:$0xff] }
0x17e1   :  { %v3769_v43 = vsel %vm1990_vm0, %v3765_v42, -inf  ;;  %v3764_v4 = vadd.f32 %v3762_v36, %v7513_v21 }
0x17e2   :  { %3770 = vmax.xlane.f32.xlu1 %v3769_v43 }
0x17e3   :  { %v3766_v48 = vsel %vm448_vm9, %v3764_v4, -inf }
0x17e4   :  { %3767 = vmax.xlane.f32.xlu0 %v3766_v48 }
0x17f3   :  { %3790 = vrot.lane.b32.xlu1 %v7687_v18, %s6677_s24 }
0x17f7   :  { %3882 = vrot.lane.b32.xlu1 %v7687_v18, %s6678_s2 }
0x17fb   :  { %3880 = vrot.lane.b32.xlu1 %v7689_v24, %s6678_s2  ;;  %s8035_s2 = sld [smem:[#allocation26_spill]] }
0x17ff   :  { %3878 = vrot.lane.b32.xlu1 %v7687_v18, %s6679_s7 }
0x186b   :  { %v3771_v31 = vpop.xlane.xlu1 %3770 }
0x186c   :  { %v3773_v22 = vsub.f32 %v3765_v42, %v3771_v31 }
0x186d   :  { %v3768_v55 = vpop.xlane.xlu0 %3767 }
0x186e   :  { %v3776_v56 = vmul.f32 1.442695, %v3773_v22  ;;  %v3772_v60 = vsub.f32 %v3764_v4, %v3768_v55 }
0x186f   :  { %v3791_v54 = vpop.permute.xlu1 %3790 }
0x1870   :  { %6558 = vpow2.f32 %v3776_v56  ;;  %v3774_v63 = vmul.f32 1.442695, %v3772_v60  ;;  %6243 = vmatprep.subr.msk.mxu0 %vm2021_vm1, %v3791_v54 }
0x1871   :  { %6244 = vmatpush3.msk.msra.mxu0 %vm2021_vm1, %v3791_v54 }
0x1872   :  { %6560 = vpow2.f32 %v3774_v63 }
0x1873   :  { %v3883_v52 = vpop.permute.xlu1 %3882 }
0x1877   :  { %v3881_v37 = vpop.permute.xlu1 %3880 }
0x187b   :  { %v3879_v49 = vpop.permute.xlu1 %3878 }
0x187d   :  { %v6559_v0 = vpop.eup %6558 }
0x187e   :  { %v3781_v47 = vsel %vm1990_vm0, %v6559_v0, 0.0 }
0x187f   :  { %v6561_v2 = vpop.eup %6560  ;;  %3782 = vadd.xlane.f32.xlu0 %v3781_v47 }
0x1880   :  { %v3778_v26 = vsel %vm448_vm9, %v6561_v2, 0.0 }
0x1883   :  { %3779 = vadd.xlane.f32.xlu0 %v3778_v26 }
0x1899   :  { %3788 = vrot.lane.b32.xlu0 %v7689_v24, %s6677_s24  ;;  %s8034_s24 = sld [smem:[#allocation24_spill]] }
0x189d   :  { %3876 = vrot.lane.b32.xlu0 %v7689_v24, %s6679_s7  ;;  %s8036_s7 = sld [smem:[#allocation29_spill]] }
0x1908   :  { %v3783_v1 = vpop.xlane.xlu0 %3782 }
0x1909   :  { %6562 = vrcp.f32 %v3783_v1 }
0x190c   :  { %v3780_v8 = vpop.xlane.xlu0 %3779 }
0x190d   :  { %6564 = vrcp.f32 %v3780_v8 }
0x1910   :  { %v3789_v53 = vpop.permute.xlu0 %3788 }
0x1911   :  { %6245 = vmatprep.subr.mxu0 %v3789_v53 }
0x1912   :  { %6246 = vmatpush3.msra.mxu0 %v3789_v53 }
0x1913   :  { %6250 = vmatprep.subr.msk.mxu0 %vm1899_vm12, %v3883_v52 }
0x1914   :  { %v3877_v6 = vpop.permute.xlu0 %3876 }
0x1916   :  { %v6563_v3 = vpop.eup %6562 }
0x1917   :  { %v3787_v46 = vmul.f32 %v6563_v3, %v6559_v0 }
0x191a   :  { %v6565_v5 = vpop.eup %6564 }
0x191b   :  { %v3786_v32 = vmul.f32 %v6565_v5, %v6561_v2  ;;  %v5563_v2 = vld [vmem:[%s8025_s25] ss:$0 sm:$0xff] }
0x191d   :  { %6247 = vmatprep.mubr.msk.f32.mxu0 %vm448_vm9, %v3786_v32 }
0x191e   :  { %6248 = vmatmul.mubr.msk.f32.vlgmr.msra.gmra.mxu0 %vm448_vm9, %v3787_v46 }
0x191f   :  { %6251 = vmatpush3.xpose.msk.msra.mxu0 %vm1899_vm12, %v3883_v52  ;;  %6254 = vmatprep.mubr.msk.f32.mxu0 %vm1899_vm12, %v3877_v6 }
0x1920   :  { %6252 = vmatprep.subr.msk.mxu0 %vm1899_vm12, %v3881_v37 }
0x1923   :  { %6253 = vmatpush3.xpose.msk.msra.mxu0 %vm1899_vm12, %v3881_v37 }
0x1926   :  { %6255 = vmatmul.mubr.msk.f32.vlgmr.msra.gmra.mxu0 %vm1899_vm12, %v3879_v49 }
0x19de   :  { %v6249_v40 = vpop.f32.mrf.mxu0 }
0x19e0   :  { %v3867_v9 = vpop.f32.mrf.mxu0 }
0x19e6   :  { %v6256_v23 = vpop.f32.mrf.mxu0 }
0x19e7   :  { %v3968_v41 = vmul.f32 0.35355338, %v6256_v23  ;;  %v4252_v23 = vld [vmem:[%s8026_s28 + $0x18] sm:$0xff] }
0x19e8   :  { %v3958_v33 = vpop.f32.mrf.mxu0  ;;  %6275 = vmatprep.subr.mxu0 %v4252_v23 }
0x19e9   :  { %v3970_v39 = vadd.f32 %v3968_v41, %v7511_v28  ;;  %v3967_v59 = vmul.f32 0.35355338, %v3958_v33  ;;  %v4251_v41 = vld [vmem:[%s8026_s28 + $0x10] sm:$0xff]  ;;  %6276 = vmatpush3.msra.mxu0 %v4252_v23  ;;  %v4250_v33 = vld [vmem:[%s8026_s28 + $0x8] sm:$0xff] }
0x19ea   :  { %6277 = vmatprep.subr.mxu0 %v4251_v41 }
0x19eb   :  { %v3974_v11 = vsel %vm1990_vm0, %v3970_v39, -inf  ;;  %v3969_v29 = vadd.f32 %v3967_v59, %v7513_v21  ;;  %6278 = vmatpush3.msra.mxu0 %v4251_v41 }
0x19ec   :  { %3975 = vmax.xlane.f32.xlu1 %v3974_v11  ;;  %6279 = vmatprep.subr.mxu0 %v4250_v33 }
0x19ed   :  { %v3971_v38 = vsel %vm448_vm9, %v3969_v29, -inf  ;;  %6280 = vmatpush3.msra.mxu0 %v4250_v33 }
0x19ee   :  { %3972 = vmax.xlane.f32.xlu0 %v3971_v38 }
0x19fd   :  { %3995 = vrot.lane.b32.xlu1 %v7687_v18, %s6680_s10 }
0x1a01   :  { %4083 = vrot.lane.b32.xlu1 %v7765_v16, %s6681_s11 }
0x1a05   :  { %4085 = vrot.lane.b32.xlu1 %v7763_v34, %s6681_s11  ;;  %s8038_s11 = sld [smem:[#allocation28_spill]] }
0x1a09   :  { %4093 = vrot.lane.b32.xlu1 %v6249_v40, %s6682_s15 }
0x1a75   :  { %v3976_v28 = vpop.xlane.xlu1 %3975 }
0x1a76   :  { %v3978_v12 = vsub.f32 %v3970_v39, %v3976_v28  ;;  %v4249_v39 = vld [vmem:[%s8026_s28] sm:$0xff] }
0x1a77   :  { %v3973_v13 = vpop.xlane.xlu0 %3972  ;;  %6281 = vmatprep.subr.mxu0 %v4249_v39 }
0x1a78   :  { %v3981_v50 = vmul.f32 1.442695, %v3978_v12  ;;  %v3977_v21 = vsub.f32 %v3969_v29, %v3973_v13  ;;  %6282 = vmatpush3.msra.mxu0 %v4249_v39 }
0x1a79   :  { %v3996_v14 = vpop.permute.xlu1 %3995  ;;  %6305 = vmatprep.subr.mxu0 %v6660_v7 }
0x1a7a   :  { %6566 = vpow2.f32 %v3981_v50  ;;  %v3979_v15 = vmul.f32 1.442695, %v3977_v21  ;;  %6257 = vmatprep.subr.msk.mxu1 %vm2021_vm1, %v3996_v14  ;;  %v5566_v50 = vld [vmem:[%s8027_s1] ss:$0 sm:$0xff] }
0x1a7b   :  { %6258 = vmatpush3.msk.msra.mxu1 %vm2021_vm1, %v3996_v14  ;;  %v5567_v14 = vld [vmem:[%s8028_s5] ss:$0 sm:$0xff] }
0x1a7c   :  { %6568 = vpow2.f32 %v3979_v15 }
0x1a7d   :  { %v4084_v43 = vpop.permute.xlu1 %4083 }
0x1a7e   :  { %v4105_v22 = vsel %vm1899_vm12, %v7761_v25, %v4084_v43 }
0x1a81   :  { %v4086_v4 = vpop.permute.xlu1 %4085 }
0x1a82   :  { %v4106_v56 = vsel %vm1899_vm12, %v7759_v61, %v4086_v4 }
0x1a85   :  { %v4094_v48 = vpop.permute.xlu1 %4093 }
0x1a86   :  { %v4108_v63 = vsel %vm2740_vm3, %v4106_v56, %v4094_v48 }
0x1a87   :  { %v6567_v18 = vpop.eup %6566 }
0x1a88   :  { %v3986_v27 = vsel %vm1990_vm0, %v6567_v18, 0.0 }
0x1a89   :  { %v6569_v17 = vpop.eup %6568  ;;  %3987 = vadd.xlane.f32.xlu0 %v3986_v27 }
0x1a8a   :  { %v3983_v20 = vsel %vm448_vm9, %v6569_v17, 0.0 }
0x1a8d   :  { %3984 = vadd.xlane.f32.xlu0 %v3983_v20 }
0x1aa3   :  { %3993 = vrot.lane.b32.xlu0 %v7689_v24, %s6680_s10  ;;  %v4114_v24 = vld [vmem:[%s8024_s21 + $0x18] sm:$0xff]  ;;  %s8037_s10 = sld [smem:[#allocation27_spill]] }
0x1aa7   :  { %4091 = vrot.lane.b32.xlu0 %v3867_v9, %s6682_s15  ;;  %s8039_s15 = sld [smem:[#allocation30_spill]] }
0x1b12   :  { %v3988_v51 = vpop.xlane.xlu0 %3987 }
0x1b13   :  { %6570 = vrcp.f32 %v3988_v51 }
0x1b16   :  { %v3985_v10 = vpop.xlane.xlu0 %3984 }
0x1b17   :  { %6572 = vrcp.f32 %v3985_v10  ;;  %v4402_v10 = vld [vmem:[%s8029_s29 + $0x38] sm:$0xff] }
0x1b1a   :  { %v3994_v58 = vpop.permute.xlu0 %3993 }
0x1b1b   :  { %6259 = vmatprep.subr.mxu1 %v3994_v58 }
0x1b1c   :  { %6260 = vmatpush3.msra.mxu1 %v3994_v58  ;;  %v4401_v58 = vld [vmem:[%s8029_s29 + $0x30] sm:$0xff] }
0x1b1d   :  { %6264 = vmatprep.subr.mxu1 %v4114_v24 }
0x1b1e   :  { %v4092_v31 = vpop.permute.xlu0 %4091 }
0x1b1f   :  { %v4107_v60 = vsel %vm2740_vm3, %v4105_v22, %v4092_v31 }
0x1b20   :  { %v6571_v62 = vpop.eup %6570 }
0x1b21   :  { %v3992_v16 = vmul.f32 %v6571_v62, %v6567_v18  ;;  %v4400_v62 = vld [vmem:[%s8029_s29 + $0x28] sm:$0xff] }
0x1b24   :  { %v6573_v30 = vpop.eup %6572 }
0x1b25   :  { %v3991_v34 = vmul.f32 %v6573_v30, %v6569_v17  ;;  %v4399_v30 = vld [vmem:[%s8029_s29 + $0x20] sm:$0xff] }
0x1b27   :  { %6261 = vmatprep.mubr.msk.f32.mxu1 %vm448_vm9, %v3991_v34  ;;  %v4398_v34 = vld [vmem:[%s8029_s29 + $0x18] sm:$0xff] }
0x1b28   :  { %6262 = vmatmul.mubr.msk.f32.vlgmr.msra.gmra.mxu1 %vm448_vm9, %v3992_v16  ;;  %v4397_v16 = vld [vmem:[%s8029_s29 + $0x10] sm:$0xff] }
0x1b29   :  { %6265 = vmatpush3.msra.mxu1 %v4114_v24  ;;  %v4396_v24 = vld [vmem:[%s8029_s29 + $0x8] sm:$0xff] }
0x1b2a   :  { %6266 = vmatprep.subr.mxu1 %v4113_v35 }
0x1b2b   :  { %6267 = vmatpush3.msra.mxu1 %v4113_v35  ;;  %v4395_v35 = vld [vmem:[%s8029_s29] sm:$0xff] }
0x1b2c   :  { %6268 = vmatprep.subr.mxu1 %v4112_v44 }
0x1b2d   :  { %6269 = vmatpush3.msra.mxu1 %v4112_v44  ;;  %v5568_v44 = vld [vmem:[%s8030_s3] ss:$0 sm:$0xff] }
0x1b2e   :  { %6270 = vmatprep.subr.mxu1 %v4111_v19 }
0x1b2f   :  { %6271 = vmatpush3.msra.mxu1 %v4111_v19 }
0x1b30   :  { %6286 = vmatprep.subr.mxu1 %v4402_v10 }
0x1be8   :  { %v6263_v36 = vpop.f32.mrf.mxu1 }
0x1be9   :  { %4101 = vrot.lane.b32.xlu1 %v6263_v36, %s6683_s16 }
0x1bea   :  { %v4072_v42 = vpop.f32.mrf.mxu1 }
0x1beb   :  { %4099 = vrot.lane.b32.xlu0 %v4072_v42, %s6683_s16  ;;  %s8040_s16 = sld [smem:[#allocation31_spill]] }
0x1c5b   :  { %v4102_v55 = vpop.permute.xlu1 %4101 }
0x1c5c   :  { %v4110_v47 = vsel %vm467_vm13, %v4108_v63, %v4102_v55 }
0x1c5d   :  { %v4100_v54 = vpop.permute.xlu0 %4099 }
0x1c5e   :  { %v4109_v0 = vsel %vm467_vm13, %v4107_v60, %v4100_v54 }
0x1c5f   :  { %6272 = vmatprep.mubr.msk.f32.mxu1 %vm1756_vm8, %v4109_v0 }
0x1c60   :  { %6273 = vmatmul.mubr.msk.f32.vlgmr.msra.gmra.mxu1 %vm1756_vm8, %v4110_v47 }
0x1c61   :  { %6287 = vmatpush3.msra.mxu1 %v4402_v10 }
0x1c62   :  { %6288 = vmatprep.subr.mxu1 %v4401_v58 }
0x1c63   :  { %6289 = vmatpush3.msra.mxu1 %v4401_v58 }
0x1c64   :  { %6290 = vmatprep.subr.mxu1 %v4400_v62 }
0x1c65   :  { %6291 = vmatpush3.msra.mxu1 %v4400_v62  ;;  %v5571_v62 = vld [vmem:[%s8031_s8] ss:$0 sm:$0xff] }
0x1c66   :  { %6292 = vmatprep.subr.mxu1 %v4399_v30 }
0x1c67   :  { %6293 = vmatpush3.msra.mxu1 %v4399_v30 }
0x1c68   :  { %6294 = vmatprep.subr.mxu1 %v4398_v34 }
0x1c69   :  { %6295 = vmatpush3.msra.mxu1 %v4398_v34 }
0x1c6a   :  { %6296 = vmatprep.subr.mxu1 %v4397_v16 }
0x1c6b   :  { %6297 = vmatpush3.msra.mxu1 %v4397_v16 }
0x1c6c   :  { %6298 = vmatprep.subr.mxu1 %v4396_v24 }
0x1c6d   :  { %6299 = vmatpush3.msra.mxu1 %v4396_v24 }
0x1c6e   :  { %6300 = vmatprep.subr.mxu1 %v4395_v35 }
0x1c6f   :  { %6301 = vmatpush3.msra.mxu1 %v4395_v35 }
0x1c70   :  { %6327 = vmatprep.subr.mxu1 %v6660_v7 }
0x1d20   :  { %v6274_v26 = vpop.f32.mrf.mxu1 }
0x1d21   :  { %v4200_v25 = vadd.f32 %v6274_v26, %v5563_v2 }
0x1d22   :  { %v4194_v1 = vpop.f32.mrf.mxu1 }
0x1d23   :  { %v7833_v8 = vadd.f32 %v4200_v25, %v7665_v57  ;;  %v4195_v61 = vadd.f32 %v5563_v2, %v4194_v1 }
0x1d25   :  { %v7836_v53 = vadd.f32 %v4195_v61, %v7668_v45  ;;  %v4210_v52 = vsel %vm1760_vm11, %v7833_v8, 0.0 }
0x1d26   :  { %4211 = vadd.xlane.f32.xlu1 %v4210_v52 }
0x1d27   :  { %v4207_v3 = vsel %vm1756_vm8, %v7836_v53, 0.0 }
0x1d28   :  { %4208 = vadd.xlane.f32.xlu0 %v4207_v3 }
0x1daf   :  { %v4212_v5 = vpop.xlane.xlu1 %4211 }
0x1db0   :  { %v4214_v32 = vmul.f32 0.03125, %v4212_v5 }
0x1db1   :  { %v4209_v46 = vpop.xlane.xlu0 %4208 }
0x1db2   :  { %v4213_v57 = vmul.f32 0.03125, %v4209_v46  ;;  %v4216_v6 = vsub.f32 %v7833_v8, %v4214_v32 }
0x1db4   :  { %v4215_v45 = vsub.f32 %v7836_v53, %v4213_v57  ;;  %v4218_v40 = vmul.f32 %v4216_v6, %v4216_v6 }
0x1db6   :  { %v4217_v37 = vmul.f32 %v4215_v45, %v4215_v45  ;;  %v4222_v9 = vsel %vm1760_vm11, %v4218_v40, 0.0 }
0x1db8   :  { %v4219_v49 = vsel %vm1756_vm8, %v4217_v37, 0.0 }
0x1db9   :  { %4220 = vadd.xlane.f32.xlu0 %v4219_v49 }
0x1dbd   :  { %4223 = vadd.xlane.f32.xlu0 %v4222_v9 }
0x1e42   :  { %v4221_v59 = vpop.xlane.xlu0 %4220 }
0x1e43   :  { %v4225_v11 = vmul.f32 0.03125, %v4221_v59 }
0x1e45   :  { %v4227_v29 = vadd.f32 1e-05, %v4225_v11 }
0x1e46   :  { %v4224_v38 = vpop.xlane.xlu0 %4223 }
0x1e47   :  { %6574 = vrsqrt.f32 %v4227_v29  ;;  %v4226_v28 = vmul.f32 0.03125, %v4224_v38 }
0x1e49   :  { %v4228_v12 = vadd.f32 1e-05, %v4226_v28 }
0x1e4b   :  { %6576 = vrsqrt.f32 %v4228_v12 }
0x1e54   :  { %v6575_v13 = vpop.eup %6574 }
0x1e55   :  { %v4231_v21 = vmul.f32 %v6575_v13, %v4215_v45 }
0x1e57   :  { %v4239_v15 = vmul.f32 %v5566_v50, %v4231_v21 }
0x1e58   :  { %v6577_v18 = vpop.eup %6576 }
0x1e59   :  { %v4232_v27 = vmul.f32 %v6577_v18, %v4216_v6  ;;  %v4247_v17 = vadd.f32 %v5567_v14, %v4239_v15 }
0x1e5b   :  { %v4240_v20 = vmul.f32 %v5566_v50, %v4232_v27  ;;  %6283 = vmatprep.mubr.msk.f32.mxu0 %vm1756_vm8, %v4247_v17 }
0x1e5d   :  { %v4248_v51 = vadd.f32 %v5567_v14, %v4240_v20 }
0x1e5f   :  { %6284 = vmatmul.mubr.msk.f32.vlgmr.msra.gmra.mxu0 %vm1756_vm8, %v4248_v51 }
0x1e60   :  { %6313 = vmatprep.mubr.msk.f32.mxu0 %vm6661_vm2, %v6660_v7 }
0x1f1f   :  { %v6285_v19 = vpop.f32.mrf.mxu0 }
0x1f20   :  { %v4338_v36 = vadd.f32 %v6285_v19, %v5568_v44 }
0x1f21   :  { %v4332_v42 = vpop.f32.mrf.mxu0 }
0x1f22   :  { %v4344_v43 = vmul.f32 0.70710677, %v4338_v36  ;;  %v4333_v4 = vadd.f32 %v5568_v44, %v4332_v42  ;;  %v4342_v51 = vmul.f32 0.5, %v4338_v36 }
0x1f24   :  { %v4346_v48 = vand.u32 2147483647, %v4344_v43  ;;  %v4343_v31 = vmul.f32 0.70710677, %v4333_v4  ;;  %vm4386_vm9 = vcmp.ge.f32.partialorder %v4344_v43, 0.0  ;;  %v4341_v17 = vmul.f32 0.5, %v4333_v4 }
0x1f26   :  { %v4348_v22 = vmul.f32 0.3275911, %v4346_v48  ;;  %v4345_v55 = vand.u32 2147483647, %v4343_v31  ;;  %v4374_v63 = vsub.f32 0.0, %v4346_v48  ;;  %vm4385_vm13 = vcmp.ge.f32.partialorder %v4343_v31, 0.0 }
0x1f28   :  { %v4350_v56 = vadd.f32 1.0, %v4348_v22  ;;  %v4347_v60 = vmul.f32 0.3275911, %v4345_v55  ;;  %v4373_v0 = vsub.f32 0.0, %v4345_v55  ;;  %v4376_v47 = vmul.f32 %v4374_v63, %v4346_v48  ;;  %v5586_v63 = vld [vmem:[%s8032_s14 + $0x58] sm:$0xff] }
0x1f2a   :  { %6578 = vrcp.f32 %v4350_v56  ;;  %v4349_v54 = vadd.f32 1.0, %v4347_v60  ;;  %v4375_v26 = vmul.f32 %v4373_v0, %v4345_v55  ;;  %v4379_v1 = vmul.f32 1.442695, %v4376_v47  ;;  %v4541_v60 = vld [vmem:[%s8032_s14 + $0x18] sm:$0xff]  ;;  %v5585_v0 = vld [vmem:[%s8032_s14 + $0x50] sm:$0xff]  ;;  %v4539_v47 = vld [vmem:[%s8032_s14 + $0x8] sm:$0xff] }
0x1f2b   :  { %6306 = vmatpush3.msra.mxu0 %v4541_v60 }
0x1f2c   :  { %6580 = vrcp.f32 %v4349_v54  ;;  %v4377_v5 = vmul.f32 1.442695, %v4375_v26  ;;  %v4540_v54 = vld [vmem:[%s8032_s14 + $0x10] sm:$0xff]  ;;  %6307 = vmatprep.subr.mxu0 %v6660_v7  ;;  %v4538_v26 = vld [vmem:[%s8032_s14] sm:$0xff] }
0x1f2d   :  { %6582 = vpow2.f32 %v4379_v1  ;;  %6308 = vmatpush3.msra.mxu0 %v4540_v54 }
0x1f2e   :  { %6584 = vpow2.f32 %v4377_v5  ;;  %6309 = vmatprep.subr.mxu0 %v6660_v7 }
0x1f2f   :  { %6310 = vmatpush3.msra.mxu0 %v4539_v47 }
0x1f30   :  { %6311 = vmatprep.subr.mxu0 %v6660_v7 }
0x1f31   :  { %6312 = vmatpush3.msra.mxu0 %v4538_v26  ;;  %v5056_v26 = vld [vmem:[%s8036_s7 + $0x38] sm:$0xff] }
0x1f32   :  { %6316 = vmatprep.subr.mxu0 %v6660_v7 }
0x1f37   :  { %v6579_v2 = vpop.eup %6578 }
0x1f38   :  { %v4356_v25 = vmul.f32 1.0614054, %v6579_v2 }
0x1f39   :  { %v6581_v61 = vpop.eup %6580 }
0x1f3a   :  { %v4358_v52 = vadd.f32 -1.4531521, %v4356_v25  ;;  %v4355_v3 = vmul.f32 1.0614054, %v6581_v61  ;;  %v6583_v59 = vpop.eup %6582  ;;  %v5583_v25 = vld [vmem:[%s8032_s14 + $0x40] sm:$0xff] }
0x1f3b   :  { %v6585_v28 = vpop.eup %6584 }
0x1f3c   :  { %v4360_v32 = vmul.f32 %v6579_v2, %v4358_v52  ;;  %v4357_v46 = vadd.f32 -1.4531521, %v4355_v3 }
0x1f3e   :  { %v4362_v57 = vadd.f32 1.4214138, %v4360_v32  ;;  %v4359_v6 = vmul.f32 %v6581_v61, %v4357_v46 }
0x1f40   :  { %v4364_v45 = vmul.f32 %v6579_v2, %v4362_v57  ;;  %v4361_v37 = vadd.f32 1.4214138, %v4359_v6  ;;  %v5574_v6 = vld [vmem:[%s8033_s19] ss:$0 sm:$0xff] }
0x1f42   :  { %v4366_v49 = vadd.f32 -0.28449672, %v4364_v45  ;;  %v4363_v40 = vmul.f32 %v6581_v61, %v4361_v37  ;;  %v5575_v37 = vld [vmem:[%s8034_s24] ss:$0 sm:$0xff] }
0x1f44   :  { %v4368_v9 = vmul.f32 %v6579_v2, %v4366_v49  ;;  %v4365_v23 = vadd.f32 -0.28449672, %v4363_v40 }
0x1f46   :  { %v4370_v41 = vadd.f32 0.2548296, %v4368_v9  ;;  %v4367_v33 = vmul.f32 %v6581_v61, %v4365_v23  ;;  %v5581_v9 = vld [vmem:[%s8032_s14 + $0x38] sm:$0xff]  ;;  %v5580_v23 = vld [vmem:[%s8032_s14 + $0x30] sm:$0xff] }
0x1f48   :  { %v4372_v39 = vmul.f32 %v6579_v2, %v4370_v41  ;;  %v4369_v11 = vadd.f32 0.2548296, %v4367_v33  ;;  %v5584_v2 = vld [vmem:[%s8032_s14 + $0x48] sm:$0xff]  ;;  %v5596_v33 = vld [vmem:[%s8032_s14 + $0x98] sm:$0xff] }
0x1f4a   :  { %v4382_v29 = vmul.f32 %v6583_v59, %v4372_v39  ;;  %v4371_v38 = vmul.f32 %v6581_v61, %v4369_v11  ;;  %v5579_v59 = vld [vmem:[%s8032_s14 + $0x28] sm:$0xff]  ;;  %v5595_v11 = vld [vmem:[%s8032_s14 + $0x90] sm:$0xff] }
0x1f4c   :  { %v4384_v12 = vsub.f32 1.0, %v4382_v29  ;;  %v4381_v13 = vmul.f32 %v6585_v28, %v4371_v38  ;;  %v5578_v29 = vld [vmem:[%s8032_s14 + $0x20] sm:$0xff]  ;;  %v5594_v38 = vld [vmem:[%s8032_s14 + $0x88] sm:$0xff] }
0x1f4e   :  { %v4388_v50 = vsub.f32 0.0, %v4384_v12  ;;  %v4383_v21 = vsub.f32 1.0, %v4381_v13  ;;  %v5591_v13 = vld [vmem:[%s8032_s14 + $0x78] sm:$0xff] }
0x1f50   :  { %v4390_v14 = vsel %vm4386_vm9, %v4384_v12, %v4388_v50  ;;  %v4387_v15 = vsub.f32 0.0, %v4383_v21  ;;  %v5593_v50 = vld [vmem:[%s8032_s14 + $0x80] sm:$0xff] }
0x1f51   :  { %v4392_v18 = vadd.f32 1.0, %v4390_v14  ;;  %v5590_v14 = vld [vmem:[%s8032_s14 + $0x70] sm:$0xff] }
0x1f52   :  { %v4389_v27 = vsel %vm4385_vm13, %v4383_v21, %v4387_v15  ;;  %v5589_v15 = vld [vmem:[%s8032_s14 + $0x68] sm:$0xff] }
0x1f53   :  { %v4391_v20 = vadd.f32 1.0, %v4389_v27  ;;  %v4394_v58 = vmul.f32 %v4392_v18, %v4342_v51  ;;  %v5588_v18 = vld [vmem:[%s8032_s14 + $0x60] sm:$0xff]  ;;  %v5599_v51 = vld [vmem:[%s8032_s14 + $0xa8] sm:$0xff] }
0x1f55   :  { %v4393_v10 = vmul.f32 %v4391_v20, %v4341_v17  ;;  %v5601_v17 = vld [vmem:[%s8032_s14 + $0xb8] sm:$0xff]  ;;  %v5600_v20 = vld [vmem:[%s8032_s14 + $0xb0] sm:$0xff] }
0x1f57   :  { %6302 = vmatprep.mubr.msk.f32.mxu1 %vm833_vm6, %v4393_v10  ;;  %v5598_v10 = vld [vmem:[%s8032_s14 + $0xa0] sm:$0xff] }
0x1f58   :  { %6303 = vmatmul.mubr.msk.f32.vlgmr.msra.gmra.mxu1 %vm833_vm6, %v4394_v58 }
0x1f59   :  { %6335 = vmatprep.mubr.msk.f32.mxu1 %vm6661_vm2, %v6660_v7  ;;  %6328 = vmatpush3.msra.mxu1 %v5586_v63 }
0x1f5a   :  { %6329 = vmatprep.subr.mxu1 %v6660_v7 }
0x1f5b   :  { %6330 = vmatpush3.msra.mxu1 %v5585_v0 }
0x1f5c   :  { %6331 = vmatprep.subr.mxu1 %v6660_v7 }
0x1f5d   :  { %6332 = vmatpush3.msra.mxu1 %v5584_v2 }
0x1f5e   :  { %6333 = vmatprep.subr.mxu1 %v6660_v7 }
0x1f5f   :  { %6334 = vmatpush3.msra.mxu1 %v5583_v25  ;;  %v5055_v25 = vld [vmem:[%s8036_s7 + $0x30] sm:$0xff] }
0x1f60   :  { %6349 = vmatprep.subr.mxu1 %v6660_v7 }
0x2018   :  { %v6304_v30 = vpop.f32.mrf.mxu1 }
0x2019   :  { %v4488_v34 = vadd.f32 %v6304_v30, %v5571_v62 }
0x201a   :  { %v4482_v16 = vpop.f32.mrf.mxu1 }
0x201b   :  { %v4492_v24 = vadd.f32 %v4488_v34, %v7833_v8  ;;  %v4483_v35 = vadd.f32 %v5571_v62, %v4482_v16 }
0x201d   :  { %v4491_v44 = vadd.f32 %v4483_v35, %v7836_v53  ;;  %v4498_v19 = vsel %vm1760_vm11, %v4492_v24, 0.0  ;;  %v5577_v35 = vld [vmem:[%s8035_s2] ss:$0 sm:$0xff] }
0x201e   :  { %4499 = vadd.xlane.f32.xlu0 %v4498_v19 }
0x201f   :  { %v4495_v36 = vsel %vm1756_vm8, %v4491_v44, 0.0 }
0x2020   :  { %4496 = vadd.xlane.f32.xlu1 %v4495_v36 }
0x20a7   :  { %v4500_v42 = vpop.xlane.xlu0 %4499 }
0x20a8   :  { %v4502_v43 = vmul.f32 0.03125, %v4500_v42 }
0x20a9   :  { %v4497_v4 = vpop.xlane.xlu1 %4496 }
0x20aa   :  { %v4504_v48 = vsub.f32 %v4492_v24, %v4502_v43  ;;  %v4501_v31 = vmul.f32 0.03125, %v4497_v4 }
0x20ac   :  { %v4503_v8 = vsub.f32 %v4491_v44, %v4501_v31  ;;  %v4506_v22 = vmul.f32 %v4504_v48, %v4504_v48 }
0x20ae   :  { %v4510_v53 = vsel %vm1760_vm11, %v4506_v22, 0.0  ;;  %v4505_v55 = vmul.f32 %v4503_v8, %v4503_v8 }
0x20af   :  { %4511 = vadd.xlane.f32.xlu0 %v4510_v53 }
0x20b0   :  { %v4507_v56 = vsel %vm1756_vm8, %v4505_v55, 0.0 }
0x20b1   :  { %4508 = vadd.xlane.f32.xlu1 %v4507_v56 }
0x2138   :  { %v4512_v1 = vpop.xlane.xlu0 %4511 }
0x2139   :  { %v4514_v3 = vmul.f32 0.03125, %v4512_v1  ;;  %v5054_v1 = vld [vmem:[%s8036_s7 + $0x28] sm:$0xff] }
0x213a   :  { %v4509_v61 = vpop.xlane.xlu1 %4508 }
0x213b   :  { %v4513_v52 = vmul.f32 0.03125, %v4509_v61  ;;  %v4516_v32 = vadd.f32 1e-05, %v4514_v3  ;;  %v5053_v61 = vld [vmem:[%s8036_s7 + $0x20] sm:$0xff]  ;;  %v5051_v3 = vld [vmem:[%s8036_s7 + $0x10] sm:$0xff] }
0x213d   :  { %v4515_v5 = vadd.f32 1e-05, %v4513_v52  ;;  %v5052_v52 = vld [vmem:[%s8036_s7 + $0x18] sm:$0xff] }
0x213f   :  { %6586 = vrsqrt.f32 %v4515_v5  ;;  %v5050_v5 = vld [vmem:[%s8036_s7 + $0x8] sm:$0xff] }
0x2140   :  { %6588 = vrsqrt.f32 %v4516_v32  ;;  %v5049_v32 = vld [vmem:[%s8036_s7] sm:$0xff] }
0x214c   :  { %v6587_v46 = vpop.eup %6586 }
0x214d   :  { %v4519_v57 = vmul.f32 %v6587_v46, %v4503_v8  ;;  %v6589_v49 = vpop.eup %6588 }
0x214e   :  { %v4520_v39 = vmul.f32 %v6589_v49, %v4504_v48 }
0x214f   :  { %v4527_v45 = vmul.f32 %v5574_v6, %v4519_v57 }
0x2150   :  { %v4528_v28 = vmul.f32 %v5574_v6, %v4520_v39 }
0x2151   :  { %v4535_v40 = vadd.f32 %v5575_v37, %v4527_v45 }
0x2152   :  { %v4536_v21 = vadd.f32 %v5575_v37, %v4528_v28  ;;  %v5603_v37 = vld [vmem:[%s8037_s10] ss:$0 sm:$0xff] }
0x2153   :  { %6314 = vmatmul.mubr.msk.f32.vlgmr.msra.gmra.mxu0 %vm1756_vm8, %v4535_v40  ;;  %v4706_v41 = vrot.slane %v4535_v40, 4  ;;  %v4627_v12 = vrot.slane %v4535_v40, 2  ;;  %v4785_v27 = vrot.slane %v4535_v40, 6  ;;  %v5604_v40 = vld [vmem:[%s8038_s11] ss:$0 sm:$0xff] }
0x2154   :  { %6317 = vmatpush3.msra.mxu0 %v5581_v9  ;;  %6324 = vmatprep.mubr.msk.f32.mxu0 %vm6661_vm2, %v6660_v7  ;;  %v4943_v58 = vrot.slane %v4536_v21, 2 }
0x2155   :  { %6318 = vmatprep.subr.mxu0 %v6660_v7  ;;  %6336 = vmatmul.mubr.msk.f32.vlgmr.msra.gmra.mxu1 %vm1756_vm8, %v4706_v41 }
0x2156   :  { %6319 = vmatpush3.msra.mxu0 %v5580_v23  ;;  %6350 = vmatpush3.msra.mxu1 %v5596_v33  ;;  %v5605_v33 = vld [vmem:[%s8039_s15] ss:$0 sm:$0xff] }
0x2157   :  { %6320 = vmatprep.subr.mxu0 %v6660_v7  ;;  %6351 = vmatprep.subr.mxu1 %v6660_v7 }
0x2158   :  { %6321 = vmatpush3.msra.mxu0 %v5579_v59  ;;  %6352 = vmatpush3.msra.mxu1 %v5595_v11 }
0x2159   :  { %6322 = vmatprep.subr.mxu0 %v6660_v7  ;;  %6353 = vmatprep.subr.mxu1 %v6660_v7 }
0x215a   :  { %6323 = vmatpush3.msra.mxu0 %v5578_v29  ;;  %6354 = vmatpush3.msra.mxu1 %v5594_v38 }
0x215b   :  { %6325 = vmatmul.mubr.msk.f32.vlgmr.msra.gmra.mxu0 %vm1756_vm8, %v4627_v12  ;;  %6338 = vmatprep.subr.mxu0 %v6660_v7 }
0x215c   :  { %6355 = vmatprep.subr.mxu1 %v6660_v7  ;;  %6339 = vmatpush3.msra.mxu0 %v5591_v13 }
0x215d   :  { %6356 = vmatpush3.msra.mxu1 %v5593_v50  ;;  %6357 = vmatprep.mubr.msk.f32.mxu1 %vm6661_vm2, %v6660_v7 }
0x215e   :  { %6340 = vmatprep.subr.mxu0 %v6660_v7  ;;  %6358 = vmatmul.mubr.msk.f32.vlgmr.msra.gmra.mxu1 %vm1756_vm8, %v4536_v21  ;;  %v5171_v21 = vld [vmem:[%s6903_s12 + $0x18] sm:$0xff] }
0x215f   :  { %6341 = vmatpush3.msra.mxu0 %v5590_v14  ;;  %6346 = vmatprep.mubr.msk.f32.mxu0 %vm6661_vm2, %v6660_v7  ;;  %v5170_v14 = vld [vmem:[%s6903_s12 + $0x10] sm:$0xff] }
0x2160   :  { %6342 = vmatprep.subr.mxu0 %v6660_v7  ;;  %6371 = vmatprep.subr.mxu1 %v6660_v7 }
0x2161   :  { %6343 = vmatpush3.msra.mxu0 %v5589_v15  ;;  %6387 = vmatprep.mubr.msk.f32.mxu1 %vm6661_vm2, %v6660_v7  ;;  %v5169_v15 = vld [vmem:[%s6903_s12 + $0x8] sm:$0xff] }
0x2162   :  { %6344 = vmatprep.subr.mxu0 %v6660_v7  ;;  %6372 = vmatpush3.msra.mxu1 %v5056_v26 }
0x2163   :  { %6345 = vmatpush3.msra.mxu0 %v5588_v18  ;;  %6373 = vmatprep.subr.mxu1 %v6660_v7  ;;  %v5168_v18 = vld [vmem:[%s6903_s12] sm:$0xff]  ;;  %s6684_s12 = smov [#allocation2]  }
0x2164   :  { %6347 = vmatmul.mubr.msk.f32.vlgmr.msra.gmra.mxu0 %vm1756_vm8, %v4785_v27  ;;  %6360 = vmatprep.subr.mxu0 %v6660_v7  ;;  %s5260_s30 = sshll.u32 %s6684_s12, 4  ;;  %s5261_s30 = int_to_ptr.vmem [resolvable:$true] %s5260_s30 }
0x2165   :  { %6361 = vmatpush3.msra.mxu0 %v5601_v17  ;;  %6368 = vmatprep.mubr.msk.f32.mxu0 %vm6661_vm2, %v6660_v7  ;;  %s6594_s6 = scalar_lea.vmem %s5261_s30, 32  ;;  %p6599_p1 = scmp.lt.s32.totalorder %s5261_s30, %s5261_s30 }
0x2166   :  { %6362 = vmatprep.subr.mxu0 %v6660_v7  ;;  %6374 = vmatpush3.msra.mxu1 %v5055_v25  ;;  %p6595_p0 = scmp.ne.s32.totalorder %s5261_s30, %s6594_s6  ;;  %p6600_p2 = scmp.lt.s32.totalorder %s6594_s6, %s6594_s6 }
0x2167   :  { %6363 = vmatpush3.msra.mxu0 %v5600_v20  ;;  %6375 = vmatprep.subr.mxu1 %v6660_v7 }
0x2168   :  { %6364 = vmatprep.subr.mxu0 %v6660_v7  ;;  %6376 = vmatpush3.msra.mxu1 %v5054_v1  ;;  %p6601_p3 = por %p6600_p2, %p6599_p1 }
0x2169   :  { %6365 = vmatpush3.msra.mxu0 %v5599_v51  ;;  %6377 = vmatprep.subr.mxu1 %v6660_v7 }
0x216a   :  { %6366 = vmatprep.subr.mxu0 %v6660_v7  ;;  %6378 = vmatpush3.msra.mxu1 %v5053_v61  ;;  %p6602_p4 = pnand %p6601_p3, %p6595_p0 }
0x216b   :  { %6367 = vmatpush3.msra.mxu0 %v5598_v10  ;;  %6379 = vmatprep.subr.mxu1 %v6660_v7  ;;  %v5607_v10 = vld [vmem:[%s8040_s16] ss:$0 sm:$0xff] }
0x216c   :  { %6369 = vmatmul.mubr.msk.f32.vlgmr.msra.gmra.mxu0 %vm1756_vm8, %v4943_v58  ;;  %6390 = vmatprep.subr.mxu0 %v6660_v7 }
0x216d   :  { %6398 = vmatprep.mubr.msk.f32.mxu0 %vm6661_vm2, %v6660_v7  ;;  %vm5019_vm2 = vcmask 517120   ;;  %6380 = vmatpush3.msra.mxu1 %v5052_v52 }
0x216e   :  { %6381 = vmatprep.subr.mxu1 %v6660_v7  ;;  %6391 = vmatpush3.msra.mxu0 %v5171_v21 }
0x216f   :  { %6382 = vmatpush3.msra.mxu1 %v5051_v3  ;;  %6392 = vmatprep.subr.mxu0 %v6660_v7 }
0x2170   :  { %6383 = vmatprep.subr.mxu1 %v6660_v7  ;;  %6393 = vmatpush3.msra.mxu0 %v5170_v14 }
0x2171   :  { %6384 = vmatpush3.msra.mxu1 %v5050_v5  ;;  %6394 = vmatprep.subr.mxu0 %v6660_v7 }
0x2172   :  { %6385 = vmatprep.subr.mxu1 %v6660_v7  ;;  %6395 = vmatpush3.msra.mxu0 %v5169_v15 }
0x2173   :  { %6386 = vmatpush3.msra.mxu1 %v5049_v32  ;;  %6396 = vmatprep.subr.mxu0 %v6660_v7 }
0x2174   :  { %6397 = vmatpush3.msra.mxu0 %v5168_v18 }
0x2213   :  { %v4611_v62 = vpop.f32.mrf.mxu0 }
0x2214   :  { %v4621_v36 = vadd.f32 %v5577_v35, %v4611_v62  ;;  %v5608_v62 = vld [vmem:[%s6898_s4] ss:$0 sm:$0xff] }
0x2215   :  { %v6315_v30 = vpop.f32.mrf.mxu0  ;;  %v4775_v34 = vpop.f32.mrf.mxu1 }
0x2217   :  { %v6337_v16 = vpop.f32.mrf.mxu1 }
0x221b   :  { %v4696_v24 = vpop.f32.mrf.mxu0 }
0x221c   :  { %v4700_v43 = vadd.f32 %v4696_v24, %v4621_v36  ;;  %v5609_v24 = vld [vmem:[%s6908_s20] ss:$0 sm:$0xff] }
0x221d   :  { %v6326_v44 = vpop.f32.mrf.mxu0 }
0x221e   :  { %v4933_v19 = vpop.f32.mrf.mxu1  ;;  %v4779_v48 = vadd.f32 %v4775_v34, %v4700_v43 }
0x2220   :  { %v6359_v42 = vpop.f32.mrf.mxu1 }
0x2224   :  { %v4854_v4 = vpop.f32.mrf.mxu0 }
0x2225   :  { %v4858_v8 = vadd.f32 %v4854_v4, %v4779_v48 }
0x2226   :  { %v6348_v31 = vpop.f32.mrf.mxu0 }
0x2227   :  { %v4937_v22 = vadd.f32 %v4933_v19, %v4858_v8 }
0x222c   :  { %v5012_v53 = vpop.f32.mrf.mxu0 }
0x222d   :  { %v5016_v55 = vadd.f32 %v5012_v53, %v4937_v22 }
0x222e   :  { %v6370_v56 = vpop.f32.mrf.mxu0 }
0x222f   :  { %v5020_v60 = vsel %vm5019_vm2, %v5016_v55, 0.0 }
0x2230   :  { %5021 = vadd.xlane.f32.xlu1 %v5020_v60 }
0x22b9   :  { %v5022_v54 = vpop.xlane.xlu1 %5021 }
0x22ba   :  { %v5024_v63 = vmul.f32 0.015625, %v5022_v54 }
0x22bc   :  { %v5025_v0 = vsub.f32 %v5016_v55, %v5024_v63 }
0x22be   :  { %v5026_v47 = vmul.f32 %v5025_v0, %v5025_v0 }
0x22c0   :  { %v5027_v2 = vsel %vm5019_vm2, %v5026_v47, 0.0 }
0x22c1   :  { %5028 = vadd.xlane.f32.xlu0 %v5027_v2 }
0x234a   :  { %v5029_v46 = vpop.xlane.xlu0 %5028 }
0x234b   :  { %v5030_v57 = vmul.f32 0.015625, %v5029_v46 }
0x234d   :  { %v5031_v6 = vadd.f32 1e-05, %v5030_v57 }
0x234f   :  { %6590 = vrsqrt.f32 %v5031_v6 }
0x235c   :  { %v6591_v45 = vpop.eup %6590 }
0x235d   :  { %v5033_v49 = vmul.f32 %v6591_v45, %v5025_v0 }
0x235f   :  { %v5040_v9 = vmul.f32 %v5603_v37, %v5033_v49 }
0x2361   :  { %v5047_v23 = vadd.f32 %v5604_v40, %v5040_v9 }
0x2363   :  { %v5048_v41 = vmax.f32 %v5047_v23, 0.0 }
0x2365   :  { %6388 = vmatmul.mubr.msk.f32.vlgmr.msra.gmra.mxu1 %vm833_vm6, %v5048_v41  ;;  %vm5252_vm6 = vcmask 9216  }
0x2425   :  { %v5133_v39 = vpop.f32.mrf.mxu1 }
0x2426   :  { %v5134_v59 = vadd.f32 %v5605_v33, %v5133_v39 }
0x2427   :  { %v6389_v11 = vpop.f32.mrf.mxu1 }
0x2428   :  { %v5140_v29 = vsel %vm5139_vm7, %v5134_v59, 0.0 }
0x2429   :  { %5141 = vadd.xlane.f32.xlu1 %v5140_v29 }
0x24b2   :  { %v5142_v38 = vpop.xlane.xlu1 %5141 }
0x24b3   :  { %v5143_v28 = vmul.f32 0.03125, %v5142_v38 }
0x24b5   :  { %v5144_v12 = vsub.f32 %v5134_v59, %v5143_v28 }
0x24b7   :  { %v5145_v13 = vmul.f32 %v5144_v12, %v5144_v12 }
0x24b9   :  { %v5146_v50 = vsel %vm5139_vm7, %v5145_v13, 0.0 }
0x24ba   :  { %5147 = vadd.xlane.f32.xlu0 %v5146_v50 }
0x2543   :  { %v5148_v27 = vpop.xlane.xlu0 %5147 }
0x2544   :  { %v5149_v17 = vmul.f32 0.03125, %v5148_v27 }
0x2546   :  { %v5150_v20 = vadd.f32 1e-05, %v5149_v17 }
0x2548   :  { %6592 = vrsqrt.f32 %v5150_v20 }
0x2555   :  { %v6593_v51 = vpop.eup %6592 }
0x2556   :  { %v5152_v58 = vmul.f32 %v6593_v51, %v5144_v12 }
0x2558   :  { %v5159_v30 = vmul.f32 %v5607_v10, %v5152_v58 }
0x255a   :  { %v5166_v34 = vadd.f32 %v5608_v62, %v5159_v30 }
0x255c   :  { %v5167_v16 = vmax.f32 %v5166_v34, 0.0 }
0x255e   :  { %6399 = vmatmul.mubr.msk.f32.vlgmr.msra.gmra.mxu0 %vm1756_vm8, %v5167_v16 }
0x261e   :  { %v5248_v35 = vpop.f32.mrf.mxu0 }
0x261f   :  { %v5249_v7 = vadd.f32 %v5609_v24, %v5248_v35 }
0x2620   :  { %v6400_v44 = vpop.f32.mrf.mxu0 }
0x2621   :  { %5253 = vst.msk [vmem:[#allocation2] sm:$0x3] %vm5252_vm6, %v5249_v7 }
0x2622   :  { %6605 = shalt.err (!%p6602_p4)
}
0x2623   :  { %5263 = dma.vmem_to_hbm [thread:$0]  %s5261_s30, 32, %s6913_s27, [#allocation3]  }
0x2624   :  { %6614 = dma.done.wait [#allocation3], 32  }
0x2625   :  { %6615 = vsyncadd [#allocation3], 4294967264 }
0x2626   :  { %5267 = vsyncpa [#allocation3], 1 }

</bundles_post_ra>
